<compile_context>
chip_gen: v7x
topology: tpu7x:2x2x1
jax: 0.10.0
libtpu: 0.0.40
codegen_flags: <defaults>
</compile_context>

<pallas_src>
import numpy as np
import jax
import jax.numpy as jnp
from jax import lax
from jax.experimental import pallas as pl
from jax.experimental.pallas import tpu as pltpu

H_IN = 24            # hard-coded by Decoder._reshape_output
H_PAD = H_IN + 2     # 1x1 conv with padding=1 -> 26x26
H_OUT = 384          # floor(26 * (384/26)) = 384
R_BLOCK = 192        # output-row chunk (2 chunks -> extra parallel grid axis)
BN_EPS = 1e-5
CT_MAX = 16          # max output channels per grid step


def _decoder_fused_kernel(xr_ref, w1b_ref, b1r_ref, scale_ref, shift_ref,
                          w2b_ref, b2adj_ref, border_ref, ah_ref, awt_ref, out_ref):
    """Fused conv1(1x1, pad=1) + BN(eval) + ReLU + conv2(1x1) + bilinear 26->384
    upsample for one batch element, one tile of output channels, one row chunk."""
    # conv1 in row-folded layout + folded BatchNorm + ReLU          (24, 24*Cin)
    h1 = jnp.dot(xr_ref[...], w1b_ref[...],
                 preferred_element_type=jnp.float32) + b1r_ref[...]
    h1 = jnp.maximum(h1 * scale_ref[...] + shift_ref[...], 0.0)

    ah = ah_ref[...]        # (R, 24)   row chunk of interior interp matrix
    awt = awt_ref[...]      # (24, 384)
    ct = out_ref.shape[0]

    def channel_body(c, carry):
        # conv2 for output channel c, ring value pre-folded into the bias:
        # h2c = conv2(h1)[c] - border_c   (aligned (24, 24) tile)
        h2c = jnp.dot(h1, w2b_ref[c],
                      preferred_element_type=jnp.float32) + b2adj_ref[c]
        # bilinear upsample: lane-dense (24, 384) intermediate first, then (R, 384);
        # the ring contribution is exactly the scalar border_c (interp rows sum to 1).
        t = jnp.dot(h2c, awt, preferred_element_type=jnp.float32)          # (24, 384)
        out_ref[c] = (jnp.dot(ah, t, preferred_element_type=jnp.float32)
                      + border_ref[c]).astype(out_ref.dtype)               # (R, 384)
        return carry

    lax.fori_loop(0, ct, channel_body, 0, unroll=True)


def _interp_matrix(n_in, n_out):
    """Row-interpolation matrix for bilinear, align_corners=True (numpy, f32)."""
    i = np.arange(n_out, dtype=np.float64)
    src = i * (n_in - 1) / (n_out - 1)
    i0 = np.floor(src).astype(np.int64)
    i1 = np.minimum(i0 + 1, n_in - 1)
    frac = (src - i0).astype(np.float32)
    a = np.zeros((n_out, n_in), dtype=np.float32)
    a[np.arange(n_out), i0] += 1.0 - frac
    a[np.arange(n_out), i1] += frac
    return a


def make_params(in_channels, out_channels, key):
    ks = jax.random.split(key, 8)
    return {
        "w1": 0.1 * jax.random.normal(ks[0], (in_channels, in_channels), jnp.float32),
        "b1": 0.1 * jax.random.normal(ks[1], (in_channels,), jnp.float32),
        "gamma": 1.0 + 0.1 * jax.random.normal(ks[2], (in_channels,), jnp.float32),
        "beta": 0.1 * jax.random.normal(ks[3], (in_channels,), jnp.float32),
        "running_mean": 0.1 * jax.random.normal(ks[4], (in_channels,), jnp.float32),
        "running_var": jax.random.uniform(ks[5], (in_channels,), jnp.float32, 0.5, 1.5),
        "w2": 0.1 * jax.random.normal(ks[6], (out_channels, in_channels), jnp.float32),
        "b2": 0.1 * jax.random.normal(ks[7], (out_channels,), jnp.float32),
    }


def decoder_forward(x, params, *, ct_max=CT_MAX, out_dtype=jnp.float32):
    """x: (B, 576, Cin) float32  ->  (B, Cout, 384, 384) NCHW (dtype=out_dtype)."""
    B, HW, cin = x.shape
    assert HW == H_IN * H_IN
    co = params["w2"].shape[0]
    P = H_IN * cin                                        # row-folded width = 24*Cin

    # ---- parameter folding (host/XLA glue, negligible) -----------------------
    # TODO(synk): BatchNorm2d is applied with running statistics (eval mode);
    # training-mode batch statistics would need an extra cross-batch reduction pass.
    scale = params["gamma"] * jax.lax.rsqrt(params["running_var"] + BN_EPS)
    shift = params["beta"] - params["running_mean"] * scale
    w1t = params["w1"].T                                  # (Cin, Cin)

    # Row-folded ("kron") conv weights: applies the 1x1 conv independently at each of
    # the 24 pixel positions of an image row, keeping every kernel matmul 2-D/aligned.
    # TODO(synk): for very large Cin (real SETR Cin=768) this block-diagonal expansion
    # is too big; there conv1/conv2 should revert to flat (576, Cin) matmuls plus a
    # single relayout to per-channel 24x24 tiles before the upsample.
    eye24 = jnp.eye(H_IN, dtype=jnp.float32)
    w1big = jnp.kron(eye24, w1t)                          # (P, P), block-diagonal
    b1r = jnp.tile(params["b1"], H_IN).reshape(1, P)
    scaler = jnp.tile(scale, H_IN).reshape(1, P)
    shiftr = jnp.tile(shift, H_IN).reshape(1, P)
    # per-output-channel conv2 weight, row-folded: w2big[c, w*Cin+k, w'] = d(w,w')*w2[c,k]
    w2big = jnp.einsum("ck,wv->cwkv", params["w2"], eye24).reshape(co, P, H_IN)

    # Padding ring of the 26x26 map: post conv1/BN/ReLU/conv2 it equals border2[c]
    # everywhere on the ring. Since every bilinear interp row sums to 1, the ring's
    # upsampled image folds into (conv2_bias - border2) inside + scalar border2 outside.
    border1 = jnp.maximum(params["b1"] * scale + shift, 0.0)
    border2 = border1 @ params["w2"].T + params["b2"]     # (Cout,)
    b2adj = (params["b2"] - border2).reshape(co, 1, 1)    # folded conv2 bias
    borderp = border2.reshape(co, 1, 1)                   # scalar epilogue add

    a26 = _interp_matrix(H_PAD, H_OUT)                    # (384, 26), numpy constants
    ah = jnp.asarray(np.ascontiguousarray(a26[:, 1:H_IN + 1]))        # (384, 24)
    awt = jnp.asarray(np.ascontiguousarray(a26[:, 1:H_IN + 1].T))     # (24, 384)

    # ---- channel / row tiling -------------------------------------------------
    # ct = largest divisor of Cout <= ct_max -> no padded (dead) output planes ever
    # get computed or written to HBM.
    ct = max(d for d in range(1, min(co, ct_max) + 1) if co % d == 0)
    n_ct = co // ct
    n_row = H_OUT // R_BLOCK                              # 2 row chunks of 192

    xr = x.reshape(B, H_IN, P)                            # free row-major reshape

    out = pl.pallas_call(
        _decoder_fused_kernel,
        out_shape=jax.ShapeDtypeStruct((B, co, H_OUT, H_OUT), out_dtype),
        grid_spec=pltpu.PrefetchScalarGridSpec(
            num_scalar_prefetch=0,
            grid=(B, n_ct, n_row),
            in_specs=[
                pl.BlockSpec((pl.Squeezed(), H_IN, P), lambda b, t, r: (b, 0, 0)),  # x
                pl.BlockSpec((P, P), lambda b, t, r: (0, 0)),                       # w1big
                pl.BlockSpec((1, P), lambda b, t, r: (0, 0)),                       # b1 (tiled)
                pl.BlockSpec((1, P), lambda b, t, r: (0, 0)),                       # BN scale
                pl.BlockSpec((1, P), lambda b, t, r: (0, 0)),                       # BN shift
                pl.BlockSpec((ct, P, H_IN), lambda b, t, r: (t, 0, 0)),             # w2big tile
                pl.BlockSpec((ct, 1, 1), lambda b, t, r: (t, 0, 0)),                # b2 - border
                pl.BlockSpec((ct, 1, 1), lambda b, t, r: (t, 0, 0)),                # border
                pl.BlockSpec((R_BLOCK, H_IN), lambda b, t, r: (r, 0)),              # Ah row chunk
                pl.BlockSpec((H_IN, H_OUT), lambda b, t, r: (0, 0)),                # Ah^T
            ],
            out_specs=pl.BlockSpec((pl.Squeezed(), ct, R_BLOCK, H_OUT),
                                   lambda b, t, r: (b, t, r, 0)),
        ),
        compiler_params=pltpu.CompilerParams(
            dimension_semantics=("parallel", "parallel", "parallel"),
            vmem_limit_bytes=48 * 1024 * 1024,   # < v7x 64 MiB physical; ~12 MiB used
        ),
    )(xr, w1big, b1r, scaler, shiftr, w2big, b2adj, borderp, ah, awt)

    return out


decoder_forward_jit = jax.jit(decoder_forward, static_argnames=("ct_max", "out_dtype"))


def decoder_reference(x, params):
    """Pure-JAX reference of the same forward pass (for validation)."""
    B, HW, cin = x.shape
    scale = params["gamma"] / jnp.sqrt(params["running_var"] + BN_EPS)
    shift = params["beta"] - params["running_mean"] * scale
    xi = x.reshape(B, H_IN, H_IN, cin)
    h1 = jnp.einsum("bhwc,oc->bhwo", xi, params["w1"])
    h1 = jnp.pad(h1, ((0, 0), (1, 1), (1, 1), (0, 0))) + params["b1"]  # conv1 pad + bias
    h1 = jnp.maximum(h1 * scale + shift, 0.0)
    h2 = jnp.einsum("bhwc,oc->bhwo", h1, params["w2"]) + params["b2"]
    a = jnp.asarray(_interp_matrix(H_PAD, H_OUT))
    y = jnp.einsum("Hh,bhwc->bHwc", a, h2)
    y = jnp.einsum("Ww,bHwc->bHWc", a, y)
    return jnp.transpose(y, (0, 3, 1, 2))


if __name__ == "__main__":
    B, CIN, COUT = 2, 16, 4
    key = jax.random.PRNGKey(0)
    kp, kx = jax.random.split(key)
    params = make_params(CIN, COUT, kp)
    # module input: (B, 24*24, in_channels)
    x = jax.random.normal(kx, (B, H_IN * H_IN, CIN), jnp.float32)

    out = jax.block_until_ready(decoder_forward_jit(x, params))
    assert out.shape == (B, COUT, H_OUT, H_OUT), out.shape

    ref = jax.block_until_ready(decoder_reference(x, params))
    np.testing.assert_allclose(np.asarray(out), np.asarray(ref), rtol=2e-3, atol=2e-3)
    print("KERNEL_OK")
</pallas_src>

<mosaic_0001>
module attributes {stable_mosaic.version = 11 : i64} {
  func.func @_decoder_fused_kernel(%arg0: i32, %arg1: i32, %arg2: i32, %arg3: memref<1x24x384xf32, #tpu.memory_space<vmem>>, %arg4: memref<384x384xf32, #tpu.memory_space<vmem>>, %arg5: memref<1x384xf32, #tpu.memory_space<vmem>>, %arg6: memref<1x384xf32, #tpu.memory_space<vmem>>, %arg7: memref<1x384xf32, #tpu.memory_space<vmem>>, %arg8: memref<4x384x24xf32, #tpu.memory_space<vmem>>, %arg9: memref<4x1x1xf32, #tpu.memory_space<vmem>>, %arg10: memref<4x1x1xf32, #tpu.memory_space<vmem>>, %arg11: memref<192x24xf32, #tpu.memory_space<vmem>>, %arg12: memref<24x384xf32, #tpu.memory_space<vmem>>, %arg13: memref<1x4x192x384xf32, #tpu.memory_space<vmem>>) attributes {dimension_semantics = [#tpu.dimension_semantics<parallel>, #tpu.dimension_semantics<parallel>, #tpu.dimension_semantics<parallel>], iteration_bounds = array<i64: 2, 1, 2>, scalar_prefetch = 0 : i64, scratch_operands = 0 : i64, tpu.core_type = #tpu.core_type<tc>, window_params = [{transform_indices = @transform_0, window_bounds = array<i64: 1, 24, 384>}, {pipeline_mode = #tpu.pipeline_mode<synchronous>, transform_indices = @transform_1, window_bounds = array<i64: 384, 384>}, {pipeline_mode = #tpu.pipeline_mode<synchronous>, transform_indices = @transform_2, window_bounds = array<i64: 1, 384>}, {pipeline_mode = #tpu.pipeline_mode<synchronous>, transform_indices = @transform_3, window_bounds = array<i64: 1, 384>}, {pipeline_mode = #tpu.pipeline_mode<synchronous>, transform_indices = @transform_4, window_bounds = array<i64: 1, 384>}, {transform_indices = @transform_5, window_bounds = array<i64: 4, 384, 24>}, {transform_indices = @transform_6, window_bounds = array<i64: 4, 1, 1>}, {transform_indices = @transform_7, window_bounds = array<i64: 4, 1, 1>}, {transform_indices = @transform_8, window_bounds = array<i64: 192, 24>}, {pipeline_mode = #tpu.pipeline_mode<synchronous>, transform_indices = @transform_9, window_bounds = array<i64: 24, 384>}, {transform_indices = @transform_10, window_bounds = array<i64: 1, 4, 192, 384>}]} {
    %c0 = arith.constant 0 : index
    %c0_0 = arith.constant 0 : index
    %c0_1 = arith.constant 0 : index
    %0 = vector.load %arg3[%c0, %c0_0, %c0_1] : memref<1x24x384xf32, #tpu.memory_space<vmem>>, vector<1x24x384xf32>
    %1 = vector.shape_cast %0 : vector<1x24x384xf32> to vector<24x384xf32>
    %c0_2 = arith.constant 0 : index
    %c0_3 = arith.constant 0 : index
    %2 = vector.load %arg4[%c0_2, %c0_3] : memref<384x384xf32, #tpu.memory_space<vmem>>, vector<384x384xf32>
    %cst = arith.constant dense<0.000000e+00> : vector<24x384xf32>
    %3 = tpu.matmul %1, %2, %cst {dimension_numbers = #tpu.dot_dimension_numbers<[1], [0], [0], [1], [0, 0, 1, 1], [], []>} : vector<24x384xf32>, vector<384x384xf32>, vector<24x384xf32> -> vector<24x384xf32>
    %c0_4 = arith.constant 0 : index
    %c0_5 = arith.constant 0 : index
    %4 = vector.load %arg5[%c0_4, %c0_5] : memref<1x384xf32, #tpu.memory_space<vmem>>, vector<1x384xf32>
    %5 = vector.broadcast %4 : vector<1x384xf32> to vector<24x384xf32>
    %6 = arith.addf %3, %5 : vector<24x384xf32>
    %c0_6 = arith.constant 0 : index
    %c0_7 = arith.constant 0 : index
    %7 = vector.load %arg6[%c0_6, %c0_7] : memref<1x384xf32, #tpu.memory_space<vmem>>, vector<1x384xf32>
    %8 = vector.broadcast %7 : vector<1x384xf32> to vector<24x384xf32>
    %9 = arith.mulf %6, %8 : vector<24x384xf32>
    %c0_8 = arith.constant 0 : index
    %c0_9 = arith.constant 0 : index
    %10 = vector.load %arg7[%c0_8, %c0_9] : memref<1x384xf32, #tpu.memory_space<vmem>>, vector<1x384xf32>
    %11 = vector.broadcast %10 : vector<1x384xf32> to vector<24x384xf32>
    %12 = arith.addf %9, %11 : vector<24x384xf32>
    %cst_10 = arith.constant 0.000000e+00 : f32
    %13 = vector.broadcast %cst_10 : f32 to vector<24x384xf32>
    %14 = arith.maximumf %12, %13 : vector<24x384xf32>
    %c0_11 = arith.constant 0 : index
    %c0_12 = arith.constant 0 : index
    %15 = vector.load %arg11[%c0_11, %c0_12] : memref<192x24xf32, #tpu.memory_space<vmem>>, vector<192x24xf32>
    %c0_13 = arith.constant 0 : index
    %c0_14 = arith.constant 0 : index
    %16 = vector.load %arg12[%c0_13, %c0_14] : memref<24x384xf32, #tpu.memory_space<vmem>>, vector<24x384xf32>
    %c0_i32 = arith.constant 0 : i32
    %17 = arith.index_cast %c0_i32 : i32 to index
    %c0_15 = arith.constant 0 : index
    %c0_16 = arith.constant 0 : index
    %18 = vector.load %arg8[%17, %c0_15, %c0_16] : memref<4x384x24xf32, #tpu.memory_space<vmem>>, vector<1x384x24xf32>
    %19 = vector.shape_cast %18 : vector<1x384x24xf32> to vector<384x24xf32>
    %cst_17 = arith.constant dense<0.000000e+00> : vector<24x24xf32>
    %20 = tpu.matmul %14, %19, %cst_17 {dimension_numbers = #tpu.dot_dimension_numbers<[1], [0], [0], [1], [0, 0, 1, 1], [], []>} : vector<24x384xf32>, vector<384x24xf32>, vector<24x24xf32> -> vector<24x24xf32>
    %21 = arith.index_cast %c0_i32 : i32 to index
    %c0_18 = arith.constant 0 : index
    %c0_19 = arith.constant 0 : index
    %22 = vector.load %arg9[%21, %c0_18, %c0_19] : memref<4x1x1xf32, #tpu.memory_space<vmem>>, vector<1x1x1xf32>
    %23 = vector.shape_cast %22 : vector<1x1x1xf32> to vector<1x1xf32>
    %24 = vector.broadcast %23 : vector<1x1xf32> to vector<24x24xf32>
    %25 = arith.addf %20, %24 : vector<24x24xf32>
    %cst_20 = arith.constant dense<0.000000e+00> : vector<24x384xf32>
    %26 = tpu.matmul %25, %16, %cst_20 {dimension_numbers = #tpu.dot_dimension_numbers<[1], [0], [0], [1], [0, 0, 1, 1], [], []>} : vector<24x24xf32>, vector<24x384xf32>, vector<24x384xf32> -> vector<24x384xf32>
    %cst_21 = arith.constant dense<0.000000e+00> : vector<192x384xf32>
    %27 = tpu.matmul %15, %26, %cst_21 {dimension_numbers = #tpu.dot_dimension_numbers<[1], [0], [0], [1], [0, 0, 1, 1], [], []>} : vector<192x24xf32>, vector<24x384xf32>, vector<192x384xf32> -> vector<192x384xf32>
    %28 = arith.index_cast %c0_i32 : i32 to index
    %c0_22 = arith.constant 0 : index
    %c0_23 = arith.constant 0 : index
    %29 = vector.load %arg10[%28, %c0_22, %c0_23] : memref<4x1x1xf32, #tpu.memory_space<vmem>>, vector<1x1x1xf32>
    %30 = vector.shape_cast %29 : vector<1x1x1xf32> to vector<1x1xf32>
    %31 = vector.broadcast %30 : vector<1x1xf32> to vector<192x384xf32>
    %32 = arith.addf %27, %31 : vector<192x384xf32>
    %c0_24 = arith.constant 0 : index
    %33 = arith.index_cast %c0_i32 : i32 to index
    %c0_25 = arith.constant 0 : index
    %c0_26 = arith.constant 0 : index
    %34 = vector.load %arg13[%c0_24, %33, %c0_25, %c0_26] : memref<1x4x192x384xf32, #tpu.memory_space<vmem>>, vector<1x1x192x384xf32>
    %35 = vector.shape_cast %34 : vector<1x1x192x384xf32> to vector<192x384xf32>
    %36 = vector.shape_cast %32 : vector<192x384xf32> to vector<1x1x192x384xf32>
    tpu.vector_store %arg13[%c0_24, %33, %c0_25, %c0_26], %36 {strides = array<i32>} : memref<1x4x192x384xf32, #tpu.memory_space<vmem>>, vector<1x1x192x384xf32>,
    %c1_i32 = arith.constant 1 : i32
    %37 = arith.index_cast %c1_i32 : i32 to index
    %c0_27 = arith.constant 0 : index
    %c0_28 = arith.constant 0 : index
    %38 = vector.load %arg8[%37, %c0_27, %c0_28] : memref<4x384x24xf32, #tpu.memory_space<vmem>>, vector<1x384x24xf32>
    %39 = vector.shape_cast %38 : vector<1x384x24xf32> to vector<384x24xf32>
    %cst_29 = arith.constant dense<0.000000e+00> : vector<24x24xf32>
    %40 = tpu.matmul %14, %39, %cst_29 {dimension_numbers = #tpu.dot_dimension_numbers<[1], [0], [0], [1], [0, 0, 1, 1], [], []>} : vector<24x384xf32>, vector<384x24xf32>, vector<24x24xf32> -> vector<24x24xf32>
    %41 = arith.index_cast %c1_i32 : i32 to index
    %c0_30 = arith.constant 0 : index
    %c0_31 = arith.constant 0 : index
    %42 = vector.load %arg9[%41, %c0_30, %c0_31] : memref<4x1x1xf32, #tpu.memory_space<vmem>>, vector<1x1x1xf32>
    %43 = vector.shape_cast %42 : vector<1x1x1xf32> to vector<1x1xf32>
    %44 = vector.broadcast %43 : vector<1x1xf32> to vector<24x24xf32>
    %45 = arith.addf %40, %44 : vector<24x24xf32>
    %cst_32 = arith.constant dense<0.000000e+00> : vector<24x384xf32>
    %46 = tpu.matmul %45, %16, %cst_32 {dimension_numbers = #tpu.dot_dimension_numbers<[1], [0], [0], [1], [0, 0, 1, 1], [], []>} : vector<24x24xf32>, vector<24x384xf32>, vector<24x384xf32> -> vector<24x384xf32>
    %cst_33 = arith.constant dense<0.000000e+00> : vector<192x384xf32>
    %47 = tpu.matmul %15, %46, %cst_33 {dimension_numbers = #tpu.dot_dimension_numbers<[1], [0], [0], [1], [0, 0, 1, 1], [], []>} : vector<192x24xf32>, vector<24x384xf32>, vector<192x384xf32> -> vector<192x384xf32>
    %48 = arith.index_cast %c1_i32 : i32 to index
    %c0_34 = arith.constant 0 : index
    %c0_35 = arith.constant 0 : index
    %49 = vector.load %arg10[%48, %c0_34, %c0_35] : memref<4x1x1xf32, #tpu.memory_space<vmem>>, vector<1x1x1xf32>
    %50 = vector.shape_cast %49 : vector<1x1x1xf32> to vector<1x1xf32>
    %51 = vector.broadcast %50 : vector<1x1xf32> to vector<192x384xf32>
    %52 = arith.addf %47, %51 : vector<192x384xf32>
    %c0_36 = arith.constant 0 : index
    %53 = arith.index_cast %c1_i32 : i32 to index
    %c0_37 = arith.constant 0 : index
    %c0_38 = arith.constant 0 : index
    %54 = vector.load %arg13[%c0_36, %53, %c0_37, %c0_38] : memref<1x4x192x384xf32, #tpu.memory_space<vmem>>, vector<1x1x192x384xf32>
    %55 = vector.shape_cast %54 : vector<1x1x192x384xf32> to vector<192x384xf32>
    %56 = vector.shape_cast %52 : vector<192x384xf32> to vector<1x1x192x384xf32>
    tpu.vector_store %arg13[%c0_36, %53, %c0_37, %c0_38], %56 {strides = array<i32>} : memref<1x4x192x384xf32, #tpu.memory_space<vmem>>, vector<1x1x192x384xf32>,
    %c2_i32 = arith.constant 2 : i32
    %57 = arith.index_cast %c2_i32 : i32 to index
    %c0_39 = arith.constant 0 : index
    %c0_40 = arith.constant 0 : index
    %58 = vector.load %arg8[%57, %c0_39, %c0_40] : memref<4x384x24xf32, #tpu.memory_space<vmem>>, vector<1x384x24xf32>
    %59 = vector.shape_cast %58 : vector<1x384x24xf32> to vector<384x24xf32>
    %cst_41 = arith.constant dense<0.000000e+00> : vector<24x24xf32>
    %60 = tpu.matmul %14, %59, %cst_41 {dimension_numbers = #tpu.dot_dimension_numbers<[1], [0], [0], [1], [0, 0, 1, 1], [], []>} : vector<24x384xf32>, vector<384x24xf32>, vector<24x24xf32> -> vector<24x24xf32>
    %61 = arith.index_cast %c2_i32 : i32 to index
    %c0_42 = arith.constant 0 : index
    %c0_43 = arith.constant 0 : index
    %62 = vector.load %arg9[%61, %c0_42, %c0_43] : memref<4x1x1xf32, #tpu.memory_space<vmem>>, vector<1x1x1xf32>
    %63 = vector.shape_cast %62 : vector<1x1x1xf32> to vector<1x1xf32>
    %64 = vector.broadcast %63 : vector<1x1xf32> to vector<24x24xf32>
    %65 = arith.addf %60, %64 : vector<24x24xf32>
    %cst_44 = arith.constant dense<0.000000e+00> : vector<24x384xf32>
    %66 = tpu.matmul %65, %16, %cst_44 {dimension_numbers = #tpu.dot_dimension_numbers<[1], [0], [0], [1], [0, 0, 1, 1], [], []>} : vector<24x24xf32>, vector<24x384xf32>, vector<24x384xf32> -> vector<24x384xf32>
    %cst_45 = arith.constant dense<0.000000e+00> : vector<192x384xf32>
    %67 = tpu.matmul %15, %66, %cst_45 {dimension_numbers = #tpu.dot_dimension_numbers<[1], [0], [0], [1], [0, 0, 1, 1], [], []>} : vector<192x24xf32>, vector<24x384xf32>, vector<192x384xf32> -> vector<192x384xf32>
    %68 = arith.index_cast %c2_i32 : i32 to index
    %c0_46 = arith.constant 0 : index
    %c0_47 = arith.constant 0 : index
    %69 = vector.load %arg10[%68, %c0_46, %c0_47] : memref<4x1x1xf32, #tpu.memory_space<vmem>>, vector<1x1x1xf32>
    %70 = vector.shape_cast %69 : vector<1x1x1xf32> to vector<1x1xf32>
    %71 = vector.broadcast %70 : vector<1x1xf32> to vector<192x384xf32>
    %72 = arith.addf %67, %71 : vector<192x384xf32>
    %c0_48 = arith.constant 0 : index
    %73 = arith.index_cast %c2_i32 : i32 to index
    %c0_49 = arith.constant 0 : index
    %c0_50 = arith.constant 0 : index
    %74 = vector.load %arg13[%c0_48, %73, %c0_49, %c0_50] : memref<1x4x192x384xf32, #tpu.memory_space<vmem>>, vector<1x1x192x384xf32>
    %75 = vector.shape_cast %74 : vector<1x1x192x384xf32> to vector<192x384xf32>
    %76 = vector.shape_cast %72 : vector<192x384xf32> to vector<1x1x192x384xf32>
    tpu.vector_store %arg13[%c0_48, %73, %c0_49, %c0_50], %76 {strides = array<i32>} : memref<1x4x192x384xf32, #tpu.memory_space<vmem>>, vector<1x1x192x384xf32>,
    %c3_i32 = arith.constant 3 : i32
    %77 = arith.index_cast %c3_i32 : i32 to index
    %c0_51 = arith.constant 0 : index
    %c0_52 = arith.constant 0 : index
    %78 = vector.load %arg8[%77, %c0_51, %c0_52] : memref<4x384x24xf32, #tpu.memory_space<vmem>>, vector<1x384x24xf32>
    %79 = vector.shape_cast %78 : vector<1x384x24xf32> to vector<384x24xf32>
    %cst_53 = arith.constant dense<0.000000e+00> : vector<24x24xf32>
    %80 = tpu.matmul %14, %79, %cst_53 {dimension_numbers = #tpu.dot_dimension_numbers<[1], [0], [0], [1], [0, 0, 1, 1], [], []>} : vector<24x384xf32>, vector<384x24xf32>, vector<24x24xf32> -> vector<24x24xf32>
    %81 = arith.index_cast %c3_i32 : i32 to index
    %c0_54 = arith.constant 0 : index
    %c0_55 = arith.constant 0 : index
    %82 = vector.load %arg9[%81, %c0_54, %c0_55] : memref<4x1x1xf32, #tpu.memory_space<vmem>>, vector<1x1x1xf32>
    %83 = vector.shape_cast %82 : vector<1x1x1xf32> to vector<1x1xf32>
    %84 = vector.broadcast %83 : vector<1x1xf32> to vector<24x24xf32>
    %85 = arith.addf %80, %84 : vector<24x24xf32>
    %cst_56 = arith.constant dense<0.000000e+00> : vector<24x384xf32>
    %86 = tpu.matmul %85, %16, %cst_56 {dimension_numbers = #tpu.dot_dimension_numbers<[1], [0], [0], [1], [0, 0, 1, 1], [], []>} : vector<24x24xf32>, vector<24x384xf32>, vector<24x384xf32> -> vector<24x384xf32>
    %cst_57 = arith.constant dense<0.000000e+00> : vector<192x384xf32>
    %87 = tpu.matmul %15, %86, %cst_57 {dimension_numbers = #tpu.dot_dimension_numbers<[1], [0], [0], [1], [0, 0, 1, 1], [], []>} : vector<192x24xf32>, vector<24x384xf32>, vector<192x384xf32> -> vector<192x384xf32>
    %88 = arith.index_cast %c3_i32 : i32 to index
    %c0_58 = arith.constant 0 : index
    %c0_59 = arith.constant 0 : index
    %89 = vector.load %arg10[%88, %c0_58, %c0_59] : memref<4x1x1xf32, #tpu.memory_space<vmem>>, vector<1x1x1xf32>
    %90 = vector.shape_cast %89 : vector<1x1x1xf32> to vector<1x1xf32>
    %91 = vector.broadcast %90 : vector<1x1xf32> to vector<192x384xf32>
    %92 = arith.addf %87, %91 : vector<192x384xf32>
    %c0_60 = arith.constant 0 : index
    %93 = arith.index_cast %c3_i32 : i32 to index
    %c0_61 = arith.constant 0 : index
    %c0_62 = arith.constant 0 : index
    %94 = vector.load %arg13[%c0_60, %93, %c0_61, %c0_62] : memref<1x4x192x384xf32, #tpu.memory_space<vmem>>, vector<1x1x192x384xf32>
    %95 = vector.shape_cast %94 : vector<1x1x192x384xf32> to vector<192x384xf32>
    %96 = vector.shape_cast %92 : vector<192x384xf32> to vector<1x1x192x384xf32>
    tpu.vector_store %arg13[%c0_60, %93, %c0_61, %c0_62], %96 {strides = array<i32>} : memref<1x4x192x384xf32, #tpu.memory_space<vmem>>, vector<1x1x192x384xf32>,
    %c4_i32 = arith.constant 4 : i32
    return
  }
  func.func @transform_0(%arg0: i32, %arg1: i32, %arg2: i32) -> (i32, i32, i32) {
    %c0_i32 = arith.constant 0 : i32
    %c0_i32_0 = arith.constant 0 : i32
    %c0_i32_1 = arith.constant 0 : i32
    return %arg0, %c0_i32, %c0_i32_0 : i32, i32, i32
  }
  func.func @transform_1(%arg0: i32, %arg1: i32, %arg2: i32) -> (i32, i32) {
    %c0_i32 = arith.constant 0 : i32
    %c0_i32_0 = arith.constant 0 : i32
    %c0_i32_1 = arith.constant 0 : i32
    return %c0_i32, %c0_i32_0 : i32, i32
  }
  func.func @transform_2(%arg0: i32, %arg1: i32, %arg2: i32) -> (i32, i32) {
    %c0_i32 = arith.constant 0 : i32
    %c0_i32_0 = arith.constant 0 : i32
    %c0_i32_1 = arith.constant 0 : i32
    return %c0_i32, %c0_i32_0 : i32, i32
  }
  func.func @transform_3(%arg0: i32, %arg1: i32, %arg2: i32) -> (i32, i32) {
    %c0_i32 = arith.constant 0 : i32
    %c0_i32_0 = arith.constant 0 : i32
    %c0_i32_1 = arith.constant 0 : i32
    return %c0_i32, %c0_i32_0 : i32, i32
  }
  func.func @transform_4(%arg0: i32, %arg1: i32, %arg2: i32) -> (i32, i32) {
    %c0_i32 = arith.constant 0 : i32
    %c0_i32_0 = arith.constant 0 : i32
    %c0_i32_1 = arith.constant 0 : i32
    return %c0_i32, %c0_i32_0 : i32, i32
  }
  func.func @transform_5(%arg0: i32, %arg1: i32, %arg2: i32) -> (i32, i32, i32) {
    %c0_i32 = arith.constant 0 : i32
    %c0_i32_0 = arith.constant 0 : i32
    %c0_i32_1 = arith.constant 0 : i32
    return %arg1, %c0_i32, %c0_i32_0 : i32, i32, i32
  }
  func.func @transform_6(%arg0: i32, %arg1: i32, %arg2: i32) -> (i32, i32, i32) {
    %c0_i32 = arith.constant 0 : i32
    %c0_i32_0 = arith.constant 0 : i32
    %c0_i32_1 = arith.constant 0 : i32
    return %arg1, %c0_i32, %c0_i32_0 : i32, i32, i32
  }
  func.func @transform_7(%arg0: i32, %arg1: i32, %arg2: i32) -> (i32, i32, i32) {
    %c0_i32 = arith.constant 0 : i32
    %c0_i32_0 = arith.constant 0 : i32
    %c0_i32_1 = arith.constant 0 : i32
    return %arg1, %c0_i32, %c0_i32_0 : i32, i32, i32
  }
  func.func @transform_8(%arg0: i32, %arg1: i32, %arg2: i32) -> (i32, i32) {
    %c0_i32 = arith.constant 0 : i32
    %c0_i32_0 = arith.constant 0 : i32
    return %arg2, %c0_i32 : i32, i32
  }
  func.func @transform_9(%arg0: i32, %arg1: i32, %arg2: i32) -> (i32, i32) {
    %c0_i32 = arith.constant 0 : i32
    %c0_i32_0 = arith.constant 0 : i32
    %c0_i32_1 = arith.constant 0 : i32
    return %c0_i32, %c0_i32_0 : i32, i32
  }
  func.func @transform_10(%arg0: i32, %arg1: i32, %arg2: i32) -> (i32, i32, i32, i32) {
    %c0_i32 = arith.constant 0 : i32
    %c0_i32_0 = arith.constant 0 : i32
    return %arg0, %arg1, %arg2, %c0_i32 : i32, i32, i32, i32
  }
}

</mosaic_0001>

<bundles_post_ra>
// kernel: tile.28
= control target key start
LH: loop header
LB: loop body
LE: loop exit
PB: predicated region body
PF: predicated region fallthrough
CT: control target
= control target key end

     0   :  { %s34_s0 = inlined_call_operand.vmem [shape: f32[16], index: 0, kind: input, shape index: {}]   ;;  %s35_s1 = inlined_call_operand.vmem [shape: f32[24,16], index: 1, kind: output, shape index: {}]  }
   0x1   :  { %v4_v0 = vld [vmem:[%s34_s0] ss:$0 sm:$0xff] }
   0x2   :  { %5 = vst [vmem:[%s35_s1] sm:$0xff] %v4_v0  ;;  %10 = vst [vmem:[%s35_s1 + $0x8] sm:$0xff] %v4_v0 }
   0x3   :  { %11 = vst [vmem:[%s35_s1 + $0x10] sm:$0xff] %v4_v0 }

// kernel: tile.29
= control target key start
LH: loop header
LB: loop body
LE: loop exit
PB: predicated region body
PF: predicated region fallthrough
CT: control target
= control target key end

     0   :  { %s81_s8 = smov 112   ;;  %s82_s11 = smov 80   ;;  %vm3_vm0 = vcmask 130048   ;;  %vm9_vm1 = vcmask 1048448   ;;  %vm15_vm2 = vcmask 917248   ;;  %vm21_vm3 = vcmask 786048   ;;  %s131_s0 = inlined_call_operand.vmem [shape: f32[24,16], index: 0, kind: input, shape index: {}]   ;;  %s132_s1 = inlined_call_operand.vmem [shape: f32[1,384], index: 1, kind: output, shape index: {}]  }
   0x1   :  { %v65_v0 = vld [vmem:[%s131_s0 + $0x7] ss:$8 sm:$0x7]   ;;  %v67_v1 = vld [vmem:[%s131_s0 + $0x5] ss:$8 sm:$0x7]  }
   0x2   :  { %7 = vrot.lane.b32.xlu0 %v65_v0, %s81_s8  ;;  %19 = vrot.lane.b32.xlu1 %v67_v1, %s82_s11  ;;  %v66_v2 = vld [vmem:[%s131_s0 + $0x6] ss:$8 sm:$0x7]   ;;  %v68_v3 = vld [vmem:[%s131_s0 + $0x4] ss:$8 sm:$0x7]  }
   0x3   :  { %s83_s16 = smov 96   ;;  %v2_v4 = vld [vmem:[%s131_s0] ss:$8 sm:$0x7]   ;;  %s84_s19 = smov 64   ;;  %vm27_vm4 = vcmask 654848  }
   0x4   :  { %v69_v5 = vld [vmem:[%s131_s0 + $0x3] ss:$8 sm:$0x7]   ;;  %4 = vst.msk [vmem:[#allocation0] ss:$8 sm:$0x7] %vm3_vm0, %v2_v4  }
   0x5   :  { %v70_v6 = vld [vmem:[%s131_s0 + $0x2] ss:$8 sm:$0x7]   ;;  %s85_s24 = smov 48   ;;  %s86_s25 = smov 32   ;;  %vm33_vm5 = vcmask 523648  }
   0x6   :  { %13 = vrot.lane.b32.xlu0 %v66_v2, %s83_s16  ;;  %25 = vrot.lane.b32.xlu1 %v68_v3, %s84_s19  ;;  %v71_v7 = vld [vmem:[%s131_s0 + $0x1] ss:$8 sm:$0x7]   ;;  %s87_s0 = smov 16   ;;  %vm39_vm6 = vcmask 392448   ;;  %vm45_vm7 = vcmask 261248  }
   0xa   :  { %31 = vrot.lane.b32.xlu0 %v69_v5, %s85_s24  ;;  %37 = vrot.lane.b32.xlu1 %v70_v6, %s86_s25 }
   0xe   :  { %43 = vrot.lane.b32.xlu0 %v71_v7, %s87_s0 }
  0x74   :  { %v8_v8 = vpop.permute.xlu0 %7   ;;  %v20_v9 = vpop.permute.xlu1 %19  }
  0x75   :  { %10 = vst.msk [vmem:[#allocation0] ss:$8 sm:$0x7] %vm9_vm1, %v8_v8  }
  0x78   :  { %v14_v10 = vpop.permute.xlu0 %13   ;;  %v26_v11 = vpop.permute.xlu1 %25  }
  0x79   :  { %16 = vst.msk [vmem:[#allocation0] ss:$8 sm:$0x7] %vm15_vm2, %v14_v10  }
  0x7a   :  { %22 = vst.msk [vmem:[#allocation0] ss:$8 sm:$0x7] %vm21_vm3, %v20_v9  }
  0x7b   :  { %28 = vst.msk [vmem:[#allocation0] ss:$8 sm:$0x7] %vm27_vm4, %v26_v11  }
  0x7c   :  { %v32_v12 = vpop.permute.xlu0 %31   ;;  %v38_v13 = vpop.permute.xlu1 %37  }
  0x7d   :  { %34 = vst.msk [vmem:[#allocation0] ss:$8 sm:$0x7] %vm33_vm5, %v32_v12  }
  0x7e   :  { %40 = vst.msk [vmem:[#allocation0] ss:$8 sm:$0x7] %vm39_vm6, %v38_v13  }
  0x80   :  { %v44_v14 = vpop.permute.xlu0 %43  }
  0x81   :  { %46 = vst.msk [vmem:[#allocation0] ss:$8 sm:$0x7] %vm45_vm7, %v44_v14  }
  0x88   :  { %v50_v15 = vld [vmem:[#allocation0] sm:$0x1]  ;;  %v54_v16 = vld [vmem:[#allocation0 + $0x8] sm:$0x1]  ;;  %v59_v17 = vld [vmem:[#allocation0 + $0x10] sm:$0x1] }
  0x89   :  { %52 = vst [vmem:[%s132_s1] sm:$0x1] %v50_v15  ;;  %72 = vst [vmem:[%s132_s1 + $0x1] sm:$0x1] %v54_v16 }
  0x8a   :  { %73 = vst [vmem:[%s132_s1 + $0x2] sm:$0x1] %v59_v17 }

// kernel: tile.18
= control target key start
LH: loop header
LB: loop body
LE: loop exit
PB: predicated region body
PF: predicated region fallthrough
CT: control target
= control target key end

     0   :  { %2 = vsyncpa [#allocation1], 0  ;;  %s50_s6 = smov [#allocation0]   ;;  %s82_s0 = inlined_call_operand.hbm [shape: f32[16], index: 0, kind: input, shape index: {}]   ;;  %s83_s1 = inlined_call_operand.vmem [shape: f32[24,16], index: 1, kind: output, shape index: {}]  }
   0x1   :  { %s9_s7 = sshll.u32 %s50_s6, 4  ;;  %s26_s10 = scalar_lea.hbm %s82_s0, 16  ;;  %s10_s7 = int_to_ptr.vmem [resolvable:$true] %s9_s7 }
   0x2   :  { %p27_p0 = scmp.ne.s32.totalorder %s82_s0, %s26_s10  ;;  %p30_p1 = scmp.lt.u32.totalorder %s26_s10, %s82_s0 }
   0x4   :  { %p32_p2 = pnand %p30_p1, %p27_p0 }
   0x6   :  { %35 = shalt.err (!%p32_p2)
}
   0x7   :  { %s36_s15 = scalar_lea.vmem %s10_s7, 16  ;;  %s40_s16 = scalar_lea.vmem %s10_s7, 32 }
   0x8   :  { %p37_p3 = scmp.ne.s32.totalorder %s10_s7, %s36_s15  ;;  %p41_p4 = scmp.lt.s32.totalorder %s10_s7, %s10_s7 }
   0x9   :  { %p42_p5 = scmp.lt.s32.totalorder %s40_s16, %s36_s15 }
   0xb   :  { %p43_p6 = por %p42_p5, %p41_p4 }
   0xd   :  { %p44_p7 = pnand %p43_p6, %p37_p3 }
   0xf   :  { %47 = shalt.err (!%p44_p7)
}
  0x10   :  { %12 = dma.hbm_to_vmem [thread:$0]  %s82_s0, 16, %s10_s7, [#allocation1]  }
  0x11   :  { %48 = dma.done.wait [#allocation1], 16  }
  0x12   :  { %49 = vsyncadd [#allocation1], 4294967280  ;;  %v16_v0 = vld [vmem:[#allocation0] ss:$0 sm:$0xff] }
  0x13   :  { %17 = vst [vmem:[%s83_s1] sm:$0xff] %v16_v0  ;;  %23 = vst [vmem:[%s83_s1 + $0x8] sm:$0xff] %v16_v0 }
  0x14   :  { %24 = vst [vmem:[%s83_s1 + $0x10] sm:$0xff] %v16_v0 }
  0x15   :  { %22 = vsyncpa [#allocation1], 1 }

// kernel: decoder_forward.1
= control target key start
LH: loop header
LB: loop body
LE: loop exit
PB: predicated region body
PF: predicated region fallthrough
CT: control target
= control target key end

     0   :  { %15 = vsyncpa [#allocation3], 0  ;;  %s9673_s0 = inlined_call_operand.vmem [shape: f32[2,24,384], index: 0, kind: input, shape index: {}]   ;;  %s9674_s1 = inlined_call_operand.vmem [shape: f32[384,384], index: 1, kind: input, shape index: {}]   ;;  %s9675_s2 = inlined_call_operand.vmem [shape: f32[1,384], index: 2, kind: input, shape index: {}]   ;;  %s9676_s3 = inlined_call_operand.vmem [shape: f32[1,384], index: 3, kind: input, shape index: {}]   ;;  %s9677_s4 = inlined_call_operand.vmem [shape: f32[1,384], index: 4, kind: input, shape index: {}]   ;;  %s9678_s5 = inlined_call_operand.vmem [shape: f32[4,384,24], index: 5, kind: input, shape index: {}]   ;;  %s9679_s6 = inlined_call_operand.vmem [shape: f32[4,1,1], index: 6, kind: input, shape index: {}]   ;;  %s9680_s7 = inlined_call_operand.vmem [shape: f32[4,1,1], index: 7, kind: input, shape index: {}]   ;;  %s9681_s8 = inlined_call_operand.vmem [shape: f32[384,24], index: 8, kind: input, shape index: {}]   ;;  %s9682_s9 = inlined_call_operand.vmem [shape: f32[24,384], index: 9, kind: input, shape index: {}]   ;;  %s9683_s10 = inlined_call_operand.hbm [shape: f32[2,4,384,384], index: 10, kind: output, shape index: {}]  }
   0x1   :  { %17 = vsyncpa [#allocation3 + $0x1], 0  ;;  %s6983_s13 = smov 0   ;;  %s6985_s14 = smov 0  }
   0x2   :  { %s6987_s15 = smov 0   ;;  %s6989_s16 = smov 0  }
   0x3   :  { %s6991_s17 = smov 0   ;;  %s6993_s18 = smov 0  }
   0x4   :  { %s6995_s19 = smov 0   ;;  %s6997_s20 = smov 0  }
   0x5 LB: > { %9689 = sst [smem:[#allocation7_spill]] %s6888_s13  ;;  %s4788_s21 = sadd.s32 4294967295, %s6916_s20   ;;  %s6916_s20 = sphi %s6997_s20, %s23_s20   ;;  %s6912_s19 = sphi %s6995_s19, %s9702_s19   ;;  %s6908_s18 = sphi %s6993_s18, %s9701_s18   ;;  %s6904_s17 = sphi %s6991_s17, %s9700_s17   ;;  %s6900_s16 = sphi %s6989_s16, %s9699_s16   ;;  %s6896_s15 = sphi %s6987_s15, %s9705_s15   ;;  %s6892_s14 = sphi %s6985_s14, %s9704_s14   ;;  %s6888_s13 = sphi %s6983_s13, %s9703_s13  }
   0x6   : > { %9690 = sst [smem:[#allocation8_spill]] %s6908_s18  ;;  %s4789_s22 = sadd.s32 4294967294, %s6916_s20  }
   0x7   : > { %9691 = sst [smem:[#allocation9_spill]] %s6912_s19  ;;  %s35_s23 = sadd.s32 1, %s6908_s18 }
   0x8   : > { %p36_p0 = scmp.ge.s32.totalorder %s35_s23, 2  ;;  %s42_s24 = sadd.s32 1, %s6912_s19 }
   0x9   : > { %p298_p1 = scmp.ne.s32.totalorder %s6896_s15, %s6892_s14  ;;  %p299_p2 = scmp.eq.s32.totalorder %s4788_s21, 3 }
   0xa   : > { %s9707_s23 = smov (%p36_p0, %s35_s23), 0  ;;  %s9709_s24 = smov (!%p36_p0, %s42_s24), %s6912_s19 }
   0xb   : > { %9692 = sst [smem:[#allocation10_spill]] %s9707_s23  ;;  %s284_s25 = ssub.s32 %s6908_s18, %s9707_s23 }
   0xc   : > { %p7034_p3 = por %p299_p2, %p298_p1  ;;  %p44_p4 = scmp.ge.s32.totalorder %s9709_s24, 2 }
   0xd   : > { %p304_p5 = scmp.ne.s32.totalorder %s6892_s14, %s6888_s13  ;;  %p305_p6 = scmp.eq.s32.totalorder %s4789_s22, 3 }
   0xe   : > { %p4795_p7 = scmp.ge.s32.totalorder %s6916_s20, 1  ;;  %s9711_s24 = smov (%p44_p4, %s9709_s24), 0 }
   0xf   : > { %9694 = sst [smem:[#allocation11_spill]] %s9711_s24  ;;  %p7043_p8 = por %p305_p6, %p304_p5 }
  0x10   : > { %p381_p9 = scmp.lt.s32.totalorder %s6916_s20, 5  ;;  %s281_s28 = ssub.s32 %s6912_s19, %s9711_s24 }
  0x11   : > { %s288_s29 = sadd.s32 1, %s6896_s15  ;;  %s285_s30 = sor.u32 %s284_s25, %s281_s28 }
  0x12   : > { %p382_p10 = pnand %p4795_p7, %p381_p9  ;;  %p286_p11 = scmp.eq.s32.totalorder %s285_s30, 0 }
  0x13   : > { %v478_v0 = vld [vmem:[%s9674_s1 + $0x8] sm:$0xff] (!%p382_p10)  ;;  %v481_v1 = vld [vmem:[%s9674_s1 + $0x20] sm:$0xff] (!%p382_p10)  ;;  %v480_v4 = vld [vmem:[%s9674_s1 + $0x18] sm:$0xff] (!%p382_p10)  ;;  %p438_p12 = scmp.lt.s32.totalorder (!%p382_p10), %s6904_s17, 1  ;;  %vm6919_vm0 = vmmov (!%p382_p10), 0   ;;  %vm1276_vm1 = vcmask (!%p382_p10), 195584  }
  0x14   : > { %s7052_s11 = scalar_select %p286_p11, %s6896_s15, %s288_s29  }
  0x15   : > { %385 = sbr.rel (%p382_p10) target bundleno = 2691 (0xa83), region = 60  ;;  %v477_v2 = vld [vmem:[%s9674_s1] sm:$0xff] (!%p382_p10)  ;;  %v6256_v3 = vpack.c.bf16 (!%p382_p10), %v481_v1, %v478_v0  ;;  %v484_v5 = vld [vmem:[%s9674_s1 + $0x38] sm:$0xff] (!%p382_p10)  ;;  %v487_v6 = vld [vmem:[%s9674_s1 + $0x50] sm:$0xff] (!%p382_p10)  ;;  %s435_s13 = sand.u32 (!%p382_p10), 1, %s6892_s14  }
  0x16   : > { %9696 = sst [smem:[#allocation12_spill]] %s7052_s11  ;;  %v6258_v7 = vpack.c.bf16 (!%p382_p10), %v480_v4, %v477_v2  ;;  %v6260_v8 = vpack.c.bf16 (!%p382_p10), %v487_v6, %v484_v5  ;;  %v483_v9 = vld [vmem:[%s9674_s1 + $0x30] sm:$0xff] (!%p382_p10)  ;;  %v486_v10 = vld [vmem:[%s9674_s1 + $0x48] sm:$0xff] (!%p382_p10)  ;;  %v493_v12 = vld [vmem:[%s9674_s1 + $0x80] sm:$0xff] (!%p382_p10)  ;;  %s460_s30 = smul.u32 (!%p382_p10), 24, %s6900_s16 }
  0x17   : > { %v490_v11 = vld [vmem:[%s9674_s1 + $0x68] sm:$0xff] (!%p382_p10)  ;;  %6257 = vmatprep.subr.bf16.mxu0 (!%p382_p10), %v6256_v3  ;;  %v6262_v13 = vpack.c.bf16 (!%p382_p10), %v486_v10, %v483_v9  ;;  %v489_v14 = vld [vmem:[%s9674_s1 + $0x60] sm:$0xff] (!%p382_p10)  ;;  %v527_v15 = vld [vmem:[%s9674_s1 + $0x190] sm:$0xff] (!%p382_p10)  ;;  %s6704_s18 = smul.u32 (!%p382_p10), 2304, %s435_s13 }
  0x18   : > { %6259 = vmatpush1.bf16.msra.mxu0 (!%p382_p10), %v6258_v7  ;;  %v530_v16 = vld [vmem:[%s9674_s1 + $0x1a8] sm:$0xff] (!%p382_p10)  ;;  %v6264_v17 = vpack.c.bf16 (!%p382_p10), %v493_v12, %v490_v11  ;;  %v492_v18 = vld [vmem:[%s9674_s1 + $0x78] sm:$0xff] (!%p382_p10)  ;;  %v479_v20 = vld [vmem:[%s9674_s1 + $0x10] sm:$0xff] (!%p382_p10)  ;;  %p461_p13 = scmp.lt.s32.totalorder (!%p382_p10), %s460_s30, 47 }
  0x19   : > { %6261 = vmatprep.subr.bf16.mxu0 (!%p382_p10), %v6260_v8  ;;  %v6352_v19 = vpack.c.bf16 (!%p382_p10), %v530_v16, %v527_v15  ;;  %v482_v21 = vld [vmem:[%s9674_s1 + $0x28] sm:$0xff] (!%p382_p10)  ;;  %v496_v22 = vld [vmem:[%s9674_s1 + $0x98] sm:$0xff] (!%p382_p10)  ;;  %v499_v23 = vld [vmem:[%s9674_s1 + $0xb0] sm:$0xff] (!%p382_p10)  ;;  %v6266_v27 = vpack.c.bf16 (!%p382_p10), %v492_v18, %v489_v14  ;;  %s8193_s24 = scalar_lea.vmem (!%p382_p10), [#allocation2], %s6704_s18 }
  0x1a   : > { %v6354_v24 = vpack.c.bf16 (!%p382_p10), %v482_v21, %v479_v20  ;;  %v533_v25 = vld [vmem:[%s9674_s1 + $0x1c0] sm:$0xff] (!%p382_p10)  ;;  %v536_v26 = vld [vmem:[%s9674_s1 + $0x1d8] sm:$0xff] (!%p382_p10)  ;;  %v495_v28 = vld [vmem:[%s9674_s1 + $0x90] sm:$0xff] (!%p382_p10)  ;;  %v6268_v32 = vpack.c.bf16 (!%p382_p10), %v499_v23, %v496_v22 }
  0x1b   : > { %6353 = vmatprep.subr.bf16.mxu1 (!%p382_p10), %v6352_v19  ;;  %v6356_v29 = vpack.c.bf16 (!%p382_p10), %v536_v26, %v533_v25  ;;  %v485_v30 = vld [vmem:[%s9674_s1 + $0x40] sm:$0xff] (!%p382_p10)  ;;  %v488_v31 = vld [vmem:[%s9674_s1 + $0x58] sm:$0xff] (!%p382_p10)  ;;  %v498_v33 = vld [vmem:[%s9674_s1 + $0xa8] sm:$0xff] (!%p382_p10) }
  0x1c   : > { %6263 = vmatpush1.bf16.msra.mxu0 %v6262_v13  ;;  %6355 = vmatpush3.bf16.msra.mxu1 %v6354_v24  ;;  %v6358_v34 = vpack.c.bf16 %v488_v31, %v485_v30  ;;  %v539_v35 = vld [vmem:[%s9674_s1 + $0x1f0] sm:$0xff]  ;;  %v542_v36 = vld [vmem:[%s9674_s1 + $0x208] sm:$0xff]  ;;  %v505_v38 = vld [vmem:[%s9674_s1 + $0xe0] sm:$0xff]  ;;  %v6270_v42 = vpack.c.bf16 %v498_v33, %v495_v28  ;;  %s7175_s23 = scalar_select %p438_p12, %s6904_s17, 1 }
  0x1d   : > { %6265 = vmatprep.subr.bf16.mxu0 %v6264_v17  ;;  %6357 = vmatprep.subr.bf16.mxu1 %v6356_v29  ;;  %v502_v37 = vld [vmem:[%s9674_s1 + $0xc8] sm:$0xff]  ;;  %v6360_v39 = vpack.c.bf16 %v542_v36, %v539_v35  ;;  %v491_v40 = vld [vmem:[%s9674_s1 + $0x70] sm:$0xff]  ;;  %v501_v43 = vld [vmem:[%s9674_s1 + $0xc0] sm:$0xff]  ;;  %s9713_s30 = smov (!%p461_p13, %s460_s30), 47 }
  0x1e   : > { %v494_v41 = vld [vmem:[%s9674_s1 + $0x88] sm:$0xff]  ;;  %v545_v45 = vld [vmem:[%s9674_s1 + $0x220] sm:$0xff]  ;;  %v548_v46 = vld [vmem:[%s9674_s1 + $0x238] sm:$0xff]  ;;  %v6272_v47 = vpack.c.bf16 %v505_v38, %v502_v37  ;;  %s6705_s29 = smul.u32 72, %s7175_s23  ;;  %s4797_s12 = sshll.u32 %s9713_s30, 3 }
  0x1f   : > { %v6362_v44 = vpack.c.bf16 %v494_v41, %v491_v40  ;;  %v504_v48 = vld [vmem:[%s9674_s1 + $0xd8] sm:$0xff]  ;;  %v6364_v49 = vpack.c.bf16 %v548_v46, %v545_v45  ;;  %v497_v50 = vld [vmem:[%s9674_s1 + $0xa0] sm:$0xff]  ;;  %v511_v53 = vld [vmem:[%s9674_s1 + $0x110] sm:$0xff]  ;;  %s7821_s21 = scalar_lea.vmem %s9681_s8, %s4797_s12 }
  0x20   : > { %6267 = vmatpush1.bf16.msra.mxu0 %v6266_v27  ;;  %6359 = vmatpush3.bf16.msra.mxu1 %v6358_v34  ;;  %v500_v51 = vld [vmem:[%s9674_s1 + $0xb8] sm:$0xff]  ;;  %v551_v54 = vld [vmem:[%s9674_s1 + $0x250] sm:$0xff]  ;;  %v554_v55 = vld [vmem:[%s9674_s1 + $0x268] sm:$0xff]  ;;  %v6274_v56 = vpack.c.bf16 %v504_v48, %v501_v43  ;;  %s7232_s19 = scalar_lea.vmem %s9673_s0, %s6705_s29 }
  0x21   : > { %6269 = vmatprep.subr.bf16.mxu0 %v6268_v32  ;;  %6361 = vmatprep.subr.bf16.mxu1 %v6360_v39  ;;  %v508_v52 = vld [vmem:[%s9674_s1 + $0xf8] sm:$0xff]  ;;  %v507_v57 = vld [vmem:[%s9674_s1 + $0xf0] sm:$0xff]  ;;  %v510_v58 = vld [vmem:[%s9674_s1 + $0x108] sm:$0xff]  ;;  %v6366_v59 = vpack.c.bf16 %v500_v51, %v497_v50  ;;  %v6368_v62 = vpack.c.bf16 %v554_v55, %v551_v54  ;;  %v6918_v54 = vmov 0.0|0.0  }
  0x22   : > { %v6276_v60 = vpack.c.bf16 %v511_v53, %v508_v52  ;;  %v514_v61 = vld [vmem:[%s9674_s1 + $0x128] sm:$0xff]  ;;  %v503_v63 = vld [vmem:[%s9674_s1 + $0xd0] sm:$0xff]  ;;  %v517_v1 = vld [vmem:[%s9674_s1 + $0x140] sm:$0xff]  ;;  %v6278_v4 = vpack.c.bf16 %v510_v58, %v507_v57 }
  0x23   : > { %v506_v0 = vld [vmem:[%s9674_s1 + $0xe8] sm:$0xff]  ;;  %v557_v2 = vld [vmem:[%s9674_s1 + $0x280] sm:$0xff]  ;;  %v560_v3 = vld [vmem:[%s9674_s1 + $0x298] sm:$0xff]  ;;  %v6280_v8 = vpack.c.bf16 %v517_v1, %v514_v61 }
  0x24   : > { %6271 = vmatpush1.bf16.msra.mxu0 %v6270_v42  ;;  %6363 = vmatpush3.bf16.msra.mxu1 %v6362_v44  ;;  %v513_v5 = vld [vmem:[%s9674_s1 + $0x120] sm:$0xff]  ;;  %v516_v6 = vld [vmem:[%s9674_s1 + $0x138] sm:$0xff]  ;;  %v6370_v7 = vpack.c.bf16 %v506_v0, %v503_v63  ;;  %v6372_v10 = vpack.c.bf16 %v560_v3, %v557_v2  ;;  %v523_v13 = vld [vmem:[%s9674_s1 + $0x170] sm:$0xff] }
  0x25   : > { %6273 = vmatprep.subr.bf16.mxu0 %v6272_v47  ;;  %6365 = vmatprep.subr.bf16.mxu1 %v6364_v49  ;;  %v520_v9 = vld [vmem:[%s9674_s1 + $0x158] sm:$0xff]  ;;  %v509_v11 = vld [vmem:[%s9674_s1 + $0x100] sm:$0xff]  ;;  %v563_v14 = vld [vmem:[%s9674_s1 + $0x2b0] sm:$0xff]  ;;  %v6282_v16 = vpack.c.bf16 %v516_v6, %v513_v5 }
  0x26   : > { %v512_v12 = vld [vmem:[%s9674_s1 + $0x118] sm:$0xff]  ;;  %v566_v15 = vld [vmem:[%s9674_s1 + $0x2c8] sm:$0xff]  ;;  %v519_v17 = vld [vmem:[%s9674_s1 + $0x150] sm:$0xff]  ;;  %v6284_v21 = vpack.c.bf16 %v523_v13, %v520_v9 }
  0x27   : > { %v522_v18 = vld [vmem:[%s9674_s1 + $0x168] sm:$0xff]  ;;  %v6374_v20 = vpack.c.bf16 %v512_v12, %v509_v11  ;;  %v6376_v22 = vpack.c.bf16 %v566_v15, %v563_v14  ;;  %v515_v23 = vld [vmem:[%s9674_s1 + $0x130] sm:$0xff]  ;;  %v529_v26 = vld [vmem:[%s9674_s1 + $0x1a0] sm:$0xff] }
  0x28   : > { %6275 = vmatpush1.bf16.msra.mxu0 %v6274_v56  ;;  %6367 = vmatpush3.bf16.msra.mxu1 %v6366_v59  ;;  %v526_v19 = vld [vmem:[%s9674_s1 + $0x188] sm:$0xff]  ;;  %v569_v27 = vld [vmem:[%s9674_s1 + $0x2e0] sm:$0xff]  ;;  %v572_v28 = vld [vmem:[%s9674_s1 + $0x2f8] sm:$0xff]  ;;  %v6286_v29 = vpack.c.bf16 %v522_v18, %v519_v17 }
  0x29   : > { %6277 = vmatprep.subr.bf16.mxu0 %v6276_v60  ;;  %6369 = vmatprep.subr.bf16.mxu1 %v6368_v62  ;;  %v518_v24 = vld [vmem:[%s9674_s1 + $0x148] sm:$0xff]  ;;  %v525_v30 = vld [vmem:[%s9674_s1 + $0x180] sm:$0xff]  ;;  %v6288_v32 = vpack.c.bf16 %v529_v26, %v526_v19  ;;  %v528_v33 = vld [vmem:[%s9674_s1 + $0x198] sm:$0xff]  ;;  %v6380_v34 = vpack.c.bf16 %v572_v28, %v569_v27  ;;  %v6920_v26 = vmov 0.0  }
  0x2a   : > { %v469_v25 = vld [vmem:[%s7232_s19 + $0x8] sm:$0xff]  ;;  %v6378_v31 = vpack.c.bf16 %v518_v24, %v515_v23  ;;  %v521_v35 = vld [vmem:[%s9674_s1 + $0x160] sm:$0xff]  ;;  %v524_v36 = vld [vmem:[%s9674_s1 + $0x178] sm:$0xff]  ;;  %v6290_v39 = vpack.c.bf16 %v528_v33, %v525_v30 }
  0x2b   : > { %868 = vmatprep.mubr.f32.mxu1 %v469_v25  ;;  %702 = vmatprep.mubr.f32.mxu0 %v469_v25  ;;  %v532_v37 = vld [vmem:[%s9674_s1 + $0x1b8] sm:$0xff]  ;;  %v535_v38 = vld [vmem:[%s9674_s1 + $0x1d0] sm:$0xff]  ;;  %v6382_v41 = vpack.c.bf16 %v524_v36, %v521_v35  ;;  %v534_v43 = vld [vmem:[%s9674_s1 + $0x1c8] sm:$0xff] }
  0x2c   : > { %6279 = vmatpush1.bf16.msra.mxu0 %v6278_v4  ;;  %6371 = vmatpush3.bf16.msra.mxu1 %v6370_v7  ;;  %v531_v40 = vld [vmem:[%s9674_s1 + $0x1b0] sm:$0xff]  ;;  %v6292_v42 = vpack.c.bf16 %v535_v38, %v532_v37  ;;  %v578_v45 = vld [vmem:[%s9674_s1 + $0x328] sm:$0xff]  ;;  %v541_v47 = vld [vmem:[%s9674_s1 + $0x200] sm:$0xff] }
  0x2d   : > { %6281 = vmatprep.subr.bf16.mxu0 %v6280_v8  ;;  %6373 = vmatprep.subr.bf16.mxu1 %v6372_v10  ;;  %v575_v44 = vld [vmem:[%s9674_s1 + $0x310] sm:$0xff]  ;;  %v538_v46 = vld [vmem:[%s9674_s1 + $0x1e8] sm:$0xff]  ;;  %v6294_v48 = vpack.c.bf16 %v534_v43, %v531_v40  ;;  %v537_v49 = vld [vmem:[%s9674_s1 + $0x1e0] sm:$0xff] }
  0x2e   : > { %v7299_v50 = vld [vmem:[%s7232_s19] sm:$0xff]  ;;  %v6385_v51 = vpack.c.bf16 %v578_v45, %v575_v44  ;;  %v6296_v52 = vpack.c.bf16 %v541_v47, %v538_v46  ;;  %v540_v53 = vld [vmem:[%s9674_s1 + $0x1f8] sm:$0xff]  ;;  %v547_v58 = vld [vmem:[%s9674_s1 + $0x230] sm:$0xff] }
  0x2f   : > { %v581_v55 = vld [vmem:[%s9674_s1 + $0x340] sm:$0xff]  ;;  %v584_v56 = vld [vmem:[%s9674_s1 + $0x358] sm:$0xff]  ;;  %v6298_v60 = vpack.c.bf16 %v540_v53, %v537_v49  ;;  %v543_v61 = vld [vmem:[%s9674_s1 + $0x210] sm:$0xff] }
  0x30   : > { %6283 = vmatpush1.bf16.msra.mxu0 %v6282_v16  ;;  %6375 = vmatpush3.bf16.msra.mxu1 %v6374_v20  ;;  %v544_v57 = vld [vmem:[%s9674_s1 + $0x218] sm:$0xff]  ;;  %v7319_v59 = vld [vmem:[%s7232_s19 + $0x20] sm:$0xff]  ;;  %v6388_v62 = vpack.c.bf16 %v584_v56, %v581_v55  ;;  %v546_v1 = vld [vmem:[%s9674_s1 + $0x228] sm:$0xff] }
  0x31   : > { %6285 = vmatprep.subr.bf16.mxu0 %v6284_v21  ;;  %6377 = vmatprep.subr.bf16.mxu1 %v6376_v22  ;;  %v7325_v63 = vld [vmem:[%s7232_s19 + $0x18] sm:$0xff]  ;;  %v6300_v0 = vpack.c.bf16 %v547_v58, %v544_v57  ;;  %v587_v2 = vld [vmem:[%s9674_s1 + $0x370] sm:$0xff]  ;;  %v590_v3 = vld [vmem:[%s9674_s1 + $0x388] sm:$0xff]  ;;  %v6302_v7 = vpack.c.bf16 %v546_v1, %v543_v61 }
  0x32   : > { %v550_v4 = vld [vmem:[%s9674_s1 + $0x248] sm:$0xff]  ;;  %v553_v5 = vld [vmem:[%s9674_s1 + $0x260] sm:$0xff]  ;;  %v7346_v6 = vld [vmem:[%s7232_s19 + $0x38] sm:$0xff]  ;;  %v6391_v9 = vpack.c.bf16 %v590_v3, %v587_v2 }
  0x33   : > { %v549_v8 = vld [vmem:[%s9674_s1 + $0x240] sm:$0xff]  ;;  %v7352_v10 = vld [vmem:[%s7232_s19 + $0x30] sm:$0xff]  ;;  %v6304_v11 = vpack.c.bf16 %v553_v5, %v550_v4  ;;  %v552_v12 = vld [vmem:[%s9674_s1 + $0x258] sm:$0xff] }
  0x34   : > { %6287 = vmatpush1.bf16.msra.mxu0 %v6286_v29  ;;  %6379 = vmatpush3.bf16.msra.mxu1 %v6378_v31  ;;  %v593_v13 = vld [vmem:[%s9674_s1 + $0x3a0] sm:$0xff]  ;;  %v596_v14 = vld [vmem:[%s9674_s1 + $0x3b8] sm:$0xff]  ;;  %v559_v16 = vld [vmem:[%s9674_s1 + $0x290] sm:$0xff]  ;;  %v6306_v17 = vpack.c.bf16 %v552_v12, %v549_v8 }
  0x35   : > { %6289 = vmatprep.subr.bf16.mxu0 %v6288_v32  ;;  %6381 = vmatprep.subr.bf16.mxu1 %v6380_v34  ;;  %v556_v15 = vld [vmem:[%s9674_s1 + $0x278] sm:$0xff]  ;;  %v555_v18 = vld [vmem:[%s9674_s1 + $0x270] sm:$0xff]  ;;  %v6394_v19 = vpack.c.bf16 %v596_v14, %v593_v13  ;;  %v558_v21 = vld [vmem:[%s9674_s1 + $0x288] sm:$0xff] }
  0x36   : > { %v6308_v20 = vpack.c.bf16 %v559_v16, %v556_v15  ;;  %v599_v22 = vld [vmem:[%s9674_s1 + $0x3d0] sm:$0xff]  ;;  %v602_v23 = vld [vmem:[%s9674_s1 + $0x3e8] sm:$0xff]  ;;  %v565_v25 = vld [vmem:[%s9674_s1 + $0x2c0] sm:$0xff]  ;;  %v6310_v27 = vpack.c.bf16 %v558_v21, %v555_v18 }
  0x37   : > { %v562_v24 = vld [vmem:[%s9674_s1 + $0x2a8] sm:$0xff]  ;;  %v561_v28 = vld [vmem:[%s9674_s1 + $0x2a0] sm:$0xff]  ;;  %v6397_v29 = vpack.c.bf16 %v602_v23, %v599_v22  ;;  %v564_v31 = vld [vmem:[%s9674_s1 + $0x2b8] sm:$0xff] }
  0x38   : > { %6291 = vmatpush1.bf16.msra.mxu0 %v6290_v39  ;;  %6383 = vmatpush3.bf16.msra.mxu1 %v6382_v41  ;;  %v6312_v30 = vpack.c.bf16 %v565_v25, %v562_v24  ;;  %v605_v32 = vld [vmem:[%s9674_s1 + $0x400] sm:$0xff]  ;;  %v608_v33 = vld [vmem:[%s9674_s1 + $0x418] sm:$0xff]  ;;  %v571_v35 = vld [vmem:[%s9674_s1 + $0x2f0] sm:$0xff]  ;;  %v6314_v36 = vpack.c.bf16 %v564_v31, %v561_v28 }
  0x39   : > { %6293 = vmatprep.subr.bf16.mxu0 %v6292_v42  ;;  %6384 = vmatprep.subr.bf16.mxu1 %v6918_v54  ;;  %v568_v34 = vld [vmem:[%s9674_s1 + $0x2d8] sm:$0xff]  ;;  %v567_v37 = vld [vmem:[%s9674_s1 + $0x2d0] sm:$0xff]  ;;  %v6400_v38 = vpack.c.bf16 %v608_v33, %v605_v32  ;;  %v570_v40 = vld [vmem:[%s9674_s1 + $0x2e8] sm:$0xff] }
  0x3a   : > { %v6316_v39 = vpack.c.bf16 %v571_v35, %v568_v34  ;;  %v611_v41 = vld [vmem:[%s9674_s1 + $0x430] sm:$0xff]  ;;  %v614_v42 = vld [vmem:[%s9674_s1 + $0x448] sm:$0xff]  ;;  %v577_v44 = vld [vmem:[%s9674_s1 + $0x320] sm:$0xff]  ;;  %v6318_v45 = vpack.c.bf16 %v570_v40, %v567_v37 }
  0x3b   : > { %869 = vmatmul.mubr.f32.vlgmr.msra.gmra.mrb[0].mxu1 %v7299_v50  ;;  %v574_v43 = vld [vmem:[%s9674_s1 + $0x308] sm:$0xff]  ;;  %v573_v46 = vld [vmem:[%s9674_s1 + $0x300] sm:$0xff]  ;;  %v6403_v47 = vpack.c.bf16 %v614_v42, %v611_v41  ;;  %v576_v49 = vld [vmem:[%s9674_s1 + $0x318] sm:$0xff] }
  0x3c   : > { %6295 = vmatpush1.bf16.msra.mxu0 %v6294_v48  ;;  %6386 = vmatpush3.bf16.msra.mxu1 %v6385_v51  ;;  %v6320_v48 = vpack.c.bf16 %v577_v44, %v574_v43  ;;  %v617_v51 = vld [vmem:[%s9674_s1 + $0x460] sm:$0xff]  ;;  %v580_v53 = vld [vmem:[%s9674_s1 + $0x338] sm:$0xff]  ;;  %v583_v55 = vld [vmem:[%s9674_s1 + $0x350] sm:$0xff]  ;;  %v6322_v56 = vpack.c.bf16 %v576_v49, %v573_v46 }
  0x3d   : > { %6297 = vmatprep.subr.bf16.mxu0 %v6296_v52  ;;  %6387 = vmatprep.subr.bf16.mxu1 %v6918_v54  ;;  %v620_v52 = vld [vmem:[%s9674_s1 + $0x478] sm:$0xff]  ;;  %v6324_v58 = vpack.c.bf16 %v583_v55, %v580_v53  ;;  %v582_v61 = vld [vmem:[%s9674_s1 + $0x348] sm:$0xff]  ;;  %v7465_v2 = vld [vmem:[%s7232_s19 + $0x10] sm:$0xff] }
  0x3e   : > { %873 = vmatprep.mubr.f32.mxu1 %v7319_v59  ;;  %v6406_v57 = vpack.c.bf16 %v620_v52, %v617_v51  ;;  %v585_v4 = vld [vmem:[%s9674_s1 + $0x360] sm:$0xff]  ;;  %v588_v5 = vld [vmem:[%s9674_s1 + $0x378] sm:$0xff]  ;;  %v594_v12 = vld [vmem:[%s9674_s1 + $0x3a8] sm:$0xff] }
  0x3f   : > { %874 = vmatmul.mubr.f32.gmra.mrb[2].mxu1 %v7325_v63  ;;  %v6330_v8 = vpack.c.bf16 %v588_v5, %v585_v4  ;;  %v476_v14 = vld [vmem:[%s7232_s19 + $0x40] sm:$0xff]  ;;  %v607_v18 = vld [vmem:[%s9674_s1 + $0x410] sm:$0xff]  ;;  %v606_v22 = vld [vmem:[%s9674_s1 + $0x408] sm:$0xff] }
  0x40   : > { %6299 = vmatpush1.bf16.msra.mxu0 %v6298_v60  ;;  %6389 = vmatpush3.bf16.msra.mxu1 %v6388_v62  ;;  %v579_v60 = vld [vmem:[%s9674_s1 + $0x330] sm:$0xff]  ;;  %v586_v62 = vld [vmem:[%s9674_s1 + $0x368] sm:$0xff]  ;;  %v597_v16 = vld [vmem:[%s9674_s1 + $0x3c0] sm:$0xff] }
  0x41   : > { %6301 = vmatprep.subr.bf16.mxu0 %v6300_v0  ;;  %6390 = vmatprep.subr.bf16.mxu1 %v6918_v54  ;;  %v589_v0 = vld [vmem:[%s9674_s1 + $0x380] sm:$0xff]  ;;  %v6326_v1 = vpack.c.bf16 %v582_v61, %v579_v60  ;;  %v603_v21 = vld [vmem:[%s9674_s1 + $0x3f0] sm:$0xff]  ;;  %v610_v23 = vld [vmem:[%s9674_s1 + $0x428] sm:$0xff] }
  0x42   : > { %878 = vmatprep.mubr.f32.mxu1 %v7346_v6  ;;  %v6328_v3 = vpack.c.bf16 %v589_v0, %v586_v62  ;;  %v613_v24 = vld [vmem:[%s9674_s1 + $0x440] sm:$0xff]  ;;  %v6342_v25 = vpack.c.bf16 %v606_v22, %v603_v21  ;;  %v619_v31 = vld [vmem:[%s9674_s1 + $0x470] sm:$0xff]  ;;  %v618_v35 = vld [vmem:[%s9674_s1 + $0x468] sm:$0xff] }
  0x43   : > { %879 = vmatmul.mubr.f32.gmra.mrb[4].mxu1 %v7352_v10  ;;  %v609_v28 = vld [vmem:[%s9674_s1 + $0x420] sm:$0xff]  ;;  %v615_v34 = vld [vmem:[%s9674_s1 + $0x450] sm:$0xff]  ;;  %v1093_v41 = vld [vmem:[%s9678_s5 + $0x118] sm:$0xff] }
  0x44   : > { %6303 = vmatpush1.bf16.msra.mxu0 %v6302_v7  ;;  %6392 = vmatpush3.bf16.msra.mxu1 %v6391_v9  ;;  %v595_v7 = vld [vmem:[%s9674_s1 + $0x3b0] sm:$0xff]  ;;  %v473_v9 = vld [vmem:[%s7232_s19 + $0x28] sm:$0xff]  ;;  %v1090_v37 = vld [vmem:[%s9678_s5 + $0x100] sm:$0xff] }
  0x45   : > { %6305 = vmatprep.subr.bf16.mxu0 %v6304_v11  ;;  %6393 = vmatprep.subr.bf16.mxu1 %v6918_v54  ;;  %v591_v11 = vld [vmem:[%s9674_s1 + $0x390] sm:$0xff]  ;;  %v1094_v43 = vld [vmem:[%s9678_s5 + $0x120] sm:$0xff]  ;;  %v1095_v44 = vld [vmem:[%s9678_s5 + $0x128] sm:$0xff] }
  0x46   : > { %5855 = vmatprep.mubr.msk.f32.mxu1 %vm6919_vm0, %v6920_v26  ;;  %v6334_v13 = vpack.c.bf16 %v594_v12, %v591_v11  ;;  %v1092_v40 = vld [vmem:[%s9678_s5 + $0x110] sm:$0xff]  ;;  %v1098_v49 = vld [vmem:[%s9678_s5 + $0x140] sm:$0xff]  ;;  %v1099_v51 = vld [vmem:[%s9678_s5 + $0x148] sm:$0xff] }
  0x47   : > { %v6444_v42 = vpack.c.bf16 %v1093_v41, %v1092_v40  ;;  %v1096_v46 = vld [vmem:[%s9678_s5 + $0x130] sm:$0xff]  ;;  %v6453_v52 = vpack.c.bf16 %v1099_v51, %v1098_v49  ;;  %v1101_v55 = vld [vmem:[%s9678_s5 + $0x158] sm:$0xff]  ;;  %v1058_v61 = vld [vmem:[%s9678_s5] sm:$0xff] }
  0x48   : > { %6307 = vmatpush1.bf16.msra.mxu0 %v6306_v17  ;;  %6395 = vmatpush3.bf16.msra.mxu1 %v6394_v19  ;;  %v600_v17 = vld [vmem:[%s9674_s1 + $0x3d8] sm:$0xff]  ;;  %v1100_v53 = vld [vmem:[%s9678_s5 + $0x150] sm:$0xff]  ;;  %v1059_v62 = vld [vmem:[%s9678_s5 + $0x8] sm:$0xff] }
  0x49   : > { %6309 = vmatprep.subr.bf16.mxu0 %v6308_v20  ;;  %6396 = vmatprep.subr.bf16.mxu1 %v6918_v54  ;;  %v6338_v19 = vpack.c.bf16 %v600_v17, %v597_v16  ;;  %v6410_v0 = vpack.c.bf16 %v1059_v62, %v1058_v61  ;;  %v1076_v4 = vld [vmem:[%s9678_s5 + $0x90] sm:$0xff]  ;;  %v1077_v5 = vld [vmem:[%s9678_s5 + $0x98] sm:$0xff]  ;;  %v1082_v21 = vld [vmem:[%s9678_s5 + $0xc0] sm:$0xff] }
  0x4a   : > { %v1080_v16 = vld [vmem:[%s9678_s5 + $0xb0] sm:$0xff]  ;;  %v1081_v17 = vld [vmem:[%s9678_s5 + $0xb8] sm:$0xff]  ;;  %v1083_v22 = vld [vmem:[%s9678_s5 + $0xc8] sm:$0xff] }
  0x4b   : > { %v1088_v41 = vld [vmem:[%s9678_s5 + $0xf0] sm:$0xff]  ;;  %v4903_v49 = vld [vmem:[%s9679_s6 + $0x1] ss:$0 sm:$0xff]  ;;  %v4805_v51 = vld [vmem:[%s9680_s7] ss:$0 sm:$0xff] }
  0x4c   : > { %6311 = vmatpush1.bf16.msra.mxu0 %v6310_v27  ;;  %6398 = vmatpush3.bf16.msra.mxu1 %v6397_v29  ;;  %v6344_v27 = vpack.c.bf16 %v613_v24, %v610_v23  ;;  %v612_v29 = vld [vmem:[%s9674_s1 + $0x438] sm:$0xff]  ;;  %v6424_v24 = vpack.c.bf16 %v1083_v22, %v1082_v21 }
  0x4d   : > { %6313 = vmatprep.subr.bf16.mxu0 %v6312_v30  ;;  %6399 = vmatprep.subr.bf16.mxu1 %v6918_v54  ;;  %v616_v30 = vld [vmem:[%s9674_s1 + $0x458] sm:$0xff]  ;;  %v6346_v32 = vpack.c.bf16 %v612_v29, %v609_v28  ;;  %v1084_v28 = vld [vmem:[%s9678_s5 + $0xd0] sm:$0xff] }
  0x4e   : > { %v6348_v33 = vpack.c.bf16 %v619_v31, %v616_v30  ;;  %v1085_v29 = vld [vmem:[%s9678_s5 + $0xd8] sm:$0xff] }
  0x4f   : > { %v6428_v31 = vpack.c.bf16 %v1085_v29, %v1084_v28 }
  0x50   : > { %6315 = vmatpush1.bf16.msra.mxu0 %v6314_v36  ;;  %6401 = vmatpush3.bf16.msra.mxu1 %v6400_v38  ;;  %v6350_v36 = vpack.c.bf16 %v618_v35, %v615_v34  ;;  %v1091_v38 = vld [vmem:[%s9678_s5 + $0x108] sm:$0xff]  ;;  %v1086_v35 = vld [vmem:[%s9678_s5 + $0xe0] sm:$0xff] }
  0x51   : > { %6317 = vmatprep.subr.bf16.mxu0 %v6316_v39  ;;  %6402 = vmatprep.subr.bf16.mxu1 %v6918_v54  ;;  %v6441_v39 = vpack.c.bf16 %v1091_v38, %v1090_v37  ;;  %v1070_v38 = vld [vmem:[%s9678_s5 + $0x60] sm:$0xff] }
  0x54   : > { %6319 = vmatpush1.bf16.msra.mxu0 %v6318_v45  ;;  %6404 = vmatpush3.bf16.msra.mxu1 %v6403_v47  ;;  %v6447_v45 = vpack.c.bf16 %v1095_v44, %v1094_v43  ;;  %v1097_v47 = vld [vmem:[%s9678_s5 + $0x138] sm:$0xff]  ;;  %v1072_v44 = vld [vmem:[%s9678_s5 + $0x70] sm:$0xff] }
  0x55   : > { %6321 = vmatprep.subr.bf16.mxu0 %v6320_v48  ;;  %6405 = vmatprep.subr.bf16.mxu1 %v6918_v54  ;;  %v6450_v48 = vpack.c.bf16 %v1097_v47, %v1096_v46  ;;  %v4798_v47 = vld [vmem:[%s9679_s6] ss:$0 sm:$0xff] }
  0x57   : > { %703 = vmatmul.mubr.f32.vlgmr.msra.gmra.mrb[0].mxu0 %v7299_v50  ;;  %v592_v50 = vld [vmem:[%s9674_s1 + $0x398] sm:$0xff] }
  0x58   : > { %6323 = vmatpush1.bf16.msra.mxu0 %v6322_v56  ;;  %6407 = vmatpush3.bf16.msra.mxu1 %v6406_v57  ;;  %v6456_v56 = vpack.c.bf16 %v1101_v55, %v1100_v53  ;;  %v1074_v57 = vld [vmem:[%s9678_s5 + $0x80] sm:$0xff] }
  0x59   : > { %6325 = vmatprep.subr.bf16.mxu0 %v6324_v58  ;;  %708 = vmatprep.mubr.f32.mxu0 %v7319_v59  ;;  %v6332_v59 = vpack.c.bf16 %v595_v7, %v592_v50  ;;  %v1075_v58 = vld [vmem:[%s9678_s5 + $0x88] sm:$0xff]  ;;  %v1060_v50 = vld [vmem:[%s9678_s5 + $0x10] sm:$0xff]  ;;  %v6412_v7 = vpack.c.bf16 %v1077_v5, %v1076_v4  ;;  %v621_v4 = vld [vmem:[%s9675_s2] sm:$0x7] }
  0x5a   : > { %v6408_v60 = vpack.c.bf16 %v1075_v58, %v1074_v57 }
  0x5b   : > { %5856 = vmatmul.mubr.f32.vlgmr.msra.gmra.mrb[6].mxu1 %v7465_v2  ;;  %709 = vmatmul.mubr.f32.gmra.mrb[2].mxu0 %v7325_v63  ;;  %v598_v63 = vld [vmem:[%s9674_s1 + $0x3c8] sm:$0xff] }
  0x5c   : > { %6327 = vmatpush1.bf16.msra.mxu0 %v6326_v1  ;;  %714 = vmatprep.mubr.f32.mxu0 %v7346_v6  ;;  %v601_v6 = vld [vmem:[%s9674_s1 + $0x3e0] sm:$0xff] }
  0x5d   : > { %6329 = vmatprep.subr.bf16.mxu0 %v6328_v3  ;;  %5858 = vmatprep.mubr.msk.f32.mxu1 %vm6919_vm0, %v6920_v26  ;;  %v6336_v15 = vpack.c.bf16 %v601_v6, %v598_v63  ;;  %v1102_v1 = vld [vmem:[%s9678_s5 + $0x160] sm:$0xff]  ;;  %v1079_v6 = vld [vmem:[%s9678_s5 + $0xa8] sm:$0xff] }
  0x5e   : > { %6409 = vmatprep.subr.bf16.mxu1 %v6408_v60  ;;  %v1078_v63 = vld [vmem:[%s9678_s5 + $0xa0] sm:$0xff] }
  0x5f   : > { %715 = vmatmul.mubr.f32.gmra.mrb[4].mxu0 %v7352_v10  ;;  %5859 = vmatmul.mubr.f32.gmra.mrb[8].mxu1 %v473_v9  ;;  %v604_v10 = vld [vmem:[%s9674_s1 + $0x3f8] sm:$0xff] }
  0x60   : > { %6331 = vmatpush1.bf16.msra.mxu0 %v6330_v8  ;;  %785 = vmatprep.mubr.f32.mxu0 %v6920_v26  ;;  %v6340_v20 = vpack.c.bf16 %v607_v18, %v604_v10  ;;  %v1061_v8 = vld [vmem:[%s9678_s5 + $0x18] sm:$0xff]  ;;  %v6420_v18 = vpack.c.bf16 %v1081_v17, %v1080_v16 }
  0x61   : > { %6333 = vmatprep.subr.bf16.mxu0 %v6332_v59  ;;  %5861 = vmatprep.mubr.msk.f32.mxu1 %vm6919_vm0, %v6920_v26  ;;  %v1105_v59 = vld [vmem:[%s9678_s5 + $0x178] sm:$0xff]  ;;  %v6414_v11 = vpack.c.bf16 %v1061_v8, %v1060_v50  ;;  %v964_v50 = vld [vmem:[%s9676_s3] sm:$0x7] }
  0x62   : > { %6411 = vmatpush3.bf16.msra.mxu1 %v6410_v0  ;;  %v990_v8 = vld [vmem:[%s9677_s4] sm:$0x7] }
  0x63   : > { %5862 = vmatmul.mubr.f32.gmra.mrb[10].mxu1 %v476_v14  ;;  %6413 = vmatprep.subr.bf16.mxu1 %v6412_v7 }
  0x64   : > { %6335 = vmatpush1.bf16.msra.mxu0 %v6334_v13  ;;  %v1062_v13 = vld [vmem:[%s9678_s5 + $0x20] sm:$0xff] }
  0x65   : > { %6337 = vmatprep.subr.bf16.mxu0 %v6336_v15  ;;  %v1063_v15 = vld [vmem:[%s9678_s5 + $0x28] sm:$0xff] }
  0x66   : > { %6415 = vmatpush3.bf16.msra.mxu1 %v6414_v11  ;;  %v6418_v10 = vpack.c.bf16 %v1063_v15, %v1062_v13 }
  0x68   : > { %6339 = vmatpush1.bf16.msra.mxu0 %v6338_v19  ;;  %v1064_v19 = vld [vmem:[%s9678_s5 + $0x30] sm:$0xff] }
  0x69   : > { %6341 = vmatprep.subr.bf16.mxu0 %v6340_v20  ;;  %v1065_v20 = vld [vmem:[%s9678_s5 + $0x38] sm:$0xff] }
  0x6a   : > { %v6422_v23 = vpack.c.bf16 %v1065_v20, %v1064_v19 }
  0x6c   : > { %6343 = vmatpush1.bf16.msra.mxu0 %v6342_v25  ;;  %v1066_v25 = vld [vmem:[%s9678_s5 + $0x40] sm:$0xff] }
  0x6d   : > { %6345 = vmatprep.subr.bf16.mxu0 %v6344_v27  ;;  %v1067_v27 = vld [vmem:[%s9678_s5 + $0x48] sm:$0xff] }
  0x6e   : > { %v6426_v30 = vpack.c.bf16 %v1067_v27, %v1066_v25 }
  0x70   : > { %6347 = vmatpush1.bf16.msra.mxu0 %v6346_v32  ;;  %v1068_v32 = vld [vmem:[%s9678_s5 + $0x50] sm:$0xff] }
  0x71   : > { %6349 = vmatprep.subr.bf16.mxu0 %v6348_v33  ;;  %v1069_v33 = vld [vmem:[%s9678_s5 + $0x58] sm:$0xff] }
  0x72   : > { %v6430_v34 = vpack.c.bf16 %v1069_v33, %v1068_v32 }
  0x74   : > { %6351 = vmatpush1.bf16.msra.mxu0 %v6350_v36  ;;  %v1087_v36 = vld [vmem:[%s9678_s5 + $0xe8] sm:$0xff] }
  0x75   : > { %6440 = vmatprep.subr.bf16.mxu0 %v6918_v54  ;;  %v6432_v37 = vpack.c.bf16 %v1087_v36, %v1086_v35 }
  0x77   : > { %786 = vmatmul.mubr.f32.vlgmr.msra.gmra.mrb[0].mxu0 %v7465_v2  ;;  %v1103_v2 = vld [vmem:[%s9678_s5 + $0x168] sm:$0xff] }
  0x78   : > { %791 = vmatprep.mubr.f32.mxu0 %v6920_v26  ;;  %6442 = vmatpush3.bf16.msra.mxu0 %v6441_v39  ;;  %v6459_v3 = vpack.c.bf16 %v1103_v2, %v1102_v1  ;;  %v1071_v39 = vld [vmem:[%s9678_s5 + $0x68] sm:$0xff]  ;;  %v623_v1 = vlaneseq }
  0x79   : > { %6443 = vmatprep.subr.bf16.mxu0 %v6918_v54  ;;  %v6434_v40 = vpack.c.bf16 %v1071_v39, %v1070_v38 }
  0x7a   : > { %v624_v2 = vshrl.u32 %v623_v1, 7 }
  0x7b   : > { %792 = vmatmul.mubr.f32.gmra.mrb[2].mxu0 %v473_v9  ;;  %v1104_v9 = vld [vmem:[%s9678_s5 + $0x170] sm:$0xff] }
  0x7c   : > { %797 = vmatprep.mubr.f32.mxu0 %v6920_v26  ;;  %6445 = vmatpush3.bf16.msra.mxu0 %v6444_v42  ;;  %v6462_v12 = vpack.c.bf16 %v1105_v59, %v1104_v9  ;;  %v1089_v42 = vld [vmem:[%s9678_s5 + $0xf8] sm:$0xff]  ;;  %v625_v29 = vsub.s32 0, %v624_v2 }
  0x7d   : > { %6446 = vmatprep.subr.bf16.mxu0 %v6918_v54  ;;  %v6436_v43 = vpack.c.bf16 %v1089_v42, %v1088_v41 }
  0x7e   : > { %v969_v33 = vrot.slane %v964_v50, %v625_v29 }
  0x7f   : > { %798 = vmatmul.mubr.f32.gmra.mrb[4].mxu0 %v476_v14  ;;  %v6416_v14 = vpack.c.bf16 %v1079_v6, %v1078_v63 }
  0x80   : > { %6448 = vmatpush3.bf16.msra.mxu0 %v6447_v45  ;;  %5896 = vmatprep.mubr.msk.f32.mxu0 %vm6919_vm0, %v6920_v26  ;;  %v1073_v45 = vld [vmem:[%s9678_s5 + $0x78] sm:$0xff] }
  0x81   : > { %6449 = vmatprep.subr.bf16.mxu0 %v6918_v54  ;;  %6417 = vmatprep.subr.bf16.mxu1 %v6416_v14  ;;  %v6438_v46 = vpack.c.bf16 %v1073_v45, %v1072_v44 }
  0x82   : > { %6419 = vmatpush3.bf16.msra.mxu1 %v6418_v10 }
  0x83   : > { %6421 = vmatprep.subr.bf16.mxu1 %v6420_v18 }
  0x84   : > { %6451 = vmatpush3.bf16.msra.mxu0 %v6450_v48  ;;  %v6921_v48 = vmov 0  }
  0x85   : > { %6452 = vmatprep.subr.bf16.mxu0 %v6918_v54  ;;  %6796 = vset.pattern.permute.xlu0 %v6921_v48 }
  0x86   : > { %6423 = vmatpush3.bf16.msra.mxu1 %v6422_v23  ;;  %6797 = vset.pattern.permute.xlu1 %v6921_v48 }
  0x87   : > { %6425 = vmatprep.subr.bf16.mxu1 %v6424_v24  ;;  %1113 = vperm.xlu0 %6796, %v4798_v47  }
  0x88   : > { %6454 = vmatpush3.bf16.msra.mxu0 %v6453_v52  ;;  %v5089_v52 = vld [vmem:[%s9680_s7 + $0x2] ss:$0 sm:$0xff] }
  0x89   : > { %6455 = vmatprep.subr.bf16.mxu0 %v6918_v54 }
  0x8a   : > { %6427 = vmatpush3.bf16.msra.mxu1 %v6426_v30  ;;  %v629_v30 = vsub.s32 1, %v624_v2 }
  0x8b   : > { %6429 = vmatprep.subr.bf16.mxu1 %v6428_v31  ;;  %2054 = vperm.xlu0 %6796, %v4903_v49   ;;  %v626_v31 = vrot.slane %v621_v4, %v625_v29 }
  0x8c   : > { %6457 = vmatpush3.bf16.msra.mxu0 %v6456_v56  ;;  %v630_v32 = vrot.slane %v621_v4, %v629_v30  ;;  %v973_v35 = vrot.slane %v964_v50, %v629_v30 }
  0x8d   : > { %6458 = vmatprep.subr.bf16.mxu0 %v6918_v54 }
  0x8e   : > { %6431 = vmatpush3.bf16.msra.mxu1 %v6430_v34 }
  0x8f   : > { %6433 = vmatprep.subr.bf16.mxu1 %v6432_v37  ;;  %1456 = vperm.xlu0 %6796, %v4805_v51   ;;  %v995_v37 = vrot.slane %v990_v8, %v625_v29 }
  0x90   : > { %6460 = vmatpush3.bf16.msra.mxu0 %v6459_v3  ;;  %v633_v3 = vsub.s32 2, %v624_v2 }
  0x91   : > { %6461 = vmatprep.subr.bf16.mxu0 %v6918_v54 }
  0x92   : > { %6435 = vmatpush3.bf16.msra.mxu1 %v6434_v40  ;;  %v634_v5 = vrot.slane %v621_v4, %v633_v3  ;;  %v977_v9 = vrot.slane %v964_v50, %v633_v3  ;;  %v999_v40 = vrot.slane %v990_v8, %v629_v30 }
  0x93   : > { %6437 = vmatprep.subr.bf16.mxu1 %v6436_v43  ;;  %3267 = vperm.xlu0 %6796, %v5089_v52  }
  0x94   : > { %6463 = vmatpush3.bf16.msra.mxu0 %v6462_v12  ;;  %v1003_v12 = vrot.slane %v990_v8, %v633_v3  ;;  %v1053_v8 = vld [vmem:[%s9682_s9 + $0x20] sm:$0xff] }
  0x96   : > { %6439 = vmatpush3.bf16.msra.mxu1 %v6438_v46 }
 0x10e   : > { %v5423_v53 = vpop.f32.mrb[0].mxu1 }
 0x10f   : > { %v5424_v55 = vpop.f32.mrb[1].mxu1 }
 0x110   : > { %v5425_v56 = vadd.f32 %v5424_v55, %v5423_v53 }
 0x112   : > { %v5426_v57 = vpop.f32.mrb[2].mxu1  ;;  %v871_v7 = vadd.f32 %v5425_v56, %v634_v5 }
 0x113   : > { %v5427_v58 = vpop.f32.mrb[3].mxu1 }
 0x114   : > { %v5428_v60 = vadd.f32 %v5427_v58, %v5426_v57 }
 0x116   : > { %v5429_v61 = vpop.f32.mrb[4].mxu1  ;;  %v876_v6 = vadd.f32 %v5428_v60, %v634_v5 }
 0x117   : > { %v5430_v62 = vpop.f32.mrb[5].mxu1 }
 0x118   : > { %v5431_v0 = vadd.f32 %v5430_v62, %v5429_v61 }
 0x11a   : > { %v881_v10 = vadd.f32 %v5431_v0, %v634_v5 }
 0x12e   : > { %v950_v59 = vpop.f32.mrb[6].mxu1 }
 0x12f   : > { %v951_v11 = vadd.f32 %v950_v59, %v871_v7  ;;  %v5857_v63 = vpop.f32.mrb[7].mxu1  ;;  %v1050_v7 = vld [vmem:[%s9682_s9 + $0x8] sm:$0xff]  ;;  %v1049_v59 = vld [vmem:[%s9682_s9] sm:$0xff] }
 0x130   : > { %v7776_v63 = vld [vmem:[%s9682_s9 + $0x38] sm:$0xff] }
 0x131   : > { %v983_v13 = vmul.f32 %v977_v9, %v951_v11  ;;  %v1052_v11 = vld [vmem:[%s9682_s9 + $0x18] sm:$0xff] }
 0x132   : > { %v955_v14 = vpop.f32.mrb[8].mxu1 }
 0x133   : > { %v1009_v15 = vadd.f32 %v1003_v12, %v983_v13  ;;  %v956_v16 = vadd.f32 %v955_v14, %v876_v6  ;;  %v5860_v17 = vpop.f32.mrb[9].mxu1  ;;  %v7782_v6 = vld [vmem:[%s9682_s9 + $0x30] sm:$0xff] }
 0x135   : > { %v7723_v18 = vmax.f32 %v1009_v15, 0.0  ;;  %v986_v19 = vmul.f32 %v977_v9, %v956_v16 }
 0x136   : > { %v960_v20 = vpop.f32.mrb[10].mxu1 }
 0x137   : > { %5897 = vmatmul.mubr.f32.vlgmr.msra.gmra.mrb[6].mxu0 %v7723_v18  ;;  %v1012_v21 = vadd.f32 %v1003_v12, %v986_v19  ;;  %v961_v22 = vadd.f32 %v960_v20, %v881_v10  ;;  %v5863_v23 = vpop.f32.mrb[11].mxu1 }
 0x138   : > { %5899 = vmatprep.mubr.msk.f32.mxu0 %vm6919_vm0, %v6920_v26  ;;  %v1054_v23 = vld [vmem:[%s9682_s9 + $0x28] sm:$0xff] }
 0x139   : > { %v7728_v24 = vmax.f32 %v1012_v21, 0.0  ;;  %v989_v25 = vmul.f32 %v977_v9, %v961_v22  ;;  %v7761_v9 = vpack.c.bf16 %v1053_v8, %v1050_v7  ;;  %v1051_v22 = vld [vmem:[%s9682_s9 + $0x10] sm:$0xff]  ;;  %v4854_v7 = vld [vmem:[%s9678_s5 + $0x180] sm:$0xff]  ;;  %v4855_v8 = vld [vmem:[%s9678_s5 + $0x188] sm:$0xff] }
 0x13b   : > { %v1015_v27 = vadd.f32 %v1003_v12, %v989_v25  ;;  %5900 = vmatmul.mubr.f32.gmra.mrb[8].mxu0 %v7728_v24  ;;  %v7769_v12 = vpack.c.bf16 %v1052_v11, %v1049_v59  ;;  %6465 = vmatprep.subr.bf16.mxu1 %v7761_v9  ;;  %v1114_v25 = vpop.permute.xlu0 %1113 }
 0x13c   : > { %5902 = vmatprep.mubr.msk.f32.mxu0 %vm6919_vm0, %v6920_v26 }
 0x13d   : > { %v7733_v28 = vmax.f32 %v1015_v27, 0.0 }
 0x13f   : > { %5903 = vmatmul.mubr.f32.gmra.mrb[10].mxu0 %v7733_v28 }
 0x14a   : > { %v787_v34 = vpop.f32.mrb[0].mxu0 }
 0x14b   : > { %v6692_v36 = vadd.f32 %v787_v34, %v626_v31  ;;  %v789_v38 = vpop.f32.mrb[1].mxu0 }
 0x14c   : > { %v6693_v39 = vadd.f32 %v789_v38, %v630_v32 }
 0x14d   : > { %v981_v41 = vmul.f32 %v6692_v36, %v969_v33 }
 0x14e   : > { %v982_v42 = vmul.f32 %v6693_v39, %v973_v35  ;;  %v793_v43 = vpop.f32.mrb[2].mxu0  ;;  %v7801_v39 = vld [vmem:[%s9682_s9 + $0x40] sm:$0xff] }
 0x14f   : > { %v1007_v44 = vadd.f32 %v995_v37, %v981_v41  ;;  %v6694_v45 = vadd.f32 %v793_v43, %v626_v31  ;;  %v795_v46 = vpop.f32.mrb[3].mxu0 }
 0x150   : > { %v1008_v47 = vadd.f32 %v999_v40, %v982_v42  ;;  %v6695_v48 = vadd.f32 %v795_v46, %v630_v32  ;;  %v7824_v42 = vld [vmem:[%s7821_s21] sm:$0xff] }
 0x151   : > { %v984_v49 = vmul.f32 %v6694_v45, %v969_v33  ;;  %v7738_v55 = vmax.f32 %v1007_v44, 0.0  ;;  %5926 = vmatprep.mubr.msk.f32.mxu0 %vm1276_vm1, %v7824_v42 }
 0x152   : > { %v7736_v51 = vmax.f32 %v1008_v47, 0.0  ;;  %v985_v52 = vmul.f32 %v6695_v48, %v973_v35  ;;  %v799_v53 = vpop.f32.mrb[4].mxu0 }
 0x153   : > { %v1010_v56 = vadd.f32 %v995_v37, %v984_v49  ;;  %v6696_v57 = vadd.f32 %v799_v53, %v626_v31  ;;  %v801_v58 = vpop.f32.mrb[5].mxu0  ;;  %v7792_v31 = vpack.c.bf16 %v1054_v23, %v1051_v22  ;;  %v4858_v23 = vld [vmem:[%s9678_s5 + $0x1a0] sm:$0xff] }
 0x154   : > { %v1011_v60 = vadd.f32 %v999_v40, %v985_v52  ;;  %v6697_v61 = vadd.f32 %v801_v58, %v630_v32  ;;  %1180 = vmatprep.mubr.f32.mxu1 %v7736_v51 }
 0x155   : > { %v987_v62 = vmul.f32 %v6696_v57, %v969_v33  ;;  %1181 = vmatmul.mubr.f32.vlgmr.msra.gmra.mrb[12].mxu1 %v7738_v55  ;;  %v7744_v2 = vmax.f32 %v1010_v56, 0.0  ;;  %v1026_v57 = vld [vmem:[%s7821_s21 + $0x8] sm:$0xff] }
 0x156   : > { %v7742_v0 = vmax.f32 %v1011_v60, 0.0  ;;  %v988_v1 = vmul.f32 %v6697_v61, %v973_v35  ;;  %6467 = vmatpush1.bf16.msra.mxu1 %v7769_v12 }
 0x157   : > { %v1013_v3 = vadd.f32 %v995_v37, %v987_v62  ;;  %1290 = vmatprep.subr.mxu1 %v7776_v63  ;;  %v4870_v62 = vld [vmem:[%s9678_s5 + $0x200] sm:$0xff] }
 0x158   : > { %v1014_v4 = vadd.f32 %v999_v40, %v988_v1  ;;  %1185 = vmatprep.mubr.f32.mxu1 %v7742_v0  ;;  %v4871_v1 = vld [vmem:[%s9678_s5 + $0x208] sm:$0xff] }
 0x159   : > { %1186 = vmatmul.mubr.f32.gmra.mrb[14].mxu1 %v7744_v2  ;;  %v7750_v50 = vmax.f32 %v1013_v3, 0.0  ;;  %v1027_v3 = vld [vmem:[%s7821_s21 + $0x10] sm:$0xff]  ;;  %v6479_v11 = vpack.c.bf16 %v4871_v1, %v4870_v62  ;;  %v7976_v62 = vld [vmem:[%s7821_s21 + $0x58] sm:$0xff]  ;;  %v7980_v1 = vld [vmem:[%s7821_s21 + $0x60] sm:$0xff] }
 0x15a   : > { %v7748_v5 = vmax.f32 %v1014_v4, 0.0  ;;  %1291 = vmatpush1.msra.mxu1 %v7782_v6 }
 0x15b   : > { %6468 = vmatprep.subr.bf16.mxu1 %v6918_v54 }
 0x15c   : > { %1190 = vmatprep.mubr.f32.mxu1 %v7748_v5 }
 0x15d   : > { %1191 = vmatmul.mubr.f32.gmra.mrb[16].mxu1 %v7750_v50 }
 0x15e   : > { %1350 = vmatprep.mubr.f32.mxu1 %v6920_v26 }
 0x20a   : > { %v1262_v13 = vpop.f32.mrb[6].mxu0 }
 0x20b   : > { %v5898_v14 = vpop.f32.mrb[7].mxu0 }
 0x20c   : > { %v7860_v14 = vld [vmem:[%s7821_s21 + $0x18] sm:$0xff] }
 0x20e   : > { %v1267_v15 = vpop.f32.mrb[8].mxu0 }
 0x20f   : > { %v5901_v16 = vpop.f32.mrb[9].mxu0 }
 0x210   : > { %v4856_v16 = vld [vmem:[%s9678_s5 + $0x190] sm:$0xff] }
 0x212   : > { %v1272_v17 = vpop.f32.mrb[10].mxu0 }
 0x213   : > { %v5904_v10 = vpop.f32.mrb[11].mxu0 }
 0x214   : > { %v4874_v10 = vld [vmem:[%s9678_s5 + $0x220] sm:$0xff] }
 0x228   : > { %v5483_v19 = vpop.f32.mrb[12].mxu1 }
 0x229   : > { %v5484_v20 = vpop.f32.mrb[13].mxu1 }
 0x22a   : > { %v5485_v21 = vadd.f32 %v5484_v20, %v5483_v19  ;;  %v4875_v19 = vld [vmem:[%s9678_s5 + $0x228] sm:$0xff]  ;;  %v7880_v20 = vld [vmem:[%s7821_s21 + $0x20] sm:$0xff] }
 0x22b   : > { %v6487_v22 = vpack.c.bf16 %v4875_v19, %v4874_v10  ;;  %v8020_v10 = vld [vmem:[%s7821_s21 + $0x78] sm:$0xff]  ;;  %v8024_v19 = vld [vmem:[%s7821_s21 + $0x80] sm:$0xff] }
 0x22c   : > { %v1183_v27 = vadd.f32 %v5485_v21, %v1114_v25  ;;  %v5486_v29 = vpop.f32.mrb[14].mxu1 }
 0x22d   : > { %v5487_v30 = vpop.f32.mrb[15].mxu1 }
 0x22e   : > { %v1263_v32 = vadd.f32 %v1262_v13, %v1183_v27  ;;  %v5488_v33 = vadd.f32 %v5487_v30, %v5486_v29  ;;  %v4873_v13 = vld [vmem:[%s9678_s5 + $0x218] sm:$0xff]  ;;  %v4876_v27 = vld [vmem:[%s9678_s5 + $0x230] sm:$0xff]  ;;  %v7901_v30 = vld [vmem:[%s7821_s21 + $0x28] sm:$0xff] }
 0x22f   : > { %v4877_v29 = vld [vmem:[%s9678_s5 + $0x238] sm:$0xff] }
 0x230   : > { %v1188_v34 = vadd.f32 %v5488_v33, %v1114_v25  ;;  %v5489_v35 = vpop.f32.mrb[16].mxu1  ;;  %4799 = vmatmul.mubr.msk.f32.vlgmr.msra.gmra.mrb[18].mxu1 %vm1276_vm1, %v1263_v32 }
 0x231   : > { %v5490_v36 = vpop.f32.mrb[17].mxu1  ;;  %1356 = vmatprep.mubr.f32.mxu1 %v6920_v26  ;;  %6470 = vmatpush3.bf16.msra.mxu1 %v7792_v31 }
 0x232   : > { %v1268_v37 = vadd.f32 %v1267_v15, %v1188_v34  ;;  %v5491_v38 = vadd.f32 %v5490_v36, %v5489_v35  ;;  %5909 = vmatprep.subr.mxu1 %v6920_v26  ;;  %v6481_v15 = vpack.c.bf16 %v4855_v8, %v4854_v7  ;;  %v6491_v34 = vpack.c.bf16 %v4877_v29, %v4876_v27  ;;  %v4860_v35 = vld [vmem:[%s9678_s5 + $0x1b0] sm:$0xff]  ;;  %v4861_v36 = vld [vmem:[%s9678_s5 + $0x1b8] sm:$0xff]  ;;  %v4866_v7 = vld [vmem:[%s9678_s5 + $0x1e0] sm:$0xff] }
 0x233   : > { %v4867_v8 = vld [vmem:[%s9678_s5 + $0x1e8] sm:$0xff]  ;;  %v8051_v27 = vld [vmem:[%s7821_s21 + $0xa0] sm:$0xff] }
 0x234   : > { %v1193_v40 = vadd.f32 %v5491_v38, %v1114_v25  ;;  %4800 = vmatmul.mubr.msk.f32.gmra.mrb[20].mxu1 %vm1276_vm1, %v1268_v37  ;;  %v4859_v25 = vld [vmem:[%s9678_s5 + $0x1a8] sm:$0xff] }
 0x235   : > { %1362 = vmatprep.mubr.f32.mxu1 %v6920_v26  ;;  %5910 = vmatpush3.msra.mxu1 %v7801_v39  ;;  %v6489_v33 = vpack.c.bf16 %v4859_v25, %v4858_v23  ;;  %v4879_v38 = vld [vmem:[%s9678_s5 + $0x248] sm:$0xff]  ;;  %v8037_v23 = vld [vmem:[%s7821_s21 + $0x90] sm:$0xff]  ;;  %v8047_v25 = vld [vmem:[%s7821_s21 + $0x98] sm:$0xff] }
 0x236   : > { %v1273_v41 = vadd.f32 %v1272_v17, %v1193_v40  ;;  %v4857_v17 = vld [vmem:[%s9678_s5 + $0x198] sm:$0xff]  ;;  %v8060_v29 = vld [vmem:[%s7821_s21 + $0xa8] sm:$0xff] }
 0x237   : > { %v6485_v21 = vpack.c.bf16 %v4857_v17, %v4856_v16  ;;  %v7926_v40 = vld [vmem:[%s7821_s21 + $0x38] sm:$0xff]  ;;  %v4868_v16 = vld [vmem:[%s9678_s5 + $0x1f0] sm:$0xff] }
 0x238   : > { %4801 = vmatmul.mubr.msk.f32.gmra.mrb[22].mxu1 %vm1276_vm1, %v1273_v41  ;;  %v4869_v17 = vld [vmem:[%s9678_s5 + $0x1f8] sm:$0xff] }
 0x239   : > { %5911 = vmatprep.mubr.msk.f32.mxu1 %vm6919_vm0, %v6920_v26 }
 0x23c   : > { %5912 = vmatmul.mubr.msk.f32.vlgmr.msra.gmra.mrb[24].mxu1 %vm1276_vm1, %v1263_v32  ;;  %v7905_v32 = vld [vmem:[%s7821_s21 + $0x30] sm:$0xff] }
 0x23d   : > { %5914 = vmatprep.mubr.msk.f32.mxu1 %vm6919_vm0, %v6920_v26 }
 0x240   : > { %5915 = vmatmul.mubr.msk.f32.gmra.mrb[26].mxu1 %vm1276_vm1, %v1268_v37  ;;  %v4878_v37 = vld [vmem:[%s9678_s5 + $0x240] sm:$0xff] }
 0x241   : > { %5917 = vmatprep.mubr.msk.f32.mxu1 %vm6919_vm0, %v6920_v26 }
 0x244   : > { %5918 = vmatmul.mubr.msk.f32.gmra.mrb[28].mxu1 %vm1276_vm1, %v1273_v41  ;;  %v7930_v41 = vld [vmem:[%s7821_s21 + $0x40] sm:$0xff] }
 0x245   : > { %1595 = vmatprep.mubr.f32.mxu1 %v6920_v26 }
 0x303   : > { %v1352_v43 = vpop.f32.mrb[18].mxu1 }
 0x304   : > { %v1354_v44 = vpop.f32.mrb[19].mxu1 }
 0x307   : > { %v1358_v45 = vpop.f32.mrb[20].mxu1 }
 0x308   : > { %v6473_v46 = vpack.c.bf16 %v1358_v45, %v1352_v43  ;;  %v1360_v47 = vpop.f32.mrb[21].mxu1  ;;  %v6493_v43 = vpack.c.bf16 %v4861_v36, %v4860_v35  ;;  %v4862_v45 = vld [vmem:[%s9678_s5 + $0x1c0] sm:$0xff]  ;;  %v4887_v36 = vld [vmem:[%s9678_s5 + $0x288] sm:$0xff] }
 0x309   : > { %v6471_v48 = vpack.c.bf16 %v1360_v47, %v1354_v44  ;;  %v6495_v44 = vpack.c.bf16 %v4879_v38, %v4878_v37  ;;  %v4880_v47 = vld [vmem:[%s9678_s5 + $0x250] sm:$0xff]  ;;  %v4886_v35 = vld [vmem:[%s9678_s5 + $0x280] sm:$0xff] }
 0x30a   : > { %v6512_v37 = vpack.c.bf16 %v4887_v36, %v4886_v35  ;;  %v4888_v38 = vld [vmem:[%s9678_s5 + $0x290] sm:$0xff] }
 0x30b   : > { %v1364_v49 = vpop.f32.mrb[22].mxu1  ;;  %6472 = vmatprep.subr.bf16.mxu1 %v6471_v48  ;;  %v4881_v48 = vld [vmem:[%s9678_s5 + $0x258] sm:$0xff] }
 0x30c   : > { %v1366_v52 = vpop.f32.mrb[23].mxu1  ;;  %6474 = vmatpush1.bf16.msra.mxu1 %v6473_v46  ;;  %v4863_v46 = vld [vmem:[%s9678_s5 + $0x1c8] sm:$0xff] }
 0x30d   : > { %1535 = vmatprep.subr.mxu1 %v1366_v52  ;;  %v7955_v52 = vld [vmem:[%s7821_s21 + $0x50] sm:$0xff] }
 0x30f   : > { %v1435_v53 = vpop.f32.mrb[24].mxu1 }
 0x310   : > { %v5913_v56 = vpop.f32.mrb[25].mxu1  ;;  %1536 = vmatpush1.msra.mxu1 %v1364_v49  ;;  %v7951_v49 = vld [vmem:[%s7821_s21 + $0x48] sm:$0xff] }
 0x311   : > { %4806 = vmatmul.mubr.msk.f32.vlgmr.msra.gmra.mrb[30].mxu1 %vm1276_vm1, %v7824_v42  ;;  %6536 = vmatprep.subr.bf16.mxu1 %v7761_v9  ;;  %v6499_v56 = vpack.c.bf16 %v4881_v48, %v4880_v47  ;;  %v4892_v48 = vld [vmem:[%s9678_s5 + $0x2b0] sm:$0xff] }
 0x312   : > { %1601 = vmatprep.mubr.f32.mxu1 %v6920_v26  ;;  %6538 = vmatpush1.bf16.msra.mxu1 %v7769_v12 }
 0x313   : > { %v1440_v58 = vpop.f32.mrb[26].mxu1  ;;  %2230 = vmatprep.subr.mxu1 %v7776_v63  ;;  %v4872_v63 = vld [vmem:[%s9678_s5 + $0x210] sm:$0xff] }
 0x314   : > { %v6475_v60 = vpack.c.bf16 %v1440_v58, %v1435_v53  ;;  %v5916_v61 = vpop.f32.mrb[27].mxu1  ;;  %v6497_v53 = vpack.c.bf16 %v4863_v46, %v4862_v45  ;;  %v4865_v58 = vld [vmem:[%s9678_s5 + $0x1d8] sm:$0xff]  ;;  %v4890_v45 = vld [vmem:[%s9678_s5 + $0x2a0] sm:$0xff]  ;;  %v4891_v46 = vld [vmem:[%s9678_s5 + $0x2a8] sm:$0xff] }
 0x315   : > { %4807 = vmatmul.mubr.msk.f32.gmra.mrb[32].mxu1 %vm1276_vm1, %v1026_v57  ;;  %v4883_v61 = vld [vmem:[%s9678_s5 + $0x268] sm:$0xff]  ;;  %v6518_v47 = vpack.c.bf16 %v4891_v46, %v4890_v45 }
 0x316   : > { %6476 = vmatprep.subr.bf16.mxu0 %v6475_v60  ;;  %1607 = vmatprep.mubr.f32.mxu1 %v6920_v26 }
 0x317   : > { %v1445_v4 = vpop.f32.mrb[28].mxu1  ;;  %6478 = vmatpush3.bf16.msra.mxu0 %v6475_v60  ;;  %2231 = vmatpush1.msra.mxu1 %v7782_v6  ;;  %v6483_v6 = vpack.c.bf16 %v4873_v13, %v4872_v63  ;;  %v4882_v60 = vld [vmem:[%s9678_s5 + $0x260] sm:$0xff]  ;;  %v8001_v63 = vld [vmem:[%s7821_s21 + $0x68] sm:$0xff]  ;;  %v8005_v13 = vld [vmem:[%s7821_s21 + $0x70] sm:$0xff] }
 0x318   : > { %v5919_v59 = vpop.f32.mrb[29].mxu1  ;;  %5924 = vmatprep.subr.mxu0 %v1445_v4 }
 0x319   : > { %4808 = vmatmul.mubr.msk.f32.gmra.mrb[34].mxu1 %vm1276_vm1, %v1027_v3  ;;  %v4884_v59 = vld [vmem:[%s9678_s5 + $0x270] sm:$0xff] }
 0x31a   : > { %1613 = vmatprep.mubr.f32.mxu1 %v6920_v26 }
 0x31b   : > { %5925 = vmatpush3.msra.mxu0 %v1445_v4  ;;  %v6503_v4 = vpack.c.bf16 %v4883_v61, %v4882_v60  ;;  %v4896_v61 = vld [vmem:[%s9678_s5 + $0x2d0] sm:$0xff] }
 0x31c   : > { %5927 = vmatmul.mubr.msk.f32.vlgmr.msra.gmra.mrb[12].mxu0 %vm1276_vm1, %v1026_v57  ;;  %6480 = vmatprep.subr.bf16.mxu0 %v6479_v11  ;;  %v4864_v57 = vld [vmem:[%s9678_s5 + $0x1d0] sm:$0xff]  ;;  %v4885_v11 = vld [vmem:[%s9678_s5 + $0x278] sm:$0xff] }
 0x31d   : > { %4809 = vmatmul.mubr.msk.f32.gmra.mrb[36].mxu1 %vm1276_vm1, %v7860_v14  ;;  %5929 = vmatprep.mubr.msk.f32.mxu0 %vm1276_vm1, %v1027_v3  ;;  %v6501_v3 = vpack.c.bf16 %v4865_v58, %v4864_v57  ;;  %v4894_v57 = vld [vmem:[%s9678_s5 + $0x2c0] sm:$0xff]  ;;  %v4895_v58 = vld [vmem:[%s9678_s5 + $0x2c8] sm:$0xff] }
 0x31e   : > { %1619 = vmatprep.mubr.f32.mxu1 %v6920_v26  ;;  %6482 = vmatpush3.bf16.msra.mxu0 %v6481_v15  ;;  %v6505_v15 = vpack.c.bf16 %v4867_v8, %v4866_v7  ;;  %v6524_v60 = vpack.c.bf16 %v4895_v58, %v4894_v57  ;;  %v4898_v7 = vld [vmem:[%s9678_s5 + $0x2e0] sm:$0xff]  ;;  %v4899_v8 = vld [vmem:[%s9678_s5 + $0x2e8] sm:$0xff] }
 0x31f   : > { %6484 = vmatprep.subr.bf16.mxu0 %v6483_v6  ;;  %v6507_v6 = vpack.c.bf16 %v4885_v11, %v4884_v59  ;;  %v6530_v59 = vpack.c.bf16 %v4899_v8, %v4898_v7  ;;  %v4900_v11 = vld [vmem:[%s9678_s5 + $0x2f0] sm:$0xff] }
 0x320   : > { %5930 = vmatmul.mubr.msk.f32.gmra.mrb[14].mxu0 %vm1276_vm1, %v7860_v14 }
 0x321   : > { %4810 = vmatmul.mubr.msk.f32.gmra.mrb[38].mxu1 %vm1276_vm1, %v7880_v20  ;;  %5932 = vmatprep.mubr.msk.f32.mxu0 %vm1276_vm1, %v7880_v20 }
 0x322   : > { %1625 = vmatprep.mubr.f32.mxu1 %v6920_v26  ;;  %6486 = vmatpush3.bf16.msra.mxu0 %v6485_v21  ;;  %v6509_v21 = vpack.c.bf16 %v4869_v17, %v4868_v16  ;;  %v8185_v16 = vpop.permute.xlu0 %2054 }
 0x323   : > { %6488 = vmatprep.subr.bf16.mxu0 %v6487_v22  ;;  %v8033_v22 = vld [vmem:[%s7821_s21 + $0x88] sm:$0xff] }
 0x324   : > { %5933 = vmatmul.mubr.msk.f32.gmra.mrb[16].mxu0 %vm1276_vm1, %v7901_v30 }
 0x325   : > { %4811 = vmatmul.mubr.msk.f32.gmra.mrb[40].mxu1 %vm1276_vm1, %v7901_v30  ;;  %5935 = vmatprep.mubr.msk.f32.mxu0 %vm1276_vm1, %v7905_v32 }
 0x326   : > { %1631 = vmatprep.mubr.f32.mxu1 %v6920_v26  ;;  %6490 = vmatpush3.bf16.msra.mxu0 %v6489_v33  ;;  %v8064_v33 = vld [vmem:[%s7821_s21 + $0xb0] sm:$0xff]  ;;  %v8189_v17 = vpop.permute.xlu0 %1456 }
 0x327   : > { %6492 = vmatprep.subr.bf16.mxu0 %v6491_v34  ;;  %v8073_v34 = vld [vmem:[%s7821_s21 + $0xb8] sm:$0xff] }
 0x328   : > { %5936 = vmatmul.mubr.msk.f32.gmra.mrb[18].mxu0 %vm1276_vm1, %v7926_v40 }
 0x329   : > { %4812 = vmatmul.mubr.msk.f32.gmra.mrb[42].mxu1 %vm1276_vm1, %v7905_v32  ;;  %5938 = vmatprep.mubr.msk.f32.mxu0 %vm1276_vm1, %v7930_v41 }
 0x32a   : > { %1637 = vmatprep.mubr.f32.mxu1 %v6920_v26  ;;  %6494 = vmatpush3.bf16.msra.mxu0 %v6493_v43  ;;  %v4889_v43 = vld [vmem:[%s9678_s5 + $0x298] sm:$0xff] }
 0x32b   : > { %6496 = vmatprep.subr.bf16.mxu0 %v6495_v44  ;;  %v6515_v44 = vpack.c.bf16 %v4889_v43, %v4888_v38 }
 0x32c   : > { %5939 = vmatmul.mubr.msk.f32.gmra.mrb[20].mxu0 %vm1276_vm1, %v7951_v49 }
 0x32d   : > { %4813 = vmatmul.mubr.msk.f32.gmra.mrb[44].mxu1 %vm1276_vm1, %v7926_v40  ;;  %5941 = vmatprep.mubr.msk.f32.mxu0 %vm1276_vm1, %v7955_v52 }
 0x32e   : > { %1643 = vmatprep.mubr.f32.mxu1 %v6920_v26  ;;  %6498 = vmatpush3.bf16.msra.mxu0 %v6497_v53  ;;  %v4893_v53 = vld [vmem:[%s9678_s5 + $0x2b8] sm:$0xff] }
 0x32f   : > { %6500 = vmatprep.subr.bf16.mxu0 %v6499_v56  ;;  %v6521_v56 = vpack.c.bf16 %v4893_v53, %v4892_v48 }
 0x330   : > { %5942 = vmatmul.mubr.msk.f32.gmra.mrb[22].mxu0 %vm1276_vm1, %v7976_v62 }
 0x331   : > { %4814 = vmatmul.mubr.msk.f32.gmra.mrb[46].mxu1 %vm1276_vm1, %v7930_v41  ;;  %5944 = vmatprep.mubr.msk.f32.mxu0 %vm1276_vm1, %v7980_v1 }
 0x332   : > { %1649 = vmatprep.mubr.f32.mxu1 %v6920_v26  ;;  %6502 = vmatpush3.bf16.msra.mxu0 %v6501_v3  ;;  %v4897_v3 = vld [vmem:[%s9678_s5 + $0x2d8] sm:$0xff] }
 0x333   : > { %6504 = vmatprep.subr.bf16.mxu0 %v6503_v4  ;;  %v6527_v4 = vpack.c.bf16 %v4897_v3, %v4896_v61 }
 0x334   : > { %5945 = vmatmul.mubr.msk.f32.gmra.mrb[24].mxu0 %vm1276_vm1, %v8001_v63 }
 0x335   : > { %4815 = vmatmul.mubr.msk.f32.gmra.mrb[48].mxu1 %vm1276_vm1, %v7951_v49  ;;  %5947 = vmatprep.mubr.msk.f32.mxu0 %vm1276_vm1, %v8005_v13 }
 0x336   : > { %1655 = vmatprep.mubr.f32.mxu1 %v6920_v26  ;;  %6506 = vmatpush3.bf16.msra.mxu0 %v6505_v15  ;;  %v4901_v15 = vld [vmem:[%s9678_s5 + $0x2f8] sm:$0xff] }
 0x337   : > { %6508 = vmatprep.subr.bf16.mxu0 %v6507_v6  ;;  %v6533_v6 = vpack.c.bf16 %v4901_v15, %v4900_v11 }
 0x338   : > { %5948 = vmatmul.mubr.msk.f32.gmra.mrb[26].mxu0 %vm1276_vm1, %v8020_v10 }
 0x339   : > { %4816 = vmatmul.mubr.msk.f32.gmra.mrb[50].mxu1 %vm1276_vm1, %v7955_v52  ;;  %5950 = vmatprep.mubr.msk.f32.mxu0 %vm1276_vm1, %v8024_v19 }
 0x33a   : > { %1661 = vmatprep.mubr.f32.mxu1 %v6920_v26  ;;  %6510 = vmatpush3.bf16.msra.mxu0 %v6509_v21 }
 0x33b   : > { %6511 = vmatprep.subr.bf16.mxu0 %v6918_v54 }
 0x33c   : > { %5951 = vmatmul.mubr.msk.f32.gmra.mrb[28].mxu0 %vm1276_vm1, %v8033_v22 }
 0x33d   : > { %4817 = vmatmul.mubr.msk.f32.gmra.mrb[52].mxu1 %vm1276_vm1, %v7976_v62  ;;  %5953 = vmatprep.mubr.msk.f32.mxu0 %vm1276_vm1, %v8037_v23 }
 0x33e   : > { %1667 = vmatprep.mubr.f32.mxu1 %v6920_v26 }
 0x340   : > { %5954 = vmatmul.mubr.msk.f32.gmra.mrb[30].mxu0 %vm1276_vm1, %v8047_v25 }
 0x341   : > { %4818 = vmatmul.mubr.msk.f32.gmra.mrb[54].mxu1 %vm1276_vm1, %v7980_v1  ;;  %5956 = vmatprep.mubr.msk.f32.mxu0 %vm1276_vm1, %v8051_v27 }
 0x342   : > { %1673 = vmatprep.mubr.f32.mxu1 %v6920_v26 }
 0x344   : > { %5957 = vmatmul.mubr.msk.f32.gmra.mrb[32].mxu0 %vm1276_vm1, %v8060_v29 }
 0x345   : > { %4819 = vmatmul.mubr.msk.f32.gmra.mrb[56].mxu1 %vm1276_vm1, %v8001_v63  ;;  %5959 = vmatprep.mubr.msk.f32.mxu0 %vm1276_vm1, %v8064_v33 }
 0x346   : > { %1679 = vmatprep.mubr.f32.mxu1 %v6920_v26 }
 0x348   : > { %5960 = vmatmul.mubr.msk.f32.gmra.mrb[34].mxu0 %vm1276_vm1, %v8073_v34 }
 0x349   : > { %4820 = vmatmul.mubr.msk.f32.gmra.mrb[58].mxu1 %vm1276_vm1, %v8005_v13  ;;  %2121 = vmatprep.mubr.f32.mxu0 %v7736_v51 }
 0x34a   : > { %1685 = vmatprep.mubr.f32.mxu1 %v6920_v26 }
 0x34c   : > { %2122 = vmatmul.mubr.f32.vlgmr.msra.gmra.mrb[36].mxu0 %v7738_v55 }
 0x34d   : > { %6513 = vmatpush3.bf16.msra.mxu0 %v6512_v37  ;;  %4821 = vmatmul.mubr.msk.f32.gmra.mrb[60].mxu1 %vm1276_vm1, %v8020_v10 }
 0x34e   : > { %2126 = vmatprep.mubr.f32.mxu0 %v7742_v0  ;;  %6514 = vmatprep.subr.bf16.mxu0 %v6918_v54 }
 0x34f   : > { %1691 = vmatprep.mubr.f32.mxu1 %v6920_v26 }
 0x350   : > { %2127 = vmatmul.mubr.f32.gmra.mrb[38].mxu0 %v7744_v2 }
 0x351   : > { %6516 = vmatpush3.bf16.msra.mxu0 %v6515_v44  ;;  %4822 = vmatmul.mubr.msk.f32.gmra.mrb[62].mxu1 %vm1276_vm1, %v8024_v19 }
 0x352   : > { %2131 = vmatprep.mubr.f32.mxu0 %v7748_v5  ;;  %6517 = vmatprep.subr.bf16.mxu0 %v6918_v54 }
 0x353   : > { %1697 = vmatprep.mubr.f32.mxu1 %v6920_v26 }
 0x354   : > { %2132 = vmatmul.mubr.f32.gmra.mrb[40].mxu0 %v7750_v50 }
 0x355   : > { %6519 = vmatpush3.bf16.msra.mxu0 %v6518_v47  ;;  %4823 = vmatmul.mubr.msk.f32.gmra.mrb[64].mxu1 %vm1276_vm1, %v8033_v22 }
 0x356   : > { %6520 = vmatprep.subr.bf16.mxu0 %v6918_v54  ;;  %1703 = vmatprep.mubr.f32.mxu1 %v6920_v26 }
 0x357   : > { %5994 = vmatprep.mubr.msk.f32.mxu0 %vm6919_vm0, %v6920_v26 }
 0x359   : > { %6522 = vmatpush3.bf16.msra.mxu0 %v6521_v56  ;;  %4824 = vmatmul.mubr.msk.f32.gmra.mrb[66].mxu1 %vm1276_vm1, %v8037_v23 }
 0x35a   : > { %6523 = vmatprep.subr.bf16.mxu0 %v6918_v54  ;;  %1709 = vmatprep.mubr.f32.mxu1 %v6920_v26 }
 0x35d   : > { %6525 = vmatpush3.bf16.msra.mxu0 %v6524_v60  ;;  %4825 = vmatmul.mubr.msk.f32.gmra.mrb[68].mxu1 %vm1276_vm1, %v8047_v25 }
 0x35e   : > { %6526 = vmatprep.subr.bf16.mxu0 %v6918_v54  ;;  %1715 = vmatprep.mubr.f32.mxu1 %v6920_v26 }
 0x361   : > { %6528 = vmatpush3.bf16.msra.mxu0 %v6527_v4  ;;  %4826 = vmatmul.mubr.msk.f32.gmra.mrb[70].mxu1 %vm1276_vm1, %v8051_v27 }
 0x362   : > { %6529 = vmatprep.subr.bf16.mxu0 %v6918_v54  ;;  %1721 = vmatprep.mubr.f32.mxu1 %v6920_v26 }
 0x365   : > { %6531 = vmatpush3.bf16.msra.mxu0 %v6530_v59  ;;  %4827 = vmatmul.mubr.msk.f32.gmra.mrb[72].mxu1 %vm1276_vm1, %v8060_v29 }
 0x366   : > { %6532 = vmatprep.subr.bf16.mxu0 %v6918_v54  ;;  %1727 = vmatprep.mubr.f32.mxu1 %v6920_v26 }
 0x369   : > { %6534 = vmatpush3.bf16.msra.mxu0 %v6533_v6  ;;  %4828 = vmatmul.mubr.msk.f32.gmra.mrb[74].mxu1 %vm1276_vm1, %v8064_v33 }
 0x36a   : > { %1733 = vmatprep.mubr.f32.mxu1 %v6920_v26  ;;  %6539 = vmatprep.subr.bf16.mxu0 %v6918_v54 }
 0x36c   : > { %5995 = vmatmul.mubr.f32.vlgmr.msra.gmra.mrb[42].mxu0 %v7723_v18 }
 0x36d   : > { %4829 = vmatmul.mubr.msk.f32.gmra.mrb[76].mxu1 %vm1276_vm1, %v8073_v34  ;;  %5997 = vmatprep.mubr.msk.f32.mxu0 %vm6919_vm0, %v6920_v26 }
 0x36e   : > { %6541 = vmatpush3.bf16.msra.mxu0 %v7792_v31  ;;  %2290 = vmatprep.mubr.f32.mxu1 %v6920_v26 }
 0x36f   : > { %6007 = vmatprep.subr.mxu0 %v6920_v26 }
 0x370   : > { %5998 = vmatmul.mubr.f32.gmra.mrb[44].mxu0 %v7728_v24 }
 0x371   : > { %6000 = vmatprep.mubr.msk.f32.mxu0 %vm6919_vm0, %v6920_v26 }
 0x372   : > { %6008 = vmatpush3.msra.mxu0 %v7801_v39 }
 0x374   : > { %6001 = vmatmul.mubr.f32.gmra.mrb[46].mxu0 %v7733_v28 }
 0x375   : > { %6009 = vmatprep.mubr.msk.f32.mxu0 %vm6919_vm0, %v6920_v26 }
 0x3e4   : > { %v1597_v21 = vpop.f32.mrb[30].mxu1 }
 0x3e5   : > { %v1598_v35 = vadd.f32 %v1597_v21, %v8189_v17  ;;  %v1599_v36 = vpop.f32.mrb[31].mxu1 }
 0x3e6   : > { %v1600_v37 = vadd.f32 %v1599_v36, %v8189_v17 }
 0x3e7   : > { %1925 = vst [vmem:[%s8193_s24] sm:$0xff] %v1598_v35 }
 0x3e8   : > { %1926 = vst [vmem:[%s8193_s24 + $0x8] sm:$0xff] %v1600_v37  ;;  %v1603_v39 = vpop.f32.mrb[32].mxu1 }
 0x3e9   : > { %v1604_v38 = vadd.f32 %v1603_v39, %v8189_v17  ;;  %v1605_v43 = vpop.f32.mrb[33].mxu1 }
 0x3ea   : > { %v1606_v44 = vadd.f32 %v1605_v43, %v8189_v17 }
 0x3eb   : > { %1928 = vst [vmem:[%s8193_s24 + $0x18] sm:$0xff] %v1604_v38 }
 0x3ec   : > { %1929 = vst [vmem:[%s8193_s24 + $0x20] sm:$0xff] %v1606_v44  ;;  %v1609_v45 = vpop.f32.mrb[34].mxu1 }
 0x3ed   : > { %v1610_v46 = vadd.f32 %v1609_v45, %v8189_v17  ;;  %v1611_v47 = vpop.f32.mrb[35].mxu1 }
 0x3ee   : > { %v1612_v48 = vadd.f32 %v1611_v47, %v8189_v17 }
 0x3ef   : > { %1931 = vst [vmem:[%s8193_s24 + $0x30] sm:$0xff] %v1610_v46  ;;  %v5928_v53 = vpop.f32.mrb[12].mxu0 }
 0x3f0   : > { %1932 = vst [vmem:[%s8193_s24 + $0x38] sm:$0xff] %v1612_v48  ;;  %v1812_v56 = vadd.f32 %v5928_v53, %v8189_v17  ;;  %v1615_v57 = vpop.f32.mrb[36].mxu1  ;;  %v1806_v58 = vpop.f32.mrb[13].mxu0 }
 0x3f1   : > { %v1616_v60 = vadd.f32 %v1615_v57, %v8189_v17  ;;  %v1807_v61 = vadd.f32 %v1806_v58, %v8189_v17  ;;  %v1617_v3 = vpop.f32.mrb[37].mxu1 }
 0x3f2   : > { %1930 = vst [vmem:[%s8193_s24 + $0x28] sm:$0xff] %v1812_v56  ;;  %v1618_v4 = vadd.f32 %v1617_v3, %v8189_v17 }
 0x3f3   : > { %1934 = vst [vmem:[%s8193_s24 + $0x48] sm:$0xff] %v1616_v60  ;;  %1927 = vst [vmem:[%s8193_s24 + $0x10] sm:$0xff] %v1807_v61  ;;  %v5931_v7 = vpop.f32.mrb[14].mxu0 }
 0x3f4   : > { %1935 = vst [vmem:[%s8193_s24 + $0x50] sm:$0xff] %v1618_v4  ;;  %v1822_v8 = vadd.f32 %v5931_v7, %v8189_v17  ;;  %v1621_v59 = vpop.f32.mrb[38].mxu1  ;;  %v1816_v11 = vpop.f32.mrb[15].mxu0 }
 0x3f5   : > { %v1622_v15 = vadd.f32 %v1621_v59, %v8189_v17  ;;  %v1817_v6 = vadd.f32 %v1816_v11, %v8189_v17  ;;  %v1623_v21 = vpop.f32.mrb[39].mxu1 }
 0x3f6   : > { %1936 = vst [vmem:[%s8193_s24 + $0x58] sm:$0xff] %v1822_v8  ;;  %v1624_v35 = vadd.f32 %v1623_v21, %v8189_v17 }
 0x3f7   : > { %1937 = vst [vmem:[%s8193_s24 + $0x60] sm:$0xff] %v1622_v15  ;;  %1933 = vst [vmem:[%s8193_s24 + $0x40] sm:$0xff] %v1817_v6  ;;  %v5934_v36 = vpop.f32.mrb[16].mxu0 }
 0x3f8   : > { %1938 = vst [vmem:[%s8193_s24 + $0x68] sm:$0xff] %v1624_v35  ;;  %v1832_v37 = vadd.f32 %v5934_v36, %v8189_v17  ;;  %v1627_v39 = vpop.f32.mrb[40].mxu1  ;;  %v1826_v38 = vpop.f32.mrb[17].mxu0 }
 0x3f9   : > { %v1628_v43 = vadd.f32 %v1627_v39, %v8189_v17  ;;  %v1827_v44 = vadd.f32 %v1826_v38, %v8189_v17  ;;  %v1629_v45 = vpop.f32.mrb[41].mxu1 }
 0x3fa   : > { %1942 = vst [vmem:[%s8193_s24 + $0x88] sm:$0xff] %v1832_v37  ;;  %v1630_v46 = vadd.f32 %v1629_v45, %v8189_v17 }
 0x3fb   : > { %1940 = vst [vmem:[%s8193_s24 + $0x78] sm:$0xff] %v1628_v43  ;;  %1939 = vst [vmem:[%s8193_s24 + $0x70] sm:$0xff] %v1827_v44  ;;  %v5937_v47 = vpop.f32.mrb[18].mxu0 }
 0x3fc   : > { %1941 = vst [vmem:[%s8193_s24 + $0x80] sm:$0xff] %v1630_v46  ;;  %v1842_v48 = vadd.f32 %v5937_v47, %v8189_v17  ;;  %v1633_v53 = vpop.f32.mrb[42].mxu1  ;;  %v1836_v56 = vpop.f32.mrb[19].mxu0 }
 0x3fd   : > { %v1634_v57 = vadd.f32 %v1633_v53, %v8189_v17  ;;  %v1837_v58 = vadd.f32 %v1836_v56, %v8189_v17  ;;  %v1635_v60 = vpop.f32.mrb[43].mxu1 }
 0x3fe   : > { %1948 = vst [vmem:[%s8193_s24 + $0xb8] sm:$0xff] %v1842_v48  ;;  %v1636_v61 = vadd.f32 %v1635_v60, %v8189_v17 }
 0x3ff   : > { %1943 = vst [vmem:[%s8193_s24 + $0x90] sm:$0xff] %v1634_v57  ;;  %1945 = vst [vmem:[%s8193_s24 + $0xa0] sm:$0xff] %v1837_v58  ;;  %v5940_v3 = vpop.f32.mrb[20].mxu0 }
 0x400   : > { %1944 = vst [vmem:[%s8193_s24 + $0x98] sm:$0xff] %v1636_v61  ;;  %v1852_v4 = vadd.f32 %v5940_v3, %v8189_v17  ;;  %v1639_v7 = vpop.f32.mrb[44].mxu1  ;;  %v1846_v8 = vpop.f32.mrb[21].mxu0 }
 0x401   : > { %v1640_v59 = vadd.f32 %v1639_v7, %v8189_v17  ;;  %v1847_v11 = vadd.f32 %v1846_v8, %v8189_v17  ;;  %v1641_v15 = vpop.f32.mrb[45].mxu1 }
 0x402   : > { %1954 = vst [vmem:[%s8193_s24 + $0xe8] sm:$0xff] %v1852_v4  ;;  %v1642_v6 = vadd.f32 %v1641_v15, %v8189_v17 }
 0x403   : > { %1946 = vst [vmem:[%s8193_s24 + $0xa8] sm:$0xff] %v1640_v59  ;;  %1951 = vst [vmem:[%s8193_s24 + $0xd0] sm:$0xff] %v1847_v11  ;;  %v5943_v21 = vpop.f32.mrb[22].mxu0 }
 0x404   : > { %1947 = vst [vmem:[%s8193_s24 + $0xb0] sm:$0xff] %v1642_v6  ;;  %v1862_v35 = vadd.f32 %v5943_v21, %v8189_v17  ;;  %v1645_v36 = vpop.f32.mrb[46].mxu1  ;;  %v1856_v37 = vpop.f32.mrb[23].mxu0 }
 0x405   : > { %v1646_v39 = vadd.f32 %v1645_v36, %v8189_v17  ;;  %v1857_v38 = vadd.f32 %v1856_v37, %v8189_v17  ;;  %v1647_v43 = vpop.f32.mrb[47].mxu1 }
 0x406   : > { %1960 = vst [vmem:[%s8193_s24 + $0x118] sm:$0xff] %v1862_v35  ;;  %v1648_v44 = vadd.f32 %v1647_v43, %v8189_v17 }
 0x407   : > { %1949 = vst [vmem:[%s8193_s24 + $0xc0] sm:$0xff] %v1646_v39  ;;  %1957 = vst [vmem:[%s8193_s24 + $0x100] sm:$0xff] %v1857_v38  ;;  %v5946_v45 = vpop.f32.mrb[24].mxu0 }
 0x408   : > { %1950 = vst [vmem:[%s8193_s24 + $0xc8] sm:$0xff] %v1648_v44  ;;  %v1872_v46 = vadd.f32 %v5946_v45, %v8189_v17  ;;  %v1651_v47 = vpop.f32.mrb[48].mxu1  ;;  %v1866_v48 = vpop.f32.mrb[25].mxu0 }
 0x409   : > { %v1652_v53 = vadd.f32 %v1651_v47, %v8189_v17  ;;  %v1867_v56 = vadd.f32 %v1866_v48, %v8189_v17  ;;  %v1653_v57 = vpop.f32.mrb[49].mxu1 }
 0x40a   : > { %1966 = vst [vmem:[%s8193_s24 + $0x148] sm:$0xff] %v1872_v46  ;;  %v1654_v58 = vadd.f32 %v1653_v57, %v8189_v17 }
 0x40b   : > { %1952 = vst [vmem:[%s8193_s24 + $0xd8] sm:$0xff] %v1652_v53  ;;  %1963 = vst [vmem:[%s8193_s24 + $0x130] sm:$0xff] %v1867_v56  ;;  %v5949_v60 = vpop.f32.mrb[26].mxu0 }
 0x40c   : > { %1953 = vst [vmem:[%s8193_s24 + $0xe0] sm:$0xff] %v1654_v58  ;;  %v1882_v61 = vadd.f32 %v5949_v60, %v8189_v17  ;;  %v1657_v3 = vpop.f32.mrb[50].mxu1  ;;  %v1876_v4 = vpop.f32.mrb[27].mxu0 }
 0x40d   : > { %v1658_v7 = vadd.f32 %v1657_v3, %v8189_v17  ;;  %v1877_v8 = vadd.f32 %v1876_v4, %v8189_v17  ;;  %v1659_v59 = vpop.f32.mrb[51].mxu1 }
 0x40e   : > { %1972 = vst [vmem:[%s8193_s24 + $0x178] sm:$0xff] %v1882_v61  ;;  %v1660_v11 = vadd.f32 %v1659_v59, %v8189_v17 }
 0x40f   : > { %1955 = vst [vmem:[%s8193_s24 + $0xf0] sm:$0xff] %v1658_v7  ;;  %1969 = vst [vmem:[%s8193_s24 + $0x160] sm:$0xff] %v1877_v8  ;;  %v5952_v15 = vpop.f32.mrb[28].mxu0 }
 0x410   : > { %1956 = vst [vmem:[%s8193_s24 + $0xf8] sm:$0xff] %v1660_v11  ;;  %v1892_v6 = vadd.f32 %v5952_v15, %v8189_v17  ;;  %v1663_v21 = vpop.f32.mrb[52].mxu1  ;;  %v1886_v35 = vpop.f32.mrb[29].mxu0 }
 0x411   : > { %v1664_v36 = vadd.f32 %v1663_v21, %v8189_v17  ;;  %v1887_v37 = vadd.f32 %v1886_v35, %v8189_v17  ;;  %v1665_v39 = vpop.f32.mrb[53].mxu1 }
 0x412   : > { %1978 = vst [vmem:[%s8193_s24 + $0x1a8] sm:$0xff] %v1892_v6  ;;  %v1666_v38 = vadd.f32 %v1665_v39, %v8189_v17 }
 0x413   : > { %1958 = vst [vmem:[%s8193_s24 + $0x108] sm:$0xff] %v1664_v36  ;;  %1975 = vst [vmem:[%s8193_s24 + $0x190] sm:$0xff] %v1887_v37  ;;  %v5955_v43 = vpop.f32.mrb[30].mxu0 }
 0x414   : > { %1959 = vst [vmem:[%s8193_s24 + $0x110] sm:$0xff] %v1666_v38  ;;  %v1902_v44 = vadd.f32 %v5955_v43, %v8189_v17  ;;  %v1669_v45 = vpop.f32.mrb[54].mxu1  ;;  %v1896_v46 = vpop.f32.mrb[31].mxu0 }
 0x415   : > { %v1670_v47 = vadd.f32 %v1669_v45, %v8189_v17  ;;  %v1897_v48 = vadd.f32 %v1896_v46, %v8189_v17  ;;  %v1671_v53 = vpop.f32.mrb[55].mxu1 }
 0x416   : > { %1984 = vst [vmem:[%s8193_s24 + $0x1d8] sm:$0xff] %v1902_v44  ;;  %v1672_v56 = vadd.f32 %v1671_v53, %v8189_v17 }
 0x417   : > { %1961 = vst [vmem:[%s8193_s24 + $0x120] sm:$0xff] %v1670_v47  ;;  %1981 = vst [vmem:[%s8193_s24 + $0x1c0] sm:$0xff] %v1897_v48  ;;  %v5958_v57 = vpop.f32.mrb[32].mxu0 }
 0x418   : > { %1962 = vst [vmem:[%s8193_s24 + $0x128] sm:$0xff] %v1672_v56  ;;  %v1912_v58 = vadd.f32 %v5958_v57, %v8189_v17  ;;  %v1675_v60 = vpop.f32.mrb[56].mxu1  ;;  %v1906_v61 = vpop.f32.mrb[33].mxu0 }
 0x419   : > { %v1676_v3 = vadd.f32 %v1675_v60, %v8189_v17  ;;  %v1907_v4 = vadd.f32 %v1906_v61, %v8189_v17  ;;  %v1677_v7 = vpop.f32.mrb[57].mxu1 }
 0x41a   : > { %1990 = vst [vmem:[%s8193_s24 + $0x208] sm:$0xff] %v1912_v58  ;;  %v1678_v8 = vadd.f32 %v1677_v7, %v8189_v17 }
 0x41b   : > { %1964 = vst [vmem:[%s8193_s24 + $0x138] sm:$0xff] %v1676_v3  ;;  %1987 = vst [vmem:[%s8193_s24 + $0x1f0] sm:$0xff] %v1907_v4  ;;  %v5961_v59 = vpop.f32.mrb[34].mxu0 }
 0x41c   : > { %1965 = vst [vmem:[%s8193_s24 + $0x140] sm:$0xff] %v1678_v8  ;;  %v1922_v11 = vadd.f32 %v5961_v59, %v8189_v17  ;;  %v1681_v15 = vpop.f32.mrb[58].mxu1  ;;  %v1916_v6 = vpop.f32.mrb[35].mxu0 }
 0x41d   : > { %v1682_v21 = vadd.f32 %v1681_v15, %v8189_v17  ;;  %v1917_v35 = vadd.f32 %v1916_v6, %v8189_v17  ;;  %v1683_v36 = vpop.f32.mrb[59].mxu1 }
 0x41e   : > { %1996 = vst [vmem:[%s8193_s24 + $0x238] sm:$0xff] %v1922_v11  ;;  %v1684_v37 = vadd.f32 %v1683_v36, %v8189_v17 }
 0x41f   : > { %1967 = vst [vmem:[%s8193_s24 + $0x150] sm:$0xff] %v1682_v21  ;;  %1993 = vst [vmem:[%s8193_s24 + $0x220] sm:$0xff] %v1917_v35  ;;  %v5576_v39 = vpop.f32.mrb[36].mxu0 }
 0x420   : > { %1968 = vst [vmem:[%s8193_s24 + $0x158] sm:$0xff] %v1684_v37  ;;  %v1687_v38 = vpop.f32.mrb[60].mxu1  ;;  %v5577_v43 = vpop.f32.mrb[37].mxu0 }
 0x421   : > { %v1688_v44 = vadd.f32 %v1687_v38, %v8189_v17  ;;  %v5578_v45 = vadd.f32 %v5577_v43, %v5576_v39  ;;  %v1689_v46 = vpop.f32.mrb[61].mxu1 }
 0x422   : > { %v1690_v47 = vadd.f32 %v1689_v46, %v8189_v17 }
 0x423   : > { %1970 = vst [vmem:[%s8193_s24 + $0x168] sm:$0xff] %v1688_v44  ;;  %v5579_v48 = vpop.f32.mrb[38].mxu0 }
 0x424   : > { %1971 = vst [vmem:[%s8193_s24 + $0x170] sm:$0xff] %v1690_v47  ;;  %v1693_v53 = vpop.f32.mrb[62].mxu1  ;;  %v5580_v56 = vpop.f32.mrb[39].mxu0 }
 0x425   : > { %v1694_v57 = vadd.f32 %v1693_v53, %v8189_v17  ;;  %v5581_v58 = vadd.f32 %v5580_v56, %v5579_v48  ;;  %v1695_v60 = vpop.f32.mrb[63].mxu1 }
 0x426   : > { %v1696_v61 = vadd.f32 %v1695_v60, %v8189_v17 }
 0x427   : > { %1973 = vst [vmem:[%s8193_s24 + $0x180] sm:$0xff] %v1694_v57  ;;  %v5582_v3 = vpop.f32.mrb[40].mxu0 }
 0x428   : > { %1974 = vst [vmem:[%s8193_s24 + $0x188] sm:$0xff] %v1696_v61  ;;  %v1699_v4 = vpop.f32.mrb[64].mxu1  ;;  %v5583_v7 = vpop.f32.mrb[41].mxu0 }
 0x429   : > { %v1700_v8 = vadd.f32 %v1699_v4, %v8189_v17  ;;  %v5584_v59 = vadd.f32 %v5583_v7, %v5582_v3  ;;  %v1701_v11 = vpop.f32.mrb[65].mxu1 }
 0x42a   : > { %v1702_v15 = vadd.f32 %v1701_v11, %v8189_v17 }
 0x42b   : > { %1976 = vst [vmem:[%s8193_s24 + $0x198] sm:$0xff] %v1700_v8  ;;  %v2124_v8 = vadd.f32 %v5578_v45, %v8185_v16 }
 0x42c   : > { %1977 = vst [vmem:[%s8193_s24 + $0x1a0] sm:$0xff] %v1702_v15  ;;  %v1705_v6 = vpop.f32.mrb[66].mxu1 }
 0x42d   : > { %v1706_v21 = vadd.f32 %v1705_v6, %v8189_v17  ;;  %v1707_v35 = vpop.f32.mrb[67].mxu1 }
 0x42e   : > { %v1708_v36 = vadd.f32 %v1707_v35, %v8189_v17 }
 0x42f   : > { %1979 = vst [vmem:[%s8193_s24 + $0x1b0] sm:$0xff] %v1706_v21 }
 0x430   : > { %1980 = vst [vmem:[%s8193_s24 + $0x1b8] sm:$0xff] %v1708_v36  ;;  %v1711_v37 = vpop.f32.mrb[68].mxu1 }
 0x431   : > { %v1712_v39 = vadd.f32 %v1711_v37, %v8189_v17  ;;  %v1713_v38 = vpop.f32.mrb[69].mxu1 }
 0x432   : > { %v1714_v43 = vadd.f32 %v1713_v38, %v8189_v17 }
 0x433   : > { %1982 = vst [vmem:[%s8193_s24 + $0x1c8] sm:$0xff] %v1712_v39  ;;  %v2129_v39 = vadd.f32 %v5581_v58, %v8185_v16 }
 0x434   : > { %1983 = vst [vmem:[%s8193_s24 + $0x1d0] sm:$0xff] %v1714_v43  ;;  %v1717_v44 = vpop.f32.mrb[70].mxu1 }
 0x435   : > { %v1718_v46 = vadd.f32 %v1717_v44, %v8189_v17  ;;  %v1719_v47 = vpop.f32.mrb[71].mxu1 }
 0x436   : > { %v1720_v48 = vadd.f32 %v1719_v47, %v8189_v17  ;;  %v4911_v47 = vld [vmem:[%s9680_s7 + $0x1] ss:$0 sm:$0xff] }
 0x437   : > { %1985 = vst [vmem:[%s8193_s24 + $0x1e0] sm:$0xff] %v1718_v46 }
 0x438   : > { %1986 = vst [vmem:[%s8193_s24 + $0x1e8] sm:$0xff] %v1720_v48  ;;  %v1723_v53 = vpop.f32.mrb[72].mxu1 }
 0x439   : > { %v1724_v56 = vadd.f32 %v1723_v53, %v8189_v17  ;;  %v1725_v57 = vpop.f32.mrb[73].mxu1 }
 0x43a   : > { %v1726_v60 = vadd.f32 %v1725_v57, %v8189_v17 }
 0x43b   : > { %1988 = vst [vmem:[%s8193_s24 + $0x1f8] sm:$0xff] %v1724_v56 }
 0x43c   : > { %1989 = vst [vmem:[%s8193_s24 + $0x200] sm:$0xff] %v1726_v60  ;;  %v1729_v61 = vpop.f32.mrb[74].mxu1 }
 0x43d   : > { %v1730_v3 = vadd.f32 %v1729_v61, %v8189_v17  ;;  %v1731_v4 = vpop.f32.mrb[75].mxu1 }
 0x43e   : > { %v1732_v7 = vadd.f32 %v1731_v4, %v8189_v17 }
 0x43f   : > { %1991 = vst [vmem:[%s8193_s24 + $0x210] sm:$0xff] %v1730_v3  ;;  %v2203_v11 = vpop.f32.mrb[42].mxu0 }
 0x440   : > { %1992 = vst [vmem:[%s8193_s24 + $0x218] sm:$0xff] %v1732_v7  ;;  %v2204_v15 = vadd.f32 %v2203_v11, %v2124_v8  ;;  %v5996_v6 = vpop.f32.mrb[43].mxu0  ;;  %v1735_v21 = vpop.f32.mrb[76].mxu1 }
 0x441   : > { %v1736_v35 = vadd.f32 %v1735_v21, %v8189_v17  ;;  %v1737_v36 = vpop.f32.mrb[77].mxu1  ;;  %v5048_v21 = vld [vmem:[%s9678_s5 + $0x380] sm:$0xff] }
 0x442   : > { %v1738_v37 = vadd.f32 %v1737_v36, %v8189_v17  ;;  %4904 = vmatmul.mubr.msk.f32.vlgmr.msra.gmra.mrb[78].mxu1 %vm1276_vm1, %v2204_v15  ;;  %6010 = vmatmul.mubr.msk.f32.vlgmr.msra.gmra.mrb[48].mxu0 %vm1276_vm1, %v2204_v15  ;;  %v2134_v17 = vadd.f32 %v5584_v59, %v8185_v16  ;;  %v5081_v16 = vld [vmem:[%s9679_s6 + $0x2] ss:$0 sm:$0xff]  ;;  %v5259_v59 = vld [vmem:[%s9679_s6 + $0x3] ss:$0 sm:$0xff] }
 0x443   : > { %1994 = vst [vmem:[%s8193_s24 + $0x228] sm:$0xff] %v1736_v35  ;;  %v2208_v45 = vpop.f32.mrb[44].mxu0  ;;  %2296 = vmatprep.mubr.f32.mxu1 %v6920_v26  ;;  %6012 = vmatprep.mubr.msk.f32.mxu0 %vm6919_vm0, %v6920_v26  ;;  %v5049_v35 = vld [vmem:[%s9678_s5 + $0x388] sm:$0xff] }
 0x444   : > { %1995 = vst [vmem:[%s8193_s24 + $0x230] sm:$0xff] %v1738_v37  ;;  %v2209_v38 = vadd.f32 %v2208_v45, %v2129_v39  ;;  %v5999_v43 = vpop.f32.mrb[45].mxu0  ;;  %2924 = vperm.xlu1 %6797, %v5081_v16   ;;  %v5032_v39 = vld [vmem:[%s9678_s5 + $0x300] sm:$0xff]  ;;  %v5033_v45 = vld [vmem:[%s9678_s5 + $0x308] sm:$0xff]  ;;  %v5034_v16 = vld [vmem:[%s9678_s5 + $0x310] sm:$0xff] }
 0x445   : > { %v5051_v43 = vld [vmem:[%s9678_s5 + $0x398] sm:$0xff] }
 0x446   : > { %4905 = vmatmul.mubr.msk.f32.gmra.mrb[80].mxu1 %vm1276_vm1, %v2209_v38  ;;  %6013 = vmatmul.mubr.msk.f32.gmra.mrb[50].mxu0 %vm1276_vm1, %v2209_v38  ;;  %v5050_v38 = vld [vmem:[%s9678_s5 + $0x390] sm:$0xff] }
 0x447   : > { %v2213_v44 = vpop.f32.mrb[46].mxu0  ;;  %2302 = vmatprep.mubr.f32.mxu1 %v6920_v26  ;;  %6015 = vmatprep.mubr.msk.f32.mxu0 %vm6919_vm0, %v6920_v26 }
 0x448   : > { %v2214_v58 = vadd.f32 %v2213_v44, %v2134_v17  ;;  %v6002_v46 = vpop.f32.mrb[47].mxu0  ;;  %3794 = vperm.xlu1 %6797, %v5259_v59   ;;  %v6550_v17 = vpack.c.bf16 %v5049_v35, %v5048_v21  ;;  %v6552_v44 = vpack.c.bf16 %v5033_v45, %v5032_v39  ;;  %v5035_v59 = vld [vmem:[%s9678_s5 + $0x318] sm:$0xff]  ;;  %v5040_v21 = vld [vmem:[%s9678_s5 + $0x340] sm:$0xff]  ;;  %v5041_v35 = vld [vmem:[%s9678_s5 + $0x348] sm:$0xff] }
 0x449   : > { %v6554_v46 = vpack.c.bf16 %v5051_v43, %v5050_v38  ;;  %v6568_v39 = vpack.c.bf16 %v5041_v35, %v5040_v21  ;;  %v5043_v38 = vld [vmem:[%s9678_s5 + $0x358] sm:$0xff]  ;;  %v8488_v43 = vld [vmem:[%s7821_s21 + $0x20] sm:$0xff] }
 0x44a   : > { %4906 = vmatmul.mubr.msk.f32.gmra.mrb[82].mxu1 %vm1276_vm1, %v2214_v58  ;;  %6016 = vmatmul.mubr.msk.f32.gmra.mrb[52].mxu0 %vm1276_vm1, %v2214_v58  ;;  %v8386_v58 = vld [vmem:[%s7821_s21 + $0x8] sm:$0xff]  ;;  %v8648_v21 = vld [vmem:[%s7821_s21 + $0x78] sm:$0xff] }
 0x44b   : > { %6024 = vmatprep.mubr.msk.f32.mxu0 %vm1276_vm1, %v7824_v42  ;;  %2464 = vmatprep.mubr.f32.mxu1 %v6920_v26  ;;  %v5267_v42 = vld [vmem:[%s9680_s7 + $0x3] ss:$0 sm:$0xff] }
 0x44c   : > { %2397 = vperm.xlu1 %6797, %v4911_v47   ;;  %v8397_v47 = vld [vmem:[%s7821_s21] sm:$0xff] }
 0x450   : > { %4137 = vperm.xlu1 %6797, %v5267_v42   ;;  %v8402_v42 = vld [vmem:[%s7821_s21 + $0x10] sm:$0xff] }
 0x515   : > { %v2292_v48 = vpop.f32.mrb[78].mxu1  ;;  %v2375_v53 = vpop.f32.mrb[48].mxu0 }
 0x516   : > { %v2294_v56 = vpop.f32.mrb[79].mxu1  ;;  %v6011_v57 = vpop.f32.mrb[49].mxu0 }
 0x519   : > { %v2298_v60 = vpop.f32.mrb[80].mxu1  ;;  %v2380_v61 = vpop.f32.mrb[50].mxu0 }
 0x51a   : > { %v6544_v3 = vpack.c.bf16 %v2298_v60, %v2292_v48  ;;  %v6546_v4 = vpack.c.bf16 %v2380_v61, %v2375_v53  ;;  %v2300_v7 = vpop.f32.mrb[81].mxu1  ;;  %v6014_v8 = vpop.f32.mrb[51].mxu0  ;;  %v5052_v48 = vld [vmem:[%s9678_s5 + $0x3a0] sm:$0xff]  ;;  %v5053_v53 = vld [vmem:[%s9678_s5 + $0x3a8] sm:$0xff] }
 0x51b   : > { %v6542_v11 = vpack.c.bf16 %v2300_v7, %v2294_v56  ;;  %v6556_v56 = vpack.c.bf16 %v5035_v59, %v5034_v16  ;;  %v6558_v57 = vpack.c.bf16 %v5053_v53, %v5052_v48  ;;  %v5036_v60 = vld [vmem:[%s9678_s5 + $0x320] sm:$0xff]  ;;  %v5037_v61 = vld [vmem:[%s9678_s5 + $0x328] sm:$0xff]  ;;  %v5038_v7 = vld [vmem:[%s9678_s5 + $0x330] sm:$0xff] }
 0x51c   : > { %6547 = vmatprep.subr.bf16.mxu0 %v6546_v4  ;;  %v5039_v8 = vld [vmem:[%s9678_s5 + $0x338] sm:$0xff]  ;;  %v5045_v16 = vld [vmem:[%s9678_s5 + $0x368] sm:$0xff] }
 0x51d   : > { %v2304_v15 = vpop.f32.mrb[82].mxu1  ;;  %v2385_v6 = vpop.f32.mrb[52].mxu0  ;;  %6543 = vmatprep.subr.bf16.mxu1 %v6542_v11  ;;  %6549 = vmatpush3.bf16.msra.mxu0 %v6546_v4  ;;  %v6560_v4 = vpack.c.bf16 %v5037_v61, %v5036_v60  ;;  %v5057_v11 = vld [vmem:[%s9678_s5 + $0x3c8] sm:$0xff]  ;;  %v5063_v48 = vld [vmem:[%s9678_s5 + $0x3f8] sm:$0xff]  ;;  %v8532_v60 = vld [vmem:[%s7821_s21 + $0x30] sm:$0xff] }
 0x51e   : > { %v2306_v36 = vpop.f32.mrb[83].mxu1  ;;  %v6017_v37 = vpop.f32.mrb[53].mxu0  ;;  %6545 = vmatpush1.bf16.msra.mxu1 %v6544_v3  ;;  %6022 = vmatprep.subr.mxu0 %v2385_v6  ;;  %v5055_v3 = vld [vmem:[%s9678_s5 + $0x3b8] sm:$0xff]  ;;  %v8510_v59 = vld [vmem:[%s7821_s21 + $0x28] sm:$0xff] }
 0x51f   : > { %2404 = vmatprep.subr.mxu1 %v2306_v36  ;;  %v8466_v36 = vld [vmem:[%s7821_s21 + $0x18] sm:$0xff] }
 0x520   : > { %v5059_v37 = vld [vmem:[%s9678_s5 + $0x3d8] sm:$0xff] }
 0x521   : > { %6023 = vmatpush3.msra.mxu0 %v2385_v6  ;;  %v6564_v6 = vpack.c.bf16 %v5039_v8, %v5038_v7  ;;  %v8542_v61 = vld [vmem:[%s7821_s21 + $0x38] sm:$0xff]  ;;  %v5070_v8 = vld [vmem:[%s9678_s5 + $0x430] sm:$0xff] }
 0x522   : > { %2405 = vmatpush1.msra.mxu1 %v2304_v15  ;;  %6025 = vmatmul.mubr.msk.f32.vlgmr.msra.gmra.mrb[54].mxu0 %vm1276_vm1, %v8386_v58  ;;  %v6801_v15 = vld [vmem:[%s9682_s9 + $0x40] sm:$0xff] }
 0x523   : > { %4912 = vmatmul.mubr.msk.f32.vlgmr.msra.gmra.mrb[84].mxu1 %vm1276_vm1, %v8397_v47  ;;  %6027 = vmatprep.mubr.msk.f32.mxu0 %vm1276_vm1, %v8402_v42 }
 0x524   : > { %2470 = vmatprep.mubr.f32.mxu1 %v6920_v26  ;;  %6551 = vmatprep.subr.bf16.mxu0 %v6550_v17  ;;  %v5061_v17 = vld [vmem:[%s9678_s5 + $0x3e8] sm:$0xff] }
 0x525   : > { %6553 = vmatpush3.bf16.msra.mxu0 %v6552_v44  ;;  %6610 = vmatprep.subr.bf16.mxu1 %v6918_v54 }
 0x526   : > { %6028 = vmatmul.mubr.msk.f32.gmra.mrb[56].mxu0 %vm1276_vm1, %v7860_v14  ;;  %6555 = vmatprep.subr.bf16.mxu0 %v6554_v46  ;;  %v5054_v14 = vld [vmem:[%s9678_s5 + $0x3b0] sm:$0xff] }
 0x527   : > { %4913 = vmatmul.mubr.msk.f32.gmra.mrb[86].mxu1 %vm1276_vm1, %v8386_v58  ;;  %6030 = vmatprep.mubr.msk.f32.mxu0 %vm1276_vm1, %v7880_v20  ;;  %v6562_v20 = vpack.c.bf16 %v5055_v3, %v5054_v14  ;;  %v5068_v3 = vld [vmem:[%s9678_s5 + $0x420] sm:$0xff] }
 0x528   : > { %2476 = vmatprep.mubr.f32.mxu1 %v6920_v26  ;;  %6612 = vmatpush3.bf16.msra.mxu1 %v7792_v31 }
 0x529   : > { %6557 = vmatpush3.bf16.msra.mxu0 %v6556_v56  ;;  %6105 = vmatprep.subr.mxu1 %v6920_v26 }
 0x52a   : > { %6031 = vmatmul.mubr.msk.f32.gmra.mrb[58].mxu0 %vm1276_vm1, %v7901_v30  ;;  %6559 = vmatprep.subr.bf16.mxu0 %v6558_v57  ;;  %v5056_v30 = vld [vmem:[%s9678_s5 + $0x3c0] sm:$0xff]  ;;  %v5047_v57 = vld [vmem:[%s9678_s5 + $0x378] sm:$0xff] }
 0x52b   : > { %4914 = vmatmul.mubr.msk.f32.gmra.mrb[88].mxu1 %vm1276_vm1, %v8402_v42  ;;  %6033 = vmatprep.mubr.msk.f32.mxu0 %vm1276_vm1, %v7905_v32  ;;  %v6566_v32 = vpack.c.bf16 %v5057_v11, %v5056_v30  ;;  %v5071_v30 = vld [vmem:[%s9678_s5 + $0x438] sm:$0xff]  ;;  %v8633_v11 = vld [vmem:[%s7821_s21 + $0x70] sm:$0xff] }
 0x52c   : > { %2482 = vmatprep.mubr.f32.mxu1 %v6920_v26  ;;  %6106 = vmatpush3.msra.mxu1 %v6801_v15  ;;  %v6592_v15 = vpack.c.bf16 %v5071_v30, %v5070_v8 }
 0x52d   : > { %6561 = vmatpush3.bf16.msra.mxu0 %v6560_v4  ;;  %v5069_v4 = vld [vmem:[%s9678_s5 + $0x428] sm:$0xff] }
 0x52e   : > { %6034 = vmatmul.mubr.msk.f32.gmra.mrb[60].mxu0 %vm1276_vm1, %v7926_v40  ;;  %6563 = vmatprep.subr.bf16.mxu0 %v6562_v20  ;;  %v5058_v40 = vld [vmem:[%s9678_s5 + $0x3d0] sm:$0xff]  ;;  %v8618_v20 = vld [vmem:[%s7821_s21 + $0x68] sm:$0xff]  ;;  %v6589_v7 = vpack.c.bf16 %v5069_v4, %v5068_v3 }
 0x52f   : > { %4915 = vmatmul.mubr.msk.f32.gmra.mrb[90].mxu1 %vm1276_vm1, %v8466_v36  ;;  %6036 = vmatprep.mubr.msk.f32.mxu0 %vm1276_vm1, %v7930_v41  ;;  %v6570_v45 = vpack.c.bf16 %v5059_v37, %v5058_v40  ;;  %v5042_v41 = vld [vmem:[%s9678_s5 + $0x350] sm:$0xff]  ;;  %v5075_v37 = vld [vmem:[%s9678_s5 + $0x458] sm:$0xff] }
 0x530   : > { %2488 = vmatprep.mubr.f32.mxu1 %v6920_v26  ;;  %v6572_v44 = vpack.c.bf16 %v5043_v38, %v5042_v41  ;;  %v5074_v40 = vld [vmem:[%s9678_s5 + $0x450] sm:$0xff]  ;;  %v5076_v41 = vld [vmem:[%s9678_s5 + $0x460] sm:$0xff]  ;;  %v5077_v38 = vld [vmem:[%s9678_s5 + $0x468] sm:$0xff] }
 0x531   : > { %6565 = vmatpush3.bf16.msra.mxu0 %v6564_v6  ;;  %v5072_v6 = vld [vmem:[%s9678_s5 + $0x440] sm:$0xff] }
 0x532   : > { %6037 = vmatmul.mubr.msk.f32.gmra.mrb[62].mxu0 %vm1276_vm1, %v7951_v49  ;;  %6567 = vmatprep.subr.bf16.mxu0 %v6566_v32  ;;  %v5060_v49 = vld [vmem:[%s9678_s5 + $0x3e0] sm:$0xff]  ;;  %v5073_v32 = vld [vmem:[%s9678_s5 + $0x448] sm:$0xff] }
 0x533   : > { %4916 = vmatmul.mubr.msk.f32.gmra.mrb[92].mxu1 %vm1276_vm1, %v8488_v43  ;;  %6039 = vmatprep.mubr.msk.f32.mxu0 %vm1276_vm1, %v7955_v52  ;;  %v6574_v46 = vpack.c.bf16 %v5061_v17, %v5060_v49  ;;  %v5044_v52 = vld [vmem:[%s9678_s5 + $0x360] sm:$0xff]  ;;  %v6595_v35 = vpack.c.bf16 %v5073_v32, %v5072_v6  ;;  %v8674_v49 = vld [vmem:[%s7821_s21 + $0x88] sm:$0xff]  ;;  %v6601_v17 = vpack.c.bf16 %v5077_v38, %v5076_v41 }
 0x534   : > { %2494 = vmatprep.mubr.f32.mxu1 %v6920_v26  ;;  %v6576_v53 = vpack.c.bf16 %v5045_v16, %v5044_v52  ;;  %v8687_v52 = vld [vmem:[%s7821_s21 + $0x90] sm:$0xff] }
 0x535   : > { %6569 = vmatpush3.bf16.msra.mxu0 %v6568_v39  ;;  %v8661_v39 = vld [vmem:[%s7821_s21 + $0x80] sm:$0xff] }
 0x536   : > { %6040 = vmatmul.mubr.msk.f32.gmra.mrb[64].mxu0 %vm1276_vm1, %v7976_v62  ;;  %6571 = vmatprep.subr.bf16.mxu0 %v6570_v45  ;;  %v5062_v62 = vld [vmem:[%s9678_s5 + $0x3f0] sm:$0xff]  ;;  %v6598_v45 = vpack.c.bf16 %v5075_v37, %v5074_v40 }
 0x537   : > { %4917 = vmatmul.mubr.msk.f32.gmra.mrb[94].mxu1 %vm1276_vm1, %v8510_v59  ;;  %6042 = vmatprep.mubr.msk.f32.mxu0 %vm1276_vm1, %v7980_v1  ;;  %v6578_v56 = vpack.c.bf16 %v5063_v48, %v5062_v62  ;;  %v5046_v1 = vld [vmem:[%s9678_s5 + $0x370] sm:$0xff]  ;;  %v8694_v62 = vld [vmem:[%s7821_s21 + $0x98] sm:$0xff]  ;;  %v8702_v48 = vld [vmem:[%s7821_s21 + $0xa0] sm:$0xff] }
 0x538   : > { %2500 = vmatprep.mubr.f32.mxu1 %v6920_v26 }
 0x539   : > { %6573 = vmatpush3.bf16.msra.mxu0 %v6572_v44  ;;  %v5078_v44 = vld [vmem:[%s9678_s5 + $0x470] sm:$0xff] }
 0x53a   : > { %6043 = vmatmul.mubr.msk.f32.gmra.mrb[66].mxu0 %vm1276_vm1, %v8001_v63  ;;  %6575 = vmatprep.subr.bf16.mxu0 %v6574_v46  ;;  %v6580_v63 = vpack.c.bf16 %v5047_v57, %v5046_v1  ;;  %v5079_v46 = vld [vmem:[%s9678_s5 + $0x478] sm:$0xff]  ;;  %v8728_v1 = vld [vmem:[%s9682_s9 + $0x30] sm:$0xff] }
 0x53b   : > { %4918 = vmatmul.mubr.msk.f32.gmra.mrb[96].mxu1 %vm1276_vm1, %v8532_v60  ;;  %6045 = vmatprep.mubr.msk.f32.mxu0 %vm1276_vm1, %v8005_v13  ;;  %v8553_v13 = vld [vmem:[%s7821_s21 + $0x40] sm:$0xff]  ;;  %v6604_v16 = vpack.c.bf16 %v5079_v46, %v5078_v44  ;;  %v8733_v57 = vld [vmem:[%s7821_s21 + $0xb0] sm:$0xff] }
 0x53c   : > { %2506 = vmatprep.mubr.f32.mxu1 %v6920_v26 }
 0x53d   : > { %6577 = vmatpush3.bf16.msra.mxu0 %v6576_v53  ;;  %v8713_v53 = vld [vmem:[%s9682_s9 + $0x38] sm:$0xff] }
 0x53e   : > { %6046 = vmatmul.mubr.msk.f32.gmra.mrb[68].mxu0 %vm1276_vm1, %v8020_v10  ;;  %6579 = vmatprep.subr.bf16.mxu0 %v6578_v56  ;;  %v8563_v10 = vld [vmem:[%s7821_s21 + $0x48] sm:$0xff] }
 0x53f   : > { %4919 = vmatmul.mubr.msk.f32.gmra.mrb[98].mxu1 %vm1276_vm1, %v8542_v61  ;;  %6048 = vmatprep.mubr.msk.f32.mxu0 %vm1276_vm1, %v8024_v19  ;;  %v8573_v19 = vld [vmem:[%s7821_s21 + $0x50] sm:$0xff]  ;;  %v8718_v56 = vld [vmem:[%s7821_s21 + $0xa8] sm:$0xff] }
 0x540   : > { %2512 = vmatprep.mubr.f32.mxu1 %v6920_v26 }
 0x541   : > { %6581 = vmatpush3.bf16.msra.mxu0 %v6580_v63  ;;  %v8740_v63 = vld [vmem:[%s7821_s21 + $0xb8] sm:$0xff] }
 0x542   : > { %6049 = vmatmul.mubr.msk.f32.gmra.mrb[70].mxu0 %vm1276_vm1, %v8033_v22  ;;  %6582 = vmatprep.subr.bf16.mxu0 %v6918_v54  ;;  %v5064_v22 = vld [vmem:[%s9678_s5 + $0x400] sm:$0xff] }
 0x543   : > { %4920 = vmatmul.mubr.msk.f32.gmra.mrb[100].mxu1 %vm1276_vm1, %v8553_v13  ;;  %6051 = vmatprep.mubr.msk.f32.mxu0 %vm1276_vm1, %v8037_v23  ;;  %v5065_v23 = vld [vmem:[%s9678_s5 + $0x408] sm:$0xff] }
 0x544   : > { %2518 = vmatprep.mubr.f32.mxu1 %v6920_v26 }
 0x546   : > { %6052 = vmatmul.mubr.msk.f32.gmra.mrb[72].mxu0 %vm1276_vm1, %v8047_v25  ;;  %v8589_v25 = vld [vmem:[%s7821_s21 + $0x58] sm:$0xff] }
 0x547   : > { %4921 = vmatmul.mubr.msk.f32.gmra.mrb[102].mxu1 %vm1276_vm1, %v8563_v10  ;;  %6054 = vmatprep.mubr.msk.f32.mxu0 %vm1276_vm1, %v8051_v27  ;;  %v6583_v27 = vpack.c.bf16 %v5065_v23, %v5064_v22  ;;  %v8746_v22 = vpop.permute.xlu1 %2924 }
 0x548   : > { %2524 = vmatprep.mubr.f32.mxu1 %v6920_v26 }
 0x54a   : > { %6055 = vmatmul.mubr.msk.f32.gmra.mrb[74].mxu0 %vm1276_vm1, %v8060_v29  ;;  %v5066_v29 = vld [vmem:[%s9678_s5 + $0x410] sm:$0xff] }
 0x54b   : > { %4922 = vmatmul.mubr.msk.f32.gmra.mrb[104].mxu1 %vm1276_vm1, %v8573_v19  ;;  %6057 = vmatprep.mubr.msk.f32.mxu0 %vm1276_vm1, %v8064_v33  ;;  %v5067_v33 = vld [vmem:[%s9678_s5 + $0x418] sm:$0xff]  ;;  %v8748_v23 = vpop.permute.xlu1 %3794 }
 0x54c   : > { %2530 = vmatprep.mubr.f32.mxu1 %v6920_v26  ;;  %v6586_v14 = vpack.c.bf16 %v5067_v33, %v5066_v29 }
 0x54e   : > { %6058 = vmatmul.mubr.msk.f32.gmra.mrb[76].mxu0 %vm1276_vm1, %v8073_v34  ;;  %v8603_v34 = vld [vmem:[%s7821_s21 + $0x60] sm:$0xff] }
 0x54f   : > { %4923 = vmatmul.mubr.msk.f32.gmra.mrb[106].mxu1 %vm1276_vm1, %v8589_v25  ;;  %2991 = vmatprep.mubr.f32.mxu0 %v7736_v51 }
 0x550   : > { %2536 = vmatprep.mubr.f32.mxu1 %v6920_v26 }
 0x552   : > { %2992 = vmatmul.mubr.f32.vlgmr.msra.gmra.mrb[78].mxu0 %v7738_v55 }
 0x553   : > { %6584 = vmatpush3.bf16.msra.mxu0 %v6583_v27  ;;  %4924 = vmatmul.mubr.msk.f32.gmra.mrb[108].mxu1 %vm1276_vm1, %v8603_v34  ;;  %v8750_v27 = vpop.permute.xlu1 %2397 }
 0x554   : > { %2996 = vmatprep.mubr.f32.mxu0 %v7742_v0  ;;  %6585 = vmatprep.subr.bf16.mxu0 %v6918_v54 }
 0x555   : > { %2542 = vmatprep.mubr.f32.mxu1 %v6920_v26 }
 0x556   : > { %2997 = vmatmul.mubr.f32.gmra.mrb[80].mxu0 %v7744_v2 }
 0x557   : > { %6587 = vmatpush3.bf16.msra.mxu0 %v6586_v14  ;;  %4925 = vmatmul.mubr.msk.f32.gmra.mrb[110].mxu1 %vm1276_vm1, %v8618_v20 }
 0x558   : > { %3001 = vmatprep.mubr.f32.mxu0 %v7748_v5  ;;  %6588 = vmatprep.subr.bf16.mxu0 %v6918_v54 }
 0x559   : > { %2548 = vmatprep.mubr.f32.mxu1 %v6920_v26 }
 0x55a   : > { %3002 = vmatmul.mubr.f32.gmra.mrb[82].mxu0 %v7750_v50 }
 0x55b   : > { %6590 = vmatpush3.bf16.msra.mxu0 %v6589_v7  ;;  %4926 = vmatmul.mubr.msk.f32.gmra.mrb[112].mxu1 %vm1276_vm1, %v8633_v11 }
 0x55c   : > { %6591 = vmatprep.subr.bf16.mxu0 %v6918_v54  ;;  %2554 = vmatprep.mubr.f32.mxu1 %v6920_v26 }
 0x55d   : > { %6092 = vmatprep.mubr.msk.f32.mxu0 %vm6919_vm0, %v6920_v26 }
 0x55f   : > { %6593 = vmatpush3.bf16.msra.mxu0 %v6592_v15  ;;  %4927 = vmatmul.mubr.msk.f32.gmra.mrb[114].mxu1 %vm1276_vm1, %v8648_v21 }
 0x560   : > { %6594 = vmatprep.subr.bf16.mxu0 %v6918_v54  ;;  %2560 = vmatprep.mubr.f32.mxu1 %v6920_v26 }
 0x563   : > { %6596 = vmatpush3.bf16.msra.mxu0 %v6595_v35  ;;  %4928 = vmatmul.mubr.msk.f32.gmra.mrb[116].mxu1 %vm1276_vm1, %v8661_v39 }
 0x564   : > { %6597 = vmatprep.subr.bf16.mxu0 %v6918_v54  ;;  %2566 = vmatprep.mubr.f32.mxu1 %v6920_v26 }
 0x567   : > { %6599 = vmatpush3.bf16.msra.mxu0 %v6598_v45  ;;  %4929 = vmatmul.mubr.msk.f32.gmra.mrb[118].mxu1 %vm1276_vm1, %v8674_v49 }
 0x568   : > { %6600 = vmatprep.subr.bf16.mxu0 %v6918_v54  ;;  %2572 = vmatprep.mubr.f32.mxu1 %v6920_v26 }
 0x56b   : > { %6602 = vmatpush3.bf16.msra.mxu0 %v6601_v17  ;;  %4930 = vmatmul.mubr.msk.f32.gmra.mrb[120].mxu1 %vm1276_vm1, %v8687_v52 }
 0x56c   : > { %6603 = vmatprep.subr.bf16.mxu0 %v6918_v54  ;;  %2578 = vmatprep.mubr.f32.mxu1 %v6920_v26 }
 0x56f   : > { %6605 = vmatpush3.bf16.msra.mxu0 %v6604_v16  ;;  %4931 = vmatmul.mubr.msk.f32.gmra.mrb[122].mxu1 %vm1276_vm1, %v8694_v62 }
 0x570   : > { %2584 = vmatprep.mubr.f32.mxu1 %v6920_v26  ;;  %6607 = vmatprep.subr.bf16.mxu0 %v7761_v9 }
 0x572   : > { %6093 = vmatmul.mubr.f32.vlgmr.msra.gmra.mrb[84].mxu0 %v7723_v18 }
 0x573   : > { %4932 = vmatmul.mubr.msk.f32.gmra.mrb[124].mxu1 %vm1276_vm1, %v8702_v48  ;;  %6095 = vmatprep.mubr.msk.f32.mxu0 %vm6919_vm0, %v6920_v26 }
 0x574   : > { %2590 = vmatprep.mubr.f32.mxu1 %v6920_v26  ;;  %6609 = vmatpush1.bf16.msra.mxu0 %v7769_v12 }
 0x575   : > { %3100 = vmatprep.subr.mxu0 %v8713_v53 }
 0x576   : > { %6096 = vmatmul.mubr.f32.gmra.mrb[86].mxu0 %v7728_v24 }
 0x577   : > { %4933 = vmatmul.mubr.msk.f32.gmra.mrb[126].mxu1 %vm1276_vm1, %v8718_v56  ;;  %6098 = vmatprep.mubr.msk.f32.mxu0 %vm6919_vm0, %v6920_v26 }
 0x578   : > { %2596 = vmatprep.mubr.f32.mxu1 %v6920_v26  ;;  %3101 = vmatpush1.msra.mxu0 %v8728_v1 }
 0x57a   : > { %6099 = vmatmul.mubr.f32.gmra.mrb[88].mxu0 %v7733_v28 }
 0x57b   : > { %4934 = vmatmul.mubr.msk.f32.gmra.mrb[128].mxu1 %vm1276_vm1, %v8733_v57  ;;  %3160 = vmatprep.mubr.f32.mxu0 %v6920_v26 }
 0x57c   : > { %2602 = vmatprep.mubr.f32.mxu1 %v6920_v26 }
 0x57f   : > { %4935 = vmatmul.mubr.msk.f32.gmra.mrb[130].mxu1 %vm1276_vm1, %v8740_v63 }
 0x580   : > { %6107 = vmatprep.mubr.msk.f32.mxu1 %vm6919_vm0, %v6920_v26 }
 0x5f5   : > { %v6026_v29 = vpop.f32.mrb[54].mxu0 }
 0x5f6   : > { %v2681_v33 = vadd.f32 %v6026_v29, %v8750_v27  ;;  %v2675_v14 = vpop.f32.mrb[55].mxu0  ;;  %v2466_v3 = vpop.f32.mrb[84].mxu1 }
 0x5f7   : > { %v2676_v4 = vadd.f32 %v2675_v14, %v8750_v27  ;;  %v2467_v7 = vadd.f32 %v2466_v3, %v8750_v27  ;;  %v2468_v8 = vpop.f32.mrb[85].mxu1 }
 0x5f8   : > { %4965 = vst [vmem:[%s8193_s24 + $0x268] sm:$0xff] %v2681_v33  ;;  %v2469_v30 = vadd.f32 %v2468_v8, %v8750_v27 }
 0x5f9   : > { %4962 = vst [vmem:[%s8193_s24 + $0x250] sm:$0xff] %v2676_v4  ;;  %v6029_v15 = vpop.f32.mrb[56].mxu0  ;;  %4960 = vst [vmem:[%s8193_s24 + $0x240] sm:$0xff] %v2467_v7 }
 0x5fa   : > { %v2691_v6 = vadd.f32 %v6029_v15, %v8750_v27  ;;  %v2685_v32 = vpop.f32.mrb[57].mxu0  ;;  %4961 = vst [vmem:[%s8193_s24 + $0x248] sm:$0xff] %v2469_v30  ;;  %v2472_v35 = vpop.f32.mrb[86].mxu1 }
 0x5fb   : > { %v2686_v40 = vadd.f32 %v2685_v32, %v8750_v27  ;;  %v2473_v37 = vadd.f32 %v2472_v35, %v8750_v27  ;;  %v2474_v45 = vpop.f32.mrb[87].mxu1 }
 0x5fc   : > { %4971 = vst [vmem:[%s8193_s24 + $0x298] sm:$0xff] %v2691_v6  ;;  %v2475_v41 = vadd.f32 %v2474_v45, %v8750_v27 }
 0x5fd   : > { %4968 = vst [vmem:[%s8193_s24 + $0x280] sm:$0xff] %v2686_v40  ;;  %v6032_v38 = vpop.f32.mrb[58].mxu0  ;;  %4963 = vst [vmem:[%s8193_s24 + $0x258] sm:$0xff] %v2473_v37 }
 0x5fe   : > { %v2701_v17 = vadd.f32 %v6032_v38, %v8750_v27  ;;  %v2695_v44 = vpop.f32.mrb[59].mxu0  ;;  %4964 = vst [vmem:[%s8193_s24 + $0x260] sm:$0xff] %v2475_v41  ;;  %v2478_v46 = vpop.f32.mrb[88].mxu1 }
 0x5ff   : > { %v2696_v16 = vadd.f32 %v2695_v44, %v8750_v27  ;;  %v2479_v29 = vadd.f32 %v2478_v46, %v8750_v27  ;;  %v2480_v33 = vpop.f32.mrb[89].mxu1 }
 0x600   : > { %4977 = vst [vmem:[%s8193_s24 + $0x2c8] sm:$0xff] %v2701_v17  ;;  %v2481_v14 = vadd.f32 %v2480_v33, %v8750_v27 }
 0x601   : > { %4974 = vst [vmem:[%s8193_s24 + $0x2b0] sm:$0xff] %v2696_v16  ;;  %v6035_v3 = vpop.f32.mrb[60].mxu0  ;;  %4966 = vst [vmem:[%s8193_s24 + $0x270] sm:$0xff] %v2479_v29 }
 0x602   : > { %v2711_v4 = vadd.f32 %v6035_v3, %v8750_v27  ;;  %v2705_v7 = vpop.f32.mrb[61].mxu0  ;;  %4967 = vst [vmem:[%s8193_s24 + $0x278] sm:$0xff] %v2481_v14  ;;  %v2484_v8 = vpop.f32.mrb[90].mxu1 }
 0x603   : > { %v2706_v30 = vadd.f32 %v2705_v7, %v8750_v27  ;;  %v2485_v15 = vadd.f32 %v2484_v8, %v8750_v27  ;;  %v2486_v6 = vpop.f32.mrb[91].mxu1 }
 0x604   : > { %4983 = vst [vmem:[%s8193_s24 + $0x2f8] sm:$0xff] %v2711_v4  ;;  %v2487_v32 = vadd.f32 %v2486_v6, %v8750_v27 }
 0x605   : > { %4980 = vst [vmem:[%s8193_s24 + $0x2e0] sm:$0xff] %v2706_v30  ;;  %v6038_v35 = vpop.f32.mrb[62].mxu0  ;;  %4969 = vst [vmem:[%s8193_s24 + $0x288] sm:$0xff] %v2485_v15 }
 0x606   : > { %v2721_v40 = vadd.f32 %v6038_v35, %v8750_v27  ;;  %v2715_v37 = vpop.f32.mrb[63].mxu0  ;;  %4970 = vst [vmem:[%s8193_s24 + $0x290] sm:$0xff] %v2487_v32  ;;  %v2490_v45 = vpop.f32.mrb[92].mxu1 }
 0x607   : > { %v2716_v41 = vadd.f32 %v2715_v37, %v8750_v27  ;;  %v2491_v38 = vadd.f32 %v2490_v45, %v8750_v27  ;;  %v2492_v17 = vpop.f32.mrb[93].mxu1 }
 0x608   : > { %4989 = vst [vmem:[%s8193_s24 + $0x328] sm:$0xff] %v2721_v40  ;;  %v2493_v44 = vadd.f32 %v2492_v17, %v8750_v27 }
 0x609   : > { %4986 = vst [vmem:[%s8193_s24 + $0x310] sm:$0xff] %v2716_v41  ;;  %v6041_v46 = vpop.f32.mrb[64].mxu0  ;;  %4972 = vst [vmem:[%s8193_s24 + $0x2a0] sm:$0xff] %v2491_v38 }
 0x60a   : > { %v2731_v16 = vadd.f32 %v6041_v46, %v8750_v27  ;;  %v2725_v29 = vpop.f32.mrb[65].mxu0  ;;  %4973 = vst [vmem:[%s8193_s24 + $0x2a8] sm:$0xff] %v2493_v44  ;;  %v2496_v33 = vpop.f32.mrb[94].mxu1 }
 0x60b   : > { %v2726_v14 = vadd.f32 %v2725_v29, %v8750_v27  ;;  %v2497_v3 = vadd.f32 %v2496_v33, %v8750_v27  ;;  %v2498_v4 = vpop.f32.mrb[95].mxu1 }
 0x60c   : > { %4995 = vst [vmem:[%s8193_s24 + $0x358] sm:$0xff] %v2731_v16  ;;  %v2499_v7 = vadd.f32 %v2498_v4, %v8750_v27 }
 0x60d   : > { %4992 = vst [vmem:[%s8193_s24 + $0x340] sm:$0xff] %v2726_v14  ;;  %v6044_v8 = vpop.f32.mrb[66].mxu0  ;;  %4975 = vst [vmem:[%s8193_s24 + $0x2b8] sm:$0xff] %v2497_v3 }
 0x60e   : > { %v2741_v30 = vadd.f32 %v6044_v8, %v8750_v27  ;;  %v2735_v15 = vpop.f32.mrb[67].mxu0  ;;  %4976 = vst [vmem:[%s8193_s24 + $0x2c0] sm:$0xff] %v2499_v7  ;;  %v2502_v6 = vpop.f32.mrb[96].mxu1 }
 0x60f   : > { %v2736_v32 = vadd.f32 %v2735_v15, %v8750_v27  ;;  %v2503_v35 = vadd.f32 %v2502_v6, %v8750_v27  ;;  %v2504_v40 = vpop.f32.mrb[97].mxu1 }
 0x610   : > { %5001 = vst [vmem:[%s8193_s24 + $0x388] sm:$0xff] %v2741_v30  ;;  %v2505_v37 = vadd.f32 %v2504_v40, %v8750_v27 }
 0x611   : > { %4998 = vst [vmem:[%s8193_s24 + $0x370] sm:$0xff] %v2736_v32  ;;  %v6047_v45 = vpop.f32.mrb[68].mxu0  ;;  %4978 = vst [vmem:[%s8193_s24 + $0x2d0] sm:$0xff] %v2503_v35 }
 0x612   : > { %v2751_v41 = vadd.f32 %v6047_v45, %v8750_v27  ;;  %v2745_v38 = vpop.f32.mrb[69].mxu0  ;;  %4979 = vst [vmem:[%s8193_s24 + $0x2d8] sm:$0xff] %v2505_v37  ;;  %v2508_v17 = vpop.f32.mrb[98].mxu1 }
 0x613   : > { %v2746_v44 = vadd.f32 %v2745_v38, %v8750_v27  ;;  %v2509_v46 = vadd.f32 %v2508_v17, %v8750_v27  ;;  %v2510_v16 = vpop.f32.mrb[99].mxu1 }
 0x614   : > { %5007 = vst [vmem:[%s8193_s24 + $0x3b8] sm:$0xff] %v2751_v41  ;;  %v2511_v29 = vadd.f32 %v2510_v16, %v8750_v27 }
 0x615   : > { %5004 = vst [vmem:[%s8193_s24 + $0x3a0] sm:$0xff] %v2746_v44  ;;  %v6050_v33 = vpop.f32.mrb[70].mxu0  ;;  %4981 = vst [vmem:[%s8193_s24 + $0x2e8] sm:$0xff] %v2509_v46 }
 0x616   : > { %v2761_v14 = vadd.f32 %v6050_v33, %v8750_v27  ;;  %v2755_v3 = vpop.f32.mrb[71].mxu0  ;;  %4982 = vst [vmem:[%s8193_s24 + $0x2f0] sm:$0xff] %v2511_v29  ;;  %v2514_v4 = vpop.f32.mrb[100].mxu1 }
 0x617   : > { %v2756_v7 = vadd.f32 %v2755_v3, %v8750_v27  ;;  %v2515_v8 = vadd.f32 %v2514_v4, %v8750_v27  ;;  %v2516_v30 = vpop.f32.mrb[101].mxu1 }
 0x618   : > { %5013 = vst [vmem:[%s8193_s24 + $0x3e8] sm:$0xff] %v2761_v14  ;;  %v2517_v15 = vadd.f32 %v2516_v30, %v8750_v27 }
 0x619   : > { %5010 = vst [vmem:[%s8193_s24 + $0x3d0] sm:$0xff] %v2756_v7  ;;  %v6053_v6 = vpop.f32.mrb[72].mxu0  ;;  %4984 = vst [vmem:[%s8193_s24 + $0x300] sm:$0xff] %v2515_v8 }
 0x61a   : > { %v2771_v32 = vadd.f32 %v6053_v6, %v8750_v27  ;;  %v2765_v35 = vpop.f32.mrb[73].mxu0  ;;  %4985 = vst [vmem:[%s8193_s24 + $0x308] sm:$0xff] %v2517_v15  ;;  %v2520_v40 = vpop.f32.mrb[102].mxu1 }
 0x61b   : > { %v2766_v37 = vadd.f32 %v2765_v35, %v8750_v27  ;;  %v2521_v45 = vadd.f32 %v2520_v40, %v8750_v27  ;;  %v2522_v41 = vpop.f32.mrb[103].mxu1 }
 0x61c   : > { %5019 = vst [vmem:[%s8193_s24 + $0x418] sm:$0xff] %v2771_v32  ;;  %v2523_v38 = vadd.f32 %v2522_v41, %v8750_v27 }
 0x61d   : > { %5016 = vst [vmem:[%s8193_s24 + $0x400] sm:$0xff] %v2766_v37  ;;  %v6056_v17 = vpop.f32.mrb[74].mxu0  ;;  %4987 = vst [vmem:[%s8193_s24 + $0x318] sm:$0xff] %v2521_v45 }
 0x61e   : > { %v2781_v44 = vadd.f32 %v6056_v17, %v8750_v27  ;;  %v2775_v46 = vpop.f32.mrb[75].mxu0  ;;  %4988 = vst [vmem:[%s8193_s24 + $0x320] sm:$0xff] %v2523_v38  ;;  %v2526_v16 = vpop.f32.mrb[104].mxu1 }
 0x61f   : > { %v2776_v29 = vadd.f32 %v2775_v46, %v8750_v27  ;;  %v2527_v33 = vadd.f32 %v2526_v16, %v8750_v27  ;;  %v2528_v14 = vpop.f32.mrb[105].mxu1 }
 0x620   : > { %5025 = vst [vmem:[%s8193_s24 + $0x448] sm:$0xff] %v2781_v44  ;;  %v2529_v3 = vadd.f32 %v2528_v14, %v8750_v27 }
 0x621   : > { %5022 = vst [vmem:[%s8193_s24 + $0x430] sm:$0xff] %v2776_v29  ;;  %v6059_v4 = vpop.f32.mrb[76].mxu0  ;;  %4990 = vst [vmem:[%s8193_s24 + $0x330] sm:$0xff] %v2527_v33 }
 0x622   : > { %v2791_v7 = vadd.f32 %v6059_v4, %v8750_v27  ;;  %v2785_v8 = vpop.f32.mrb[77].mxu0  ;;  %4991 = vst [vmem:[%s8193_s24 + $0x338] sm:$0xff] %v2529_v3  ;;  %v2532_v30 = vpop.f32.mrb[106].mxu1 }
 0x623   : > { %v2786_v15 = vadd.f32 %v2785_v8, %v8750_v27  ;;  %v2533_v6 = vadd.f32 %v2532_v30, %v8750_v27  ;;  %v2534_v32 = vpop.f32.mrb[107].mxu1 }
 0x624   : > { %5031 = vst [vmem:[%s8193_s24 + $0x478] sm:$0xff] %v2791_v7  ;;  %v2535_v35 = vadd.f32 %v2534_v32, %v8750_v27 }
 0x625   : > { %5028 = vst [vmem:[%s8193_s24 + $0x460] sm:$0xff] %v2786_v15  ;;  %v5669_v40 = vpop.f32.mrb[78].mxu0  ;;  %4993 = vst [vmem:[%s8193_s24 + $0x348] sm:$0xff] %v2533_v6 }
 0x626   : > { %v5670_v37 = vpop.f32.mrb[79].mxu0  ;;  %4994 = vst [vmem:[%s8193_s24 + $0x350] sm:$0xff] %v2535_v35  ;;  %v2538_v45 = vpop.f32.mrb[108].mxu1 }
 0x627   : > { %v5671_v41 = vadd.f32 %v5670_v37, %v5669_v40  ;;  %v2539_v38 = vadd.f32 %v2538_v45, %v8750_v27  ;;  %v2540_v17 = vpop.f32.mrb[109].mxu1 }
 0x628   : > { %v2541_v44 = vadd.f32 %v2540_v17, %v8750_v27 }
 0x629   : > { %v5672_v46 = vpop.f32.mrb[80].mxu0  ;;  %4996 = vst [vmem:[%s8193_s24 + $0x360] sm:$0xff] %v2539_v38 }
 0x62a   : > { %v5673_v16 = vpop.f32.mrb[81].mxu0  ;;  %4997 = vst [vmem:[%s8193_s24 + $0x368] sm:$0xff] %v2541_v44  ;;  %v2544_v29 = vpop.f32.mrb[110].mxu1 }
 0x62b   : > { %v5674_v33 = vadd.f32 %v5673_v16, %v5672_v46  ;;  %v2545_v14 = vadd.f32 %v2544_v29, %v8750_v27  ;;  %v2546_v3 = vpop.f32.mrb[111].mxu1 }
 0x62c   : > { %v2547_v4 = vadd.f32 %v2546_v3, %v8750_v27 }
 0x62d   : > { %v5675_v7 = vpop.f32.mrb[82].mxu0  ;;  %4999 = vst [vmem:[%s8193_s24 + $0x378] sm:$0xff] %v2545_v14 }
 0x62e   : > { %v5676_v8 = vpop.f32.mrb[83].mxu0  ;;  %5000 = vst [vmem:[%s8193_s24 + $0x380] sm:$0xff] %v2547_v4  ;;  %v2550_v30 = vpop.f32.mrb[112].mxu1 }
 0x62f   : > { %v5677_v15 = vadd.f32 %v5676_v8, %v5675_v7  ;;  %v2551_v6 = vadd.f32 %v2550_v30, %v8750_v27  ;;  %v2552_v32 = vpop.f32.mrb[113].mxu1 }
 0x630   : > { %v2553_v35 = vadd.f32 %v2552_v32, %v8750_v27 }
 0x631   : > { %5002 = vst [vmem:[%s8193_s24 + $0x390] sm:$0xff] %v2551_v6 }
 0x632   : > { %5003 = vst [vmem:[%s8193_s24 + $0x398] sm:$0xff] %v2553_v35  ;;  %v2556_v40 = vpop.f32.mrb[114].mxu1 }
 0x633   : > { %v2557_v37 = vadd.f32 %v2556_v40, %v8750_v27  ;;  %v2558_v45 = vpop.f32.mrb[115].mxu1 }
 0x634   : > { %v2559_v38 = vadd.f32 %v2558_v45, %v8750_v27  ;;  %v2994_v45 = vadd.f32 %v5671_v41, %v8746_v22 }
 0x635   : > { %5005 = vst [vmem:[%s8193_s24 + $0x3a8] sm:$0xff] %v2557_v37 }
 0x636   : > { %5006 = vst [vmem:[%s8193_s24 + $0x3b0] sm:$0xff] %v2559_v38  ;;  %v2562_v17 = vpop.f32.mrb[116].mxu1 }
 0x637   : > { %v2563_v44 = vadd.f32 %v2562_v17, %v8750_v27  ;;  %v2564_v46 = vpop.f32.mrb[117].mxu1 }
 0x638   : > { %v2565_v16 = vadd.f32 %v2564_v46, %v8750_v27 }
 0x639   : > { %5008 = vst [vmem:[%s8193_s24 + $0x3c0] sm:$0xff] %v2563_v44 }
 0x63a   : > { %5009 = vst [vmem:[%s8193_s24 + $0x3c8] sm:$0xff] %v2565_v16  ;;  %v2568_v29 = vpop.f32.mrb[118].mxu1 }
 0x63b   : > { %v2569_v14 = vadd.f32 %v2568_v29, %v8750_v27  ;;  %v2570_v3 = vpop.f32.mrb[119].mxu1 }
 0x63c   : > { %v2571_v4 = vadd.f32 %v2570_v3, %v8750_v27  ;;  %v2999_v3 = vadd.f32 %v5674_v33, %v8746_v22  ;;  %v3004_v33 = vadd.f32 %v5677_v15, %v8746_v22 }
 0x63d   : > { %5011 = vst [vmem:[%s8193_s24 + $0x3d8] sm:$0xff] %v2569_v14 }
 0x63e   : > { %5012 = vst [vmem:[%s8193_s24 + $0x3e0] sm:$0xff] %v2571_v4  ;;  %v2574_v7 = vpop.f32.mrb[120].mxu1 }
 0x63f   : > { %v2575_v8 = vadd.f32 %v2574_v7, %v8750_v27  ;;  %v2576_v30 = vpop.f32.mrb[121].mxu1 }
 0x640   : > { %v2577_v6 = vadd.f32 %v2576_v30, %v8750_v27 }
 0x641   : > { %5014 = vst [vmem:[%s8193_s24 + $0x3f0] sm:$0xff] %v2575_v8 }
 0x642   : > { %5015 = vst [vmem:[%s8193_s24 + $0x3f8] sm:$0xff] %v2577_v6  ;;  %v2580_v32 = vpop.f32.mrb[122].mxu1 }
 0x643   : > { %v2581_v35 = vadd.f32 %v2580_v32, %v8750_v27  ;;  %v2582_v40 = vpop.f32.mrb[123].mxu1 }
 0x644   : > { %v2583_v37 = vadd.f32 %v2582_v40, %v8750_v27 }
 0x645   : > { %5017 = vst [vmem:[%s8193_s24 + $0x408] sm:$0xff] %v2581_v35  ;;  %v3073_v38 = vpop.f32.mrb[84].mxu0 }
 0x646   : > { %5018 = vst [vmem:[%s8193_s24 + $0x410] sm:$0xff] %v2583_v37  ;;  %v3074_v17 = vadd.f32 %v3073_v38, %v2994_v45  ;;  %v6094_v44 = vpop.f32.mrb[85].mxu0  ;;  %v2586_v46 = vpop.f32.mrb[124].mxu1 }
 0x647   : > { %v2587_v16 = vadd.f32 %v2586_v46, %v8750_v27  ;;  %v2588_v29 = vpop.f32.mrb[125].mxu1 }
 0x648   : > { %v2589_v14 = vadd.f32 %v2588_v29, %v8750_v27  ;;  %5082 = vmatmul.mubr.msk.f32.vlgmr.msra.gmra.mrb[90].mxu0 %vm1276_vm1, %v3074_v17  ;;  %6108 = vmatmul.mubr.msk.f32.vlgmr.msra.gmra.mrb[132].mxu1 %vm1276_vm1, %v3074_v17 }
 0x649   : > { %5020 = vst [vmem:[%s8193_s24 + $0x420] sm:$0xff] %v2587_v16  ;;  %v3078_v41 = vpop.f32.mrb[86].mxu0  ;;  %3166 = vmatprep.mubr.f32.mxu0 %v6920_v26  ;;  %6110 = vmatprep.mubr.msk.f32.mxu1 %vm6919_vm0, %v6920_v26 }
 0x64a   : > { %5021 = vst [vmem:[%s8193_s24 + $0x428] sm:$0xff] %v2589_v14  ;;  %v3079_v4 = vadd.f32 %v3078_v41, %v2999_v3  ;;  %v6097_v7 = vpop.f32.mrb[87].mxu0  ;;  %v2592_v8 = vpop.f32.mrb[126].mxu1 }
 0x64b   : > { %v2593_v30 = vadd.f32 %v2592_v8, %v8750_v27  ;;  %v2594_v6 = vpop.f32.mrb[127].mxu1 }
 0x64c   : > { %v2595_v32 = vadd.f32 %v2594_v6, %v8750_v27  ;;  %5083 = vmatmul.mubr.msk.f32.gmra.mrb[92].mxu0 %vm1276_vm1, %v3079_v4  ;;  %6111 = vmatmul.mubr.msk.f32.gmra.mrb[134].mxu1 %vm1276_vm1, %v3079_v4 }
 0x64d   : > { %5023 = vst [vmem:[%s8193_s24 + $0x438] sm:$0xff] %v2593_v30  ;;  %v3083_v35 = vpop.f32.mrb[88].mxu0  ;;  %3172 = vmatprep.mubr.f32.mxu0 %v6920_v26  ;;  %6113 = vmatprep.mubr.msk.f32.mxu1 %vm6919_vm0, %v6920_v26 }
 0x64e   : > { %5024 = vst [vmem:[%s8193_s24 + $0x440] sm:$0xff] %v2595_v32  ;;  %v3084_v40 = vadd.f32 %v3083_v35, %v3004_v33  ;;  %v6100_v37 = vpop.f32.mrb[89].mxu0  ;;  %v2598_v45 = vpop.f32.mrb[128].mxu1 }
 0x64f   : > { %v2599_v38 = vadd.f32 %v2598_v45, %v8750_v27  ;;  %v2600_v17 = vpop.f32.mrb[129].mxu1  ;;  %v5227_v37 = vld [vmem:[%s9678_s5 + $0x508] sm:$0xff] }
 0x650   : > { %v2601_v44 = vadd.f32 %v2600_v17, %v8750_v27  ;;  %5084 = vmatmul.mubr.msk.f32.gmra.mrb[94].mxu0 %vm1276_vm1, %v3084_v40  ;;  %6114 = vmatmul.mubr.msk.f32.gmra.mrb[136].mxu1 %vm1276_vm1, %v3084_v40  ;;  %v5210_v17 = vld [vmem:[%s9678_s5 + $0x480] sm:$0xff] }
 0x651   : > { %5026 = vst [vmem:[%s8193_s24 + $0x450] sm:$0xff] %v2599_v38  ;;  %6122 = vmatprep.mubr.msk.f32.mxu1 %vm1276_vm1, %v8397_v47  ;;  %3334 = vmatprep.mubr.f32.mxu0 %v6920_v26 }
 0x652   : > { %5027 = vst [vmem:[%s8193_s24 + $0x458] sm:$0xff] %v2601_v44  ;;  %v2604_v22 = vpop.f32.mrb[130].mxu1  ;;  %v5211_v44 = vld [vmem:[%s9678_s5 + $0x488] sm:$0xff] }
 0x653   : > { %v2605_v15 = vadd.f32 %v2604_v22, %v8750_v27  ;;  %v2606_v46 = vpop.f32.mrb[131].mxu1  ;;  %v5228_v22 = vld [vmem:[%s9678_s5 + $0x510] sm:$0xff] }
 0x654   : > { %v2607_v16 = vadd.f32 %v2606_v46, %v8750_v27  ;;  %v5226_v27 = vld [vmem:[%s9678_s5 + $0x500] sm:$0xff] }
 0x655   : > { %5029 = vst [vmem:[%s8193_s24 + $0x468] sm:$0xff] %v2605_v15  ;;  %v5229_v15 = vld [vmem:[%s9678_s5 + $0x518] sm:$0xff]  ;;  %v6621_v46 = vpack.c.bf16 %v5227_v37, %v5226_v27  ;;  %v5232_v27 = vld [vmem:[%s9678_s5 + $0x530] sm:$0xff] }
 0x656   : > { %5030 = vst [vmem:[%s8193_s24 + $0x470] sm:$0xff] %v2607_v16  ;;  %v6623_v16 = vpack.c.bf16 %v5211_v44, %v5210_v17  ;;  %v5233_v37 = vld [vmem:[%s9678_s5 + $0x538] sm:$0xff] }
 0x657   : > { %v6633_v44 = vpack.c.bf16 %v5233_v37, %v5232_v27  ;;  %v5238_v27 = vld [vmem:[%s9678_s5 + $0x560] sm:$0xff]  ;;  %v5239_v37 = vld [vmem:[%s9678_s5 + $0x568] sm:$0xff] }
 0x71b   : > { %v3162_v29 = vpop.f32.mrb[90].mxu0  ;;  %v3245_v14 = vpop.f32.mrb[132].mxu1 }
 0x71c   : > { %v3164_v3 = vpop.f32.mrb[91].mxu0  ;;  %v6109_v41 = vpop.f32.mrb[133].mxu1 }
 0x71d   : > { %v5212_v41 = vld [vmem:[%s9678_s5 + $0x490] sm:$0xff] }
 0x71f   : > { %v3168_v4 = vpop.f32.mrb[92].mxu0  ;;  %v3250_v7 = vpop.f32.mrb[134].mxu1 }
 0x720   : > { %v6615_v8 = vpack.c.bf16 %v3168_v4, %v3162_v29  ;;  %v6617_v30 = vpack.c.bf16 %v3250_v7, %v3245_v14  ;;  %v3170_v6 = vpop.f32.mrb[93].mxu0  ;;  %v6112_v32 = vpop.f32.mrb[135].mxu1  ;;  %v5242_v29 = vld [vmem:[%s9678_s5 + $0x580] sm:$0xff]  ;;  %v5243_v14 = vld [vmem:[%s9678_s5 + $0x588] sm:$0xff]  ;;  %v5213_v4 = vld [vmem:[%s9678_s5 + $0x498] sm:$0xff] }
 0x721   : > { %v6613_v33 = vpack.c.bf16 %v3170_v6, %v3164_v3  ;;  %v6625_v3 = vpack.c.bf16 %v5229_v15, %v5228_v22  ;;  %v5230_v7 = vld [vmem:[%s9678_s5 + $0x520] sm:$0xff]  ;;  %v6627_v6 = vpack.c.bf16 %v5213_v4, %v5212_v41  ;;  %v5245_v32 = vld [vmem:[%s9678_s5 + $0x598] sm:$0xff]  ;;  %v5216_v22 = vld [vmem:[%s9678_s5 + $0x4b0] sm:$0xff] }
 0x722   : > { %6618 = vmatprep.subr.bf16.mxu1 %v6617_v30  ;;  %v5217_v15 = vld [vmem:[%s9678_s5 + $0x4b8] sm:$0xff]  ;;  %v5218_v4 = vld [vmem:[%s9678_s5 + $0x4c0] sm:$0xff] }
 0x723   : > { %v3174_v35 = vpop.f32.mrb[94].mxu0  ;;  %v3255_v40 = vpop.f32.mrb[136].mxu1  ;;  %6614 = vmatprep.subr.bf16.mxu0 %v6613_v33  ;;  %6620 = vmatpush3.bf16.msra.mxu1 %v6617_v30  ;;  %v6654_v30 = vpack.c.bf16 %v5243_v14, %v5242_v29  ;;  %v5249_v14 = vld [vmem:[%s9678_s5 + $0x5b8] sm:$0xff] }
 0x724   : > { %v3176_v45 = vpop.f32.mrb[95].mxu0  ;;  %v6115_v38 = vpop.f32.mrb[137].mxu1  ;;  %6616 = vmatpush1.bf16.msra.mxu0 %v6615_v8  ;;  %6120 = vmatprep.subr.mxu1 %v3255_v40  ;;  %v5231_v8 = vld [vmem:[%s9678_s5 + $0x528] sm:$0xff] }
 0x725   : > { %3274 = vmatprep.subr.mxu0 %v3176_v45  ;;  %v6629_v33 = vpack.c.bf16 %v5231_v8, %v5230_v7  ;;  %v5247_v38 = vld [vmem:[%s9678_s5 + $0x5a8] sm:$0xff]  ;;  %v5236_v8 = vld [vmem:[%s9678_s5 + $0x550] sm:$0xff] }
 0x726   : > { %v5219_v7 = vld [vmem:[%s9678_s5 + $0x4c8] sm:$0xff] }
 0x727   : > { %6121 = vmatpush3.msra.mxu1 %v3255_v40  ;;  %v5215_v40 = vld [vmem:[%s9678_s5 + $0x4a8] sm:$0xff] }
 0x728   : > { %3275 = vmatpush1.msra.mxu0 %v3174_v35  ;;  %6123 = vmatmul.mubr.msk.f32.vlgmr.msra.gmra.mrb[138].mxu1 %vm1276_vm1, %v8386_v58  ;;  %v5214_v35 = vld [vmem:[%s9678_s5 + $0x4a0] sm:$0xff] }
 0x729   : > { %5090 = vmatmul.mubr.msk.f32.vlgmr.msra.gmra.mrb[96].mxu0 %vm1276_vm1, %v8397_v47  ;;  %6125 = vmatprep.mubr.msk.f32.mxu1 %vm1276_vm1, %v8402_v42  ;;  %v5244_v47 = vld [vmem:[%s9678_s5 + $0x590] sm:$0xff]  ;;  %v6631_v17 = vpack.c.bf16 %v5215_v40, %v5214_v35  ;;  %v5221_v40 = vld [vmem:[%s9678_s5 + $0x4d8] sm:$0xff] }
 0x72a   : > { %3340 = vmatprep.mubr.f32.mxu0 %v6920_v26  ;;  %6622 = vmatprep.subr.bf16.mxu0 %v6621_v46  ;;  %v6657_v45 = vpack.c.bf16 %v5245_v32, %v5244_v47  ;;  %v5234_v46 = vld [vmem:[%s9678_s5 + $0x540] sm:$0xff]  ;;  %v5251_v47 = vld [vmem:[%s9678_s5 + $0x5c8] sm:$0xff]  ;;  %v6639_v32 = vpack.c.bf16 %v5219_v7, %v5218_v4  ;;  %v5220_v35 = vld [vmem:[%s9678_s5 + $0x4d0] sm:$0xff] }
 0x72b   : > { %6624 = vmatpush3.bf16.msra.mxu0 %v6623_v16  ;;  %6653 = vmatprep.subr.bf16.mxu1 %v6918_v54  ;;  %v5235_v16 = vld [vmem:[%s9678_s5 + $0x548] sm:$0xff]  ;;  %v5256_v7 = vld [vmem:[%s9678_s5 + $0x5f0] sm:$0xff] }
 0x72c   : > { %6126 = vmatmul.mubr.msk.f32.gmra.mrb[140].mxu1 %vm1276_vm1, %v8466_v36  ;;  %6626 = vmatprep.subr.bf16.mxu0 %v6625_v3  ;;  %v6635_v3 = vpack.c.bf16 %v5217_v15, %v5216_v22  ;;  %v6637_v41 = vpack.c.bf16 %v5235_v16, %v5234_v46  ;;  %v5223_v22 = vld [vmem:[%s9678_s5 + $0x4e8] sm:$0xff]  ;;  %v5240_v15 = vld [vmem:[%s9678_s5 + $0x570] sm:$0xff]  ;;  %v5241_v46 = vld [vmem:[%s9678_s5 + $0x578] sm:$0xff] }
 0x72d   : > { %5091 = vmatmul.mubr.msk.f32.gmra.mrb[98].mxu0 %vm1276_vm1, %v8386_v58  ;;  %6128 = vmatprep.mubr.msk.f32.mxu1 %vm1276_vm1, %v8488_v43  ;;  %v5246_v58 = vld [vmem:[%s9678_s5 + $0x5a0] sm:$0xff] }
 0x72e   : > { %3346 = vmatprep.mubr.f32.mxu0 %v6920_v26  ;;  %6655 = vmatpush3.bf16.msra.mxu1 %v6654_v30  ;;  %v6660_v29 = vpack.c.bf16 %v5247_v38, %v5246_v58  ;;  %v5237_v30 = vld [vmem:[%s9678_s5 + $0x558] sm:$0xff]  ;;  %v6643_v38 = vpack.c.bf16 %v5221_v40, %v5220_v35 }
 0x72f   : > { %6628 = vmatpush3.bf16.msra.mxu0 %v6627_v6  ;;  %6656 = vmatprep.subr.bf16.mxu1 %v6918_v54  ;;  %v5253_v58 = vld [vmem:[%s9678_s5 + $0x5d8] sm:$0xff] }
 0x730   : > { %6129 = vmatmul.mubr.msk.f32.gmra.mrb[142].mxu1 %vm1276_vm1, %v8510_v59  ;;  %6630 = vmatprep.subr.bf16.mxu0 %v6629_v33  ;;  %v6641_v33 = vpack.c.bf16 %v5237_v30, %v5236_v8  ;;  %v5257_v8 = vld [vmem:[%s9678_s5 + $0x5f8] sm:$0xff] }
 0x731   : > { %5092 = vmatmul.mubr.msk.f32.gmra.mrb[100].mxu0 %vm1276_vm1, %v8402_v42  ;;  %6131 = vmatprep.mubr.msk.f32.mxu1 %vm1276_vm1, %v8532_v60  ;;  %v5248_v42 = vld [vmem:[%s9678_s5 + $0x5b0] sm:$0xff] }
 0x732   : > { %3352 = vmatprep.mubr.f32.mxu0 %v6920_v26  ;;  %6658 = vmatpush3.bf16.msra.mxu1 %v6657_v45  ;;  %v6663_v6 = vpack.c.bf16 %v5249_v14, %v5248_v42  ;;  %v6649_v14 = vpack.c.bf16 %v5241_v46, %v5240_v15 }
 0x733   : > { %6659 = vmatprep.subr.bf16.mxu1 %v6918_v54  ;;  %6632 = vmatpush3.bf16.msra.mxu0 %v6631_v17  ;;  %v6645_v17 = vpack.c.bf16 %v5239_v37, %v5238_v27 }
 0x734   : > { %6132 = vmatmul.mubr.msk.f32.gmra.mrb[144].mxu1 %vm1276_vm1, %v8542_v61  ;;  %6634 = vmatprep.subr.bf16.mxu0 %v6633_v44  ;;  %v5222_v44 = vld [vmem:[%s9678_s5 + $0x4e0] sm:$0xff] }
 0x735   : > { %5093 = vmatmul.mubr.msk.f32.gmra.mrb[102].mxu0 %vm1276_vm1, %v8466_v36  ;;  %6134 = vmatprep.mubr.msk.f32.mxu1 %vm1276_vm1, %v8553_v13  ;;  %v5250_v36 = vld [vmem:[%s9678_s5 + $0x5c0] sm:$0xff]  ;;  %v6647_v42 = vpack.c.bf16 %v5223_v22, %v5222_v44 }
 0x736   : > { %3358 = vmatprep.mubr.f32.mxu0 %v6920_v26  ;;  %6661 = vmatpush3.bf16.msra.mxu1 %v6660_v29  ;;  %v6666_v45 = vpack.c.bf16 %v5251_v47, %v5250_v36  ;;  %v5255_v29 = vld [vmem:[%s9678_s5 + $0x5e8] sm:$0xff] }
 0x737   : > { %6662 = vmatprep.subr.bf16.mxu1 %v6918_v54  ;;  %6636 = vmatpush3.bf16.msra.mxu0 %v6635_v3  ;;  %v5224_v3 = vld [vmem:[%s9678_s5 + $0x4f0] sm:$0xff] }
 0x738   : > { %6135 = vmatmul.mubr.msk.f32.gmra.mrb[146].mxu1 %vm1276_vm1, %v8563_v10  ;;  %6638 = vmatprep.subr.bf16.mxu0 %v6637_v41  ;;  %v5225_v41 = vld [vmem:[%s9678_s5 + $0x4f8] sm:$0xff] }
 0x739   : > { %5094 = vmatmul.mubr.msk.f32.gmra.mrb[104].mxu0 %vm1276_vm1, %v8488_v43  ;;  %6137 = vmatprep.mubr.msk.f32.mxu1 %vm1276_vm1, %v8573_v19  ;;  %v5252_v43 = vld [vmem:[%s9678_s5 + $0x5d0] sm:$0xff]  ;;  %v6651_v30 = vpack.c.bf16 %v5225_v41, %v5224_v3 }
 0x73a   : > { %3364 = vmatprep.mubr.f32.mxu0 %v6920_v26  ;;  %6664 = vmatpush3.bf16.msra.mxu1 %v6663_v6  ;;  %v6669_v16 = vpack.c.bf16 %v5253_v58, %v5252_v43 }
 0x73b   : > { %6665 = vmatprep.subr.bf16.mxu1 %v6918_v54  ;;  %6640 = vmatpush3.bf16.msra.mxu0 %v6639_v32 }
 0x73c   : > { %6138 = vmatmul.mubr.msk.f32.gmra.mrb[148].mxu1 %vm1276_vm1, %v8589_v25  ;;  %6642 = vmatprep.subr.bf16.mxu0 %v6641_v33 }
 0x73d   : > { %5095 = vmatmul.mubr.msk.f32.gmra.mrb[106].mxu0 %vm1276_vm1, %v8510_v59  ;;  %6140 = vmatprep.mubr.msk.f32.mxu1 %vm1276_vm1, %v8603_v34  ;;  %v5254_v59 = vld [vmem:[%s9678_s5 + $0x5e0] sm:$0xff] }
 0x73e   : > { %3370 = vmatprep.mubr.f32.mxu0 %v6920_v26  ;;  %6667 = vmatpush3.bf16.msra.mxu1 %v6666_v45  ;;  %v6672_v4 = vpack.c.bf16 %v5255_v29, %v5254_v59 }
 0x73f   : > { %6668 = vmatprep.subr.bf16.mxu1 %v6918_v54  ;;  %6644 = vmatpush3.bf16.msra.mxu0 %v6643_v38 }
 0x740   : > { %6141 = vmatmul.mubr.msk.f32.gmra.mrb[150].mxu1 %vm1276_vm1, %v8618_v20  ;;  %6646 = vmatprep.subr.bf16.mxu0 %v6645_v17 }
 0x741   : > { %5096 = vmatmul.mubr.msk.f32.gmra.mrb[108].mxu0 %vm1276_vm1, %v8532_v60  ;;  %6143 = vmatprep.mubr.msk.f32.mxu1 %vm1276_vm1, %v8633_v11  ;;  %v6675_v60 = vpack.c.bf16 %v5257_v8, %v5256_v7 }
 0x742   : > { %3376 = vmatprep.mubr.f32.mxu0 %v6920_v26  ;;  %6670 = vmatpush3.bf16.msra.mxu1 %v6669_v16 }
 0x743   : > { %6671 = vmatprep.subr.bf16.mxu1 %v6918_v54  ;;  %6648 = vmatpush3.bf16.msra.mxu0 %v6647_v42 }
 0x744   : > { %6144 = vmatmul.mubr.msk.f32.gmra.mrb[152].mxu1 %vm1276_vm1, %v8648_v21  ;;  %6650 = vmatprep.subr.bf16.mxu0 %v6649_v14 }
 0x745   : > { %5097 = vmatmul.mubr.msk.f32.gmra.mrb[110].mxu0 %vm1276_vm1, %v8542_v61  ;;  %6146 = vmatprep.mubr.msk.f32.mxu1 %vm1276_vm1, %v8661_v39 }
 0x746   : > { %3382 = vmatprep.mubr.f32.mxu0 %v6920_v26  ;;  %6673 = vmatpush3.bf16.msra.mxu1 %v6672_v4 }
 0x747   : > { %6674 = vmatprep.subr.bf16.mxu1 %v6918_v54  ;;  %6652 = vmatpush3.bf16.msra.mxu0 %v6651_v30 }
 0x748   : > { %6147 = vmatmul.mubr.msk.f32.gmra.mrb[154].mxu1 %vm1276_vm1, %v8674_v49  ;;  %6681 = vmatprep.subr.bf16.mxu0 %v6918_v54  ;;  %v6825_v54 = vld [vmem:[%s9682_s9 + $0x40] sm:$0xff] }
 0x749   : > { %5098 = vmatmul.mubr.msk.f32.gmra.mrb[112].mxu0 %vm1276_vm1, %v8553_v13  ;;  %6149 = vmatprep.mubr.msk.f32.mxu1 %vm1276_vm1, %v8687_v52 }
 0x74a   : > { %3388 = vmatprep.mubr.f32.mxu0 %v6920_v26  ;;  %6676 = vmatpush3.bf16.msra.mxu1 %v6675_v60 }
 0x74b   : > { %6678 = vmatprep.subr.bf16.mxu1 %v7761_v9 }
 0x74c   : > { %6150 = vmatmul.mubr.msk.f32.gmra.mrb[156].mxu1 %vm1276_vm1, %v8694_v62 }
 0x74d   : > { %5099 = vmatmul.mubr.msk.f32.gmra.mrb[114].mxu0 %vm1276_vm1, %v8563_v10  ;;  %6152 = vmatprep.mubr.msk.f32.mxu1 %vm1276_vm1, %v8702_v48 }
 0x74e   : > { %3394 = vmatprep.mubr.f32.mxu0 %v6920_v26 }
 0x750   : > { %6153 = vmatmul.mubr.msk.f32.gmra.mrb[158].mxu1 %vm1276_vm1, %v8718_v56 }
 0x751   : > { %5100 = vmatmul.mubr.msk.f32.gmra.mrb[116].mxu0 %vm1276_vm1, %v8573_v19  ;;  %6155 = vmatprep.mubr.msk.f32.mxu1 %vm1276_vm1, %v8733_v57 }
 0x752   : > { %3400 = vmatprep.mubr.f32.mxu0 %v6920_v26 }
 0x754   : > { %6156 = vmatmul.mubr.msk.f32.gmra.mrb[160].mxu1 %vm1276_vm1, %v8740_v63 }
 0x755   : > { %5101 = vmatmul.mubr.msk.f32.gmra.mrb[118].mxu0 %vm1276_vm1, %v8589_v25  ;;  %6190 = vmatprep.mubr.msk.f32.mxu1 %vm6919_vm0, %v6920_v26 }
 0x756   : > { %3406 = vmatprep.mubr.f32.mxu0 %v6920_v26 }
 0x758   : > { %6191 = vmatmul.mubr.f32.vlgmr.msra.gmra.mrb[162].mxu1 %v7723_v18  ;;  %v9211_v18 = vpop.permute.xlu0 %3267 }
 0x759   : > { %5102 = vmatmul.mubr.msk.f32.gmra.mrb[120].mxu0 %vm1276_vm1, %v8603_v34  ;;  %6193 = vmatprep.mubr.msk.f32.mxu1 %vm6919_vm0, %v6920_v26 }
 0x75a   : > { %3412 = vmatprep.mubr.f32.mxu0 %v6920_v26  ;;  %6680 = vmatpush1.bf16.msra.mxu1 %v7769_v12 }
 0x75b   : > { %3970 = vmatprep.subr.mxu1 %v8713_v53 }
 0x75c   : > { %6194 = vmatmul.mubr.f32.gmra.mrb[164].mxu1 %v7728_v24 }
 0x75d   : > { %5103 = vmatmul.mubr.msk.f32.gmra.mrb[122].mxu0 %vm1276_vm1, %v8618_v20  ;;  %6196 = vmatprep.mubr.msk.f32.mxu1 %vm6919_vm0, %v6920_v26 }
 0x75e   : > { %3418 = vmatprep.mubr.f32.mxu0 %v6920_v26  ;;  %3971 = vmatpush1.msra.mxu1 %v8728_v1 }
 0x760   : > { %6197 = vmatmul.mubr.f32.gmra.mrb[166].mxu1 %v7733_v28 }
 0x761   : > { %5104 = vmatmul.mubr.msk.f32.gmra.mrb[124].mxu0 %vm1276_vm1, %v8633_v11  ;;  %4030 = vmatprep.mubr.f32.mxu1 %v6920_v26 }
 0x762   : > { %3424 = vmatprep.mubr.f32.mxu0 %v6920_v26 }
 0x765   : > { %5105 = vmatmul.mubr.msk.f32.gmra.mrb[126].mxu0 %vm1276_vm1, %v8648_v21 }
 0x766   : > { %3430 = vmatprep.mubr.f32.mxu0 %v6920_v26 }
 0x769   : > { %5106 = vmatmul.mubr.msk.f32.gmra.mrb[128].mxu0 %vm1276_vm1, %v8661_v39 }
 0x76a   : > { %3436 = vmatprep.mubr.f32.mxu0 %v6920_v26 }
 0x76d   : > { %5107 = vmatmul.mubr.msk.f32.gmra.mrb[130].mxu0 %vm1276_vm1, %v8674_v49 }
 0x76e   : > { %3442 = vmatprep.mubr.f32.mxu0 %v6920_v26 }
 0x771   : > { %5108 = vmatmul.mubr.msk.f32.gmra.mrb[132].mxu0 %vm1276_vm1, %v8687_v52 }
 0x772   : > { %3448 = vmatprep.mubr.f32.mxu0 %v6920_v26 }
 0x775   : > { %5109 = vmatmul.mubr.msk.f32.gmra.mrb[134].mxu0 %vm1276_vm1, %v8694_v62 }
 0x776   : > { %3454 = vmatprep.mubr.f32.mxu0 %v6920_v26 }
 0x779   : > { %5110 = vmatmul.mubr.msk.f32.gmra.mrb[136].mxu0 %vm1276_vm1, %v8702_v48 }
 0x77a   : > { %3460 = vmatprep.mubr.f32.mxu0 %v6920_v26 }
 0x77d   : > { %5111 = vmatmul.mubr.msk.f32.gmra.mrb[138].mxu0 %vm1276_vm1, %v8718_v56 }
 0x77e   : > { %3466 = vmatprep.mubr.f32.mxu0 %v6920_v26 }
 0x781   : > { %5112 = vmatmul.mubr.msk.f32.gmra.mrb[140].mxu0 %vm1276_vm1, %v8733_v57 }
 0x782   : > { %3472 = vmatprep.mubr.f32.mxu0 %v6920_v26 }
 0x785   : > { %5113 = vmatmul.mubr.msk.f32.gmra.mrb[142].mxu0 %vm1276_vm1, %v8740_v63 }
 0x786   : > { %3861 = vmatprep.mubr.f32.mxu0 %v7736_v51 }
 0x789   : > { %3862 = vmatmul.mubr.f32.vlgmr.msra.gmra.mrb[144].mxu0 %v7738_v55 }
 0x78a   : > { %3866 = vmatprep.mubr.f32.mxu0 %v7742_v0  ;;  %6683 = vmatpush3.bf16.msra.mxu0 %v7792_v31 }
 0x78b   : > { %6203 = vmatprep.subr.mxu0 %v6920_v26 }
 0x78d   : > { %3867 = vmatmul.mubr.f32.gmra.mrb[146].mxu0 %v7744_v2 }
 0x78e   : > { %3871 = vmatprep.mubr.f32.mxu0 %v7748_v5  ;;  %6204 = vmatpush3.msra.mxu0 %v6825_v54 }
 0x791   : > { %3872 = vmatmul.mubr.f32.gmra.mrb[148].mxu0 %v7750_v50 }
 0x792   : > { %6205 = vmatprep.mubr.msk.f32.mxu0 %vm6919_vm0, %v6920_v26 }
 0x7fb   : > { %v6124_v24 = vpop.f32.mrb[138].mxu1 }
 0x7fc   : > { %v3551_v28 = vadd.f32 %v6124_v24, %v9211_v18  ;;  %v3336_v51 = vpop.f32.mrb[96].mxu0  ;;  %v3545_v55 = vpop.f32.mrb[139].mxu1 }
 0x7fd   : > { %v3337_v0 = vadd.f32 %v3336_v51, %v9211_v18  ;;  %v3546_v2 = vadd.f32 %v3545_v55, %v9211_v18  ;;  %v3338_v5 = vpop.f32.mrb[97].mxu0 }
 0x7fe   : > { %5143 = vst [vmem:[%s8193_s24 + $0x4a8] sm:$0xff] %v3551_v28  ;;  %v3339_v50 = vadd.f32 %v3338_v5, %v9211_v18 }
 0x7ff   : > { %5138 = vst [vmem:[%s8193_s24 + $0x480] sm:$0xff] %v3337_v0  ;;  %5140 = vst [vmem:[%s8193_s24 + $0x490] sm:$0xff] %v3546_v2  ;;  %v6127_v9 = vpop.f32.mrb[140].mxu1 }
 0x800   : > { %5139 = vst [vmem:[%s8193_s24 + $0x488] sm:$0xff] %v3339_v50  ;;  %v3561_v12 = vadd.f32 %v6127_v9, %v9211_v18  ;;  %v3342_v31 = vpop.f32.mrb[98].mxu0  ;;  %v3555_v61 = vpop.f32.mrb[141].mxu1 }
 0x801   : > { %v3343_v13 = vadd.f32 %v3342_v31, %v9211_v18  ;;  %v3556_v10 = vadd.f32 %v3555_v61, %v9211_v18  ;;  %v3344_v19 = vpop.f32.mrb[99].mxu0 }
 0x802   : > { %5149 = vst [vmem:[%s8193_s24 + $0x4d8] sm:$0xff] %v3561_v12  ;;  %v3345_v25 = vadd.f32 %v3344_v19, %v9211_v18 }
 0x803   : > { %5141 = vst [vmem:[%s8193_s24 + $0x498] sm:$0xff] %v3343_v13  ;;  %5146 = vst [vmem:[%s8193_s24 + $0x4c0] sm:$0xff] %v3556_v10  ;;  %v6130_v34 = vpop.f32.mrb[142].mxu1 }
 0x804   : > { %5142 = vst [vmem:[%s8193_s24 + $0x4a0] sm:$0xff] %v3345_v25  ;;  %v3571_v20 = vadd.f32 %v6130_v34, %v9211_v18  ;;  %v3348_v11 = vpop.f32.mrb[100].mxu0  ;;  %v3565_v21 = vpop.f32.mrb[143].mxu1 }
 0x805   : > { %v3349_v39 = vadd.f32 %v3348_v11, %v9211_v18  ;;  %v3566_v49 = vadd.f32 %v3565_v21, %v9211_v18  ;;  %v3350_v52 = vpop.f32.mrb[101].mxu0 }
 0x806   : > { %5155 = vst [vmem:[%s8193_s24 + $0x508] sm:$0xff] %v3571_v20  ;;  %v3351_v62 = vadd.f32 %v3350_v52, %v9211_v18 }
 0x807   : > { %5144 = vst [vmem:[%s8193_s24 + $0x4b0] sm:$0xff] %v3349_v39  ;;  %5152 = vst [vmem:[%s8193_s24 + $0x4f0] sm:$0xff] %v3566_v49  ;;  %v6133_v48 = vpop.f32.mrb[144].mxu1 }
 0x808   : > { %5145 = vst [vmem:[%s8193_s24 + $0x4b8] sm:$0xff] %v3351_v62  ;;  %v3581_v53 = vadd.f32 %v6133_v48, %v9211_v18  ;;  %v3354_v56 = vpop.f32.mrb[102].mxu0  ;;  %v3575_v1 = vpop.f32.mrb[145].mxu1 }
 0x809   : > { %v3355_v57 = vadd.f32 %v3354_v56, %v9211_v18  ;;  %v3576_v63 = vadd.f32 %v3575_v1, %v9211_v18  ;;  %v3356_v6 = vpop.f32.mrb[103].mxu0 }
 0x80a   : > { %5161 = vst [vmem:[%s8193_s24 + $0x538] sm:$0xff] %v3581_v53  ;;  %v3357_v36 = vadd.f32 %v3356_v6, %v9211_v18 }
 0x80b   : > { %5147 = vst [vmem:[%s8193_s24 + $0x4c8] sm:$0xff] %v3355_v57  ;;  %5158 = vst [vmem:[%s8193_s24 + $0x520] sm:$0xff] %v3576_v63  ;;  %v6136_v47 = vpop.f32.mrb[146].mxu1 }
 0x80c   : > { %5148 = vst [vmem:[%s8193_s24 + $0x4d0] sm:$0xff] %v3357_v36  ;;  %v3591_v32 = vadd.f32 %v6136_v47, %v9211_v18  ;;  %v3360_v33 = vpop.f32.mrb[104].mxu0  ;;  %v3585_v35 = vpop.f32.mrb[147].mxu1 }
 0x80d   : > { %v3361_v40 = vadd.f32 %v3360_v33, %v9211_v18  ;;  %v3586_v27 = vadd.f32 %v3585_v35, %v9211_v18  ;;  %v3362_v37 = vpop.f32.mrb[105].mxu0 }
 0x80e   : > { %5167 = vst [vmem:[%s8193_s24 + $0x568] sm:$0xff] %v3591_v32  ;;  %v3363_v45 = vadd.f32 %v3362_v37, %v9211_v18 }
 0x80f   : > { %5150 = vst [vmem:[%s8193_s24 + $0x4e0] sm:$0xff] %v3361_v40  ;;  %5164 = vst [vmem:[%s8193_s24 + $0x550] sm:$0xff] %v3586_v27  ;;  %v6139_v43 = vpop.f32.mrb[148].mxu1 }
 0x810   : > { %5151 = vst [vmem:[%s8193_s24 + $0x4e8] sm:$0xff] %v3363_v45  ;;  %v3601_v58 = vadd.f32 %v6139_v43, %v9211_v18  ;;  %v3366_v38 = vpop.f32.mrb[106].mxu0  ;;  %v3595_v17 = vpop.f32.mrb[149].mxu1 }
 0x811   : > { %v3367_v44 = vadd.f32 %v3366_v38, %v9211_v18  ;;  %v3596_v22 = vadd.f32 %v3595_v17, %v9211_v18  ;;  %v3368_v15 = vpop.f32.mrb[107].mxu0 }
 0x812   : > { %5173 = vst [vmem:[%s8193_s24 + $0x598] sm:$0xff] %v3601_v58  ;;  %v3369_v46 = vadd.f32 %v3368_v15, %v9211_v18 }
 0x813   : > { %5153 = vst [vmem:[%s8193_s24 + $0x4f8] sm:$0xff] %v3367_v44  ;;  %5170 = vst [vmem:[%s8193_s24 + $0x580] sm:$0xff] %v3596_v22  ;;  %v6142_v16 = vpop.f32.mrb[150].mxu1 }
 0x814   : > { %5154 = vst [vmem:[%s8193_s24 + $0x500] sm:$0xff] %v3369_v46  ;;  %v3611_v59 = vadd.f32 %v6142_v16, %v9211_v18  ;;  %v3372_v29 = vpop.f32.mrb[108].mxu0  ;;  %v3605_v42 = vpop.f32.mrb[151].mxu1 }
 0x815   : > { %v3373_v14 = vadd.f32 %v3372_v29, %v9211_v18  ;;  %v3606_v3 = vadd.f32 %v3605_v42, %v9211_v18  ;;  %v3374_v41 = vpop.f32.mrb[109].mxu0 }
 0x816   : > { %5179 = vst [vmem:[%s8193_s24 + $0x5c8] sm:$0xff] %v3611_v59  ;;  %v3375_v4 = vadd.f32 %v3374_v41, %v9211_v18 }
 0x817   : > { %5156 = vst [vmem:[%s8193_s24 + $0x510] sm:$0xff] %v3373_v14  ;;  %5176 = vst [vmem:[%s8193_s24 + $0x5b0] sm:$0xff] %v3606_v3  ;;  %v6145_v7 = vpop.f32.mrb[152].mxu1 }
 0x818   : > { %5157 = vst [vmem:[%s8193_s24 + $0x518] sm:$0xff] %v3375_v4  ;;  %v3621_v8 = vadd.f32 %v6145_v7, %v9211_v18  ;;  %v3378_v30 = vpop.f32.mrb[110].mxu0  ;;  %v3615_v60 = vpop.f32.mrb[153].mxu1 }
 0x819   : > { %v3379_v54 = vadd.f32 %v3378_v30, %v9211_v18  ;;  %v3616_v24 = vadd.f32 %v3615_v60, %v9211_v18  ;;  %v3380_v28 = vpop.f32.mrb[111].mxu0 }
 0x81a   : > { %5185 = vst [vmem:[%s8193_s24 + $0x5f8] sm:$0xff] %v3621_v8  ;;  %v3381_v51 = vadd.f32 %v3380_v28, %v9211_v18 }
 0x81b   : > { %5159 = vst [vmem:[%s8193_s24 + $0x528] sm:$0xff] %v3379_v54  ;;  %5182 = vst [vmem:[%s8193_s24 + $0x5e0] sm:$0xff] %v3616_v24  ;;  %v6148_v55 = vpop.f32.mrb[154].mxu1 }
 0x81c   : > { %5160 = vst [vmem:[%s8193_s24 + $0x530] sm:$0xff] %v3381_v51  ;;  %v3631_v0 = vadd.f32 %v6148_v55, %v9211_v18  ;;  %v3384_v2 = vpop.f32.mrb[112].mxu0  ;;  %v3625_v5 = vpop.f32.mrb[155].mxu1 }
 0x81d   : > { %v3385_v50 = vadd.f32 %v3384_v2, %v9211_v18  ;;  %v3626_v9 = vadd.f32 %v3625_v5, %v9211_v18  ;;  %v3386_v12 = vpop.f32.mrb[113].mxu0 }
 0x81e   : > { %5191 = vst [vmem:[%s8193_s24 + $0x628] sm:$0xff] %v3631_v0  ;;  %v3387_v31 = vadd.f32 %v3386_v12, %v9211_v18 }
 0x81f   : > { %5162 = vst [vmem:[%s8193_s24 + $0x540] sm:$0xff] %v3385_v50  ;;  %5188 = vst [vmem:[%s8193_s24 + $0x610] sm:$0xff] %v3626_v9  ;;  %v6151_v61 = vpop.f32.mrb[156].mxu1 }
 0x820   : > { %5163 = vst [vmem:[%s8193_s24 + $0x548] sm:$0xff] %v3387_v31  ;;  %v3641_v13 = vadd.f32 %v6151_v61, %v9211_v18  ;;  %v3390_v10 = vpop.f32.mrb[114].mxu0  ;;  %v3635_v19 = vpop.f32.mrb[157].mxu1 }
 0x821   : > { %v3391_v25 = vadd.f32 %v3390_v10, %v9211_v18  ;;  %v3636_v34 = vadd.f32 %v3635_v19, %v9211_v18  ;;  %v3392_v20 = vpop.f32.mrb[115].mxu0 }
 0x822   : > { %5197 = vst [vmem:[%s8193_s24 + $0x658] sm:$0xff] %v3641_v13  ;;  %v3393_v11 = vadd.f32 %v3392_v20, %v9211_v18 }
 0x823   : > { %5165 = vst [vmem:[%s8193_s24 + $0x558] sm:$0xff] %v3391_v25  ;;  %5194 = vst [vmem:[%s8193_s24 + $0x640] sm:$0xff] %v3636_v34  ;;  %v6154_v21 = vpop.f32.mrb[158].mxu1 }
 0x824   : > { %5166 = vst [vmem:[%s8193_s24 + $0x560] sm:$0xff] %v3393_v11  ;;  %v3651_v39 = vadd.f32 %v6154_v21, %v9211_v18  ;;  %v3396_v49 = vpop.f32.mrb[116].mxu0  ;;  %v3645_v52 = vpop.f32.mrb[159].mxu1 }
 0x825   : > { %v3397_v62 = vadd.f32 %v3396_v49, %v9211_v18  ;;  %v3646_v48 = vadd.f32 %v3645_v52, %v9211_v18  ;;  %v3398_v53 = vpop.f32.mrb[117].mxu0 }
 0x826   : > { %5203 = vst [vmem:[%s8193_s24 + $0x688] sm:$0xff] %v3651_v39  ;;  %v3399_v56 = vadd.f32 %v3398_v53, %v9211_v18 }
 0x827   : > { %5168 = vst [vmem:[%s8193_s24 + $0x570] sm:$0xff] %v3397_v62  ;;  %5200 = vst [vmem:[%s8193_s24 + $0x670] sm:$0xff] %v3646_v48  ;;  %v6157_v1 = vpop.f32.mrb[160].mxu1 }
 0x828   : > { %5169 = vst [vmem:[%s8193_s24 + $0x578] sm:$0xff] %v3399_v56  ;;  %v3661_v57 = vadd.f32 %v6157_v1, %v9211_v18  ;;  %v3402_v63 = vpop.f32.mrb[118].mxu0  ;;  %v3655_v6 = vpop.f32.mrb[161].mxu1 }
 0x829   : > { %v3403_v36 = vadd.f32 %v3402_v63, %v9211_v18  ;;  %v3656_v47 = vadd.f32 %v3655_v6, %v9211_v18  ;;  %v3404_v32 = vpop.f32.mrb[119].mxu0 }
 0x82a   : > { %5209 = vst [vmem:[%s8193_s24 + $0x6b8] sm:$0xff] %v3661_v57  ;;  %v3405_v33 = vadd.f32 %v3404_v32, %v9211_v18 }
 0x82b   : > { %5171 = vst [vmem:[%s8193_s24 + $0x588] sm:$0xff] %v3403_v36  ;;  %5206 = vst [vmem:[%s8193_s24 + $0x6a0] sm:$0xff] %v3656_v47  ;;  %v9308_v35 = vpop.f32.mrb[162].mxu1 }
 0x82c   : > { %5172 = vst [vmem:[%s8193_s24 + $0x590] sm:$0xff] %v3405_v33  ;;  %v3408_v40 = vpop.f32.mrb[120].mxu0  ;;  %v6192_v27 = vpop.f32.mrb[163].mxu1 }
 0x82d   : > { %v3409_v37 = vadd.f32 %v3408_v40, %v9211_v18  ;;  %v3410_v45 = vpop.f32.mrb[121].mxu0 }
 0x82e   : > { %v3411_v43 = vadd.f32 %v3410_v45, %v9211_v18 }
 0x82f   : > { %5174 = vst [vmem:[%s8193_s24 + $0x5a0] sm:$0xff] %v3409_v37  ;;  %v9314_v58 = vpop.f32.mrb[164].mxu1 }
 0x830   : > { %5175 = vst [vmem:[%s8193_s24 + $0x5a8] sm:$0xff] %v3411_v43  ;;  %v3414_v38 = vpop.f32.mrb[122].mxu0  ;;  %v6195_v17 = vpop.f32.mrb[165].mxu1 }
 0x831   : > { %v3415_v44 = vadd.f32 %v3414_v38, %v9211_v18  ;;  %v3416_v22 = vpop.f32.mrb[123].mxu0  ;;  %v6826_v17 = vld [vmem:[%s7821_s21] sm:$0xff] }
 0x832   : > { %v3417_v15 = vadd.f32 %v3416_v22, %v9211_v18 }
 0x833   : > { %5177 = vst [vmem:[%s8193_s24 + $0x5b8] sm:$0xff] %v3415_v44  ;;  %v9320_v46 = vpop.f32.mrb[166].mxu1 }
 0x834   : > { %5178 = vst [vmem:[%s8193_s24 + $0x5c0] sm:$0xff] %v3417_v15  ;;  %v3420_v16 = vpop.f32.mrb[124].mxu0  ;;  %v6198_v59 = vpop.f32.mrb[167].mxu1 }
 0x835   : > { %v3421_v29 = vadd.f32 %v3420_v16, %v9211_v18  ;;  %v3422_v42 = vpop.f32.mrb[125].mxu0 }
 0x836   : > { %v3423_v14 = vadd.f32 %v3422_v42, %v9211_v18 }
 0x837   : > { %5180 = vst [vmem:[%s8193_s24 + $0x5d0] sm:$0xff] %v3421_v29 }
 0x838   : > { %5181 = vst [vmem:[%s8193_s24 + $0x5d8] sm:$0xff] %v3423_v14  ;;  %v3426_v3 = vpop.f32.mrb[126].mxu0 }
 0x839   : > { %v3427_v41 = vadd.f32 %v3426_v3, %v9211_v18  ;;  %v3428_v4 = vpop.f32.mrb[127].mxu0 }
 0x83a   : > { %v3429_v7 = vadd.f32 %v3428_v4, %v9211_v18 }
 0x83b   : > { %5183 = vst [vmem:[%s8193_s24 + $0x5e8] sm:$0xff] %v3427_v41 }
 0x83c   : > { %5184 = vst [vmem:[%s8193_s24 + $0x5f0] sm:$0xff] %v3429_v7  ;;  %v3432_v8 = vpop.f32.mrb[128].mxu0 }
 0x83d   : > { %v3433_v30 = vadd.f32 %v3432_v8, %v9211_v18  ;;  %v3434_v60 = vpop.f32.mrb[129].mxu0  ;;  %v6827_v8 = vld [vmem:[%s7821_s21 + $0x8] sm:$0xff] }
 0x83e   : > { %v3435_v54 = vadd.f32 %v3434_v60, %v9211_v18  ;;  %v6829_v60 = vld [vmem:[%s7821_s21 + $0x18] sm:$0xff] }
 0x83f   : > { %5186 = vst [vmem:[%s8193_s24 + $0x600] sm:$0xff] %v3433_v30  ;;  %v6828_v30 = vld [vmem:[%s7821_s21 + $0x10] sm:$0xff] }
 0x840   : > { %5187 = vst [vmem:[%s8193_s24 + $0x608] sm:$0xff] %v3435_v54  ;;  %v3438_v24 = vpop.f32.mrb[130].mxu0  ;;  %v6830_v54 = vld [vmem:[%s7821_s21 + $0x20] sm:$0xff] }
 0x841   : > { %v3439_v28 = vadd.f32 %v3438_v24, %v9211_v18  ;;  %v3440_v51 = vpop.f32.mrb[131].mxu0  ;;  %v6831_v24 = vld [vmem:[%s7821_s21 + $0x28] sm:$0xff] }
 0x842   : > { %v3441_v55 = vadd.f32 %v3440_v51, %v9211_v18  ;;  %v6833_v51 = vld [vmem:[%s7821_s21 + $0x38] sm:$0xff] }
 0x843   : > { %5189 = vst [vmem:[%s8193_s24 + $0x618] sm:$0xff] %v3439_v28  ;;  %v6832_v28 = vld [vmem:[%s7821_s21 + $0x30] sm:$0xff] }
 0x844   : > { %5190 = vst [vmem:[%s8193_s24 + $0x620] sm:$0xff] %v3441_v55  ;;  %v3444_v0 = vpop.f32.mrb[132].mxu0  ;;  %v6834_v55 = vld [vmem:[%s7821_s21 + $0x40] sm:$0xff] }
 0x845   : > { %v3445_v2 = vadd.f32 %v3444_v0, %v9211_v18  ;;  %v3446_v5 = vpop.f32.mrb[133].mxu0  ;;  %v6835_v0 = vld [vmem:[%s7821_s21 + $0x48] sm:$0xff] }
 0x846   : > { %v3447_v50 = vadd.f32 %v3446_v5, %v9211_v18  ;;  %v6837_v5 = vld [vmem:[%s7821_s21 + $0x58] sm:$0xff] }
 0x847   : > { %5192 = vst [vmem:[%s8193_s24 + $0x630] sm:$0xff] %v3445_v2  ;;  %v6836_v2 = vld [vmem:[%s7821_s21 + $0x50] sm:$0xff] }
 0x848   : > { %5193 = vst [vmem:[%s8193_s24 + $0x638] sm:$0xff] %v3447_v50  ;;  %v3450_v9 = vpop.f32.mrb[134].mxu0  ;;  %v6838_v50 = vld [vmem:[%s7821_s21 + $0x60] sm:$0xff] }
 0x849   : > { %v3451_v12 = vadd.f32 %v3450_v9, %v9211_v18  ;;  %v3452_v31 = vpop.f32.mrb[135].mxu0  ;;  %v6839_v9 = vld [vmem:[%s7821_s21 + $0x68] sm:$0xff] }
 0x84a   : > { %v3453_v61 = vadd.f32 %v3452_v31, %v9211_v18  ;;  %v6841_v31 = vld [vmem:[%s7821_s21 + $0x78] sm:$0xff] }
 0x84b   : > { %5195 = vst [vmem:[%s8193_s24 + $0x648] sm:$0xff] %v3451_v12  ;;  %v6840_v12 = vld [vmem:[%s7821_s21 + $0x70] sm:$0xff] }
 0x84c   : > { %5196 = vst [vmem:[%s8193_s24 + $0x650] sm:$0xff] %v3453_v61  ;;  %v3456_v13 = vpop.f32.mrb[136].mxu0  ;;  %v6842_v61 = vld [vmem:[%s7821_s21 + $0x80] sm:$0xff] }
 0x84d   : > { %v3457_v10 = vadd.f32 %v3456_v13, %v9211_v18  ;;  %v3458_v19 = vpop.f32.mrb[137].mxu0  ;;  %v6843_v13 = vld [vmem:[%s7821_s21 + $0x88] sm:$0xff] }
 0x84e   : > { %v3459_v25 = vadd.f32 %v3458_v19, %v9211_v18  ;;  %v6845_v19 = vld [vmem:[%s7821_s21 + $0x98] sm:$0xff] }
 0x84f   : > { %5198 = vst [vmem:[%s8193_s24 + $0x660] sm:$0xff] %v3457_v10  ;;  %v6844_v10 = vld [vmem:[%s7821_s21 + $0x90] sm:$0xff] }
 0x850   : > { %5199 = vst [vmem:[%s8193_s24 + $0x668] sm:$0xff] %v3459_v25  ;;  %v3462_v34 = vpop.f32.mrb[138].mxu0  ;;  %v6846_v25 = vld [vmem:[%s7821_s21 + $0xa0] sm:$0xff] }
 0x851   : > { %v3463_v20 = vadd.f32 %v3462_v34, %v9211_v18  ;;  %v3464_v11 = vpop.f32.mrb[139].mxu0  ;;  %v6847_v34 = vld [vmem:[%s7821_s21 + $0xa8] sm:$0xff] }
 0x852   : > { %v3465_v21 = vadd.f32 %v3464_v11, %v9211_v18  ;;  %v6849_v11 = vld [vmem:[%s7821_s21 + $0xb8] sm:$0xff] }
 0x853   : > { %5201 = vst [vmem:[%s8193_s24 + $0x678] sm:$0xff] %v3463_v20  ;;  %v6848_v20 = vld [vmem:[%s7821_s21 + $0xb0] sm:$0xff]  ;;  %s4608_s21 = scalar_lea.sflag [#allocation3], %s435_s13 }
 0x854   : > { %5202 = vst [vmem:[%s8193_s24 + $0x680] sm:$0xff] %v3465_v21  ;;  %v3468_v39 = vpop.f32.mrb[140].mxu0  ;;  %v9477_v21 = vpop.permute.xlu1 %4137 }
 0x855   : > { %v3469_v49 = vadd.f32 %v3468_v39, %v9211_v18  ;;  %v3470_v52 = vpop.f32.mrb[141].mxu0 }
 0x856   : > { %v3471_v62 = vadd.f32 %v3470_v52, %v9211_v18 }
 0x857   : > { %5204 = vst [vmem:[%s8193_s24 + $0x690] sm:$0xff] %v3469_v49 }
 0x858   : > { %5205 = vst [vmem:[%s8193_s24 + $0x698] sm:$0xff] %v3471_v62  ;;  %v3474_v48 = vpop.f32.mrb[142].mxu0 }
 0x859   : > { %v3475_v53 = vadd.f32 %v3474_v48, %v9211_v18  ;;  %v3476_v56 = vpop.f32.mrb[143].mxu0 }
 0x85a   : > { %v3477_v1 = vadd.f32 %v3476_v56, %v9211_v18 }
 0x85b   : > { %5207 = vst [vmem:[%s8193_s24 + $0x6a8] sm:$0xff] %v3475_v53 }
 0x85c   : > { %5208 = vst [vmem:[%s8193_s24 + $0x6b0] sm:$0xff] %v3477_v1  ;;  %v5762_v57 = vpop.f32.mrb[144].mxu0 }
 0x85d   : > { %v5763_v63 = vpop.f32.mrb[145].mxu0 }
 0x85e   : > { %v5764_v6 = vadd.f32 %v5763_v63, %v5762_v57 }
 0x860   : > { %v3864_v36 = vadd.f32 %v5764_v6, %v8748_v23  ;;  %v5765_v47 = vpop.f32.mrb[146].mxu0 }
 0x861   : > { %v5766_v32 = vpop.f32.mrb[147].mxu0 }
 0x862   : > { %v3944_v33 = vadd.f32 %v9308_v35, %v3864_v36  ;;  %v5767_v40 = vadd.f32 %v5766_v32, %v5765_v47 }
 0x864   : > { %v3869_v27 = vadd.f32 %v5767_v40, %v8748_v23  ;;  %v5768_v37 = vpop.f32.mrb[148].mxu0  ;;  %5260 = vmatmul.mubr.msk.f32.vlgmr.msra.gmra.mrb[168].mxu1 %vm1276_vm1, %v3944_v33  ;;  %6206 = vmatmul.mubr.msk.f32.vlgmr.msra.gmra.mrb[150].mxu0 %vm1276_vm1, %v3944_v33 }
 0x865   : > { %v5769_v18 = vpop.f32.mrb[149].mxu0  ;;  %4036 = vmatprep.mubr.f32.mxu1 %v6920_v26  ;;  %6208 = vmatprep.mubr.msk.f32.mxu0 %vm6919_vm0, %v6920_v26 }
 0x866   : > { %v3949_v45 = vadd.f32 %v9314_v58, %v3869_v27  ;;  %v5770_v43 = vadd.f32 %v5769_v18, %v5768_v37 }
 0x868   : > { %v3874_v35 = vadd.f32 %v5770_v43, %v8748_v23  ;;  %5261 = vmatmul.mubr.msk.f32.gmra.mrb[170].mxu1 %vm1276_vm1, %v3949_v45  ;;  %6209 = vmatmul.mubr.msk.f32.gmra.mrb[152].mxu0 %vm1276_vm1, %v3949_v45 }
 0x869   : > { %4042 = vmatprep.mubr.f32.mxu1 %v6920_v26  ;;  %6211 = vmatprep.mubr.msk.f32.mxu0 %vm6919_vm0, %v6920_v26 }
 0x86a   : > { %v3954_v38 = vadd.f32 %v9320_v46, %v3874_v35 }
 0x86c   : > { %5262 = vmatmul.mubr.msk.f32.gmra.mrb[172].mxu1 %vm1276_vm1, %v3954_v38  ;;  %6212 = vmatmul.mubr.msk.f32.gmra.mrb[154].mxu0 %vm1276_vm1, %v3954_v38 }
 0x86d   : > { %6220 = vmatprep.mubr.msk.f32.mxu0 %vm1276_vm1, %v6826_v17  ;;  %4204 = vmatprep.mubr.f32.mxu1 %v6920_v26 }
 0x937   : > { %v4032_v23 = vpop.f32.mrb[168].mxu1  ;;  %v4115_v58 = vpop.f32.mrb[150].mxu0 }
 0x938   : > { %v4034_v44 = vpop.f32.mrb[169].mxu1  ;;  %v6207_v22 = vpop.f32.mrb[151].mxu0 }
 0x93b   : > { %v4038_v15 = vpop.f32.mrb[170].mxu1  ;;  %v4120_v16 = vpop.f32.mrb[152].mxu0 }
 0x93c   : > { %v6686_v59 = vpack.c.bf16 %v4038_v15, %v4032_v23  ;;  %v6688_v29 = vpack.c.bf16 %v4120_v16, %v4115_v58  ;;  %v4040_v42 = vpop.f32.mrb[171].mxu1  ;;  %v6210_v46 = vpop.f32.mrb[153].mxu0 }
 0x93d   : > { %v6684_v14 = vpack.c.bf16 %v4040_v42, %v4034_v44 }
 0x93e   : > { %6689 = vmatprep.subr.bf16.mxu0 %v6688_v29 }
 0x93f   : > { %v4044_v3 = vpop.f32.mrb[172].mxu1  ;;  %v4125_v41 = vpop.f32.mrb[154].mxu0  ;;  %6685 = vmatprep.subr.bf16.mxu1 %v6684_v14  ;;  %6691 = vmatpush3.bf16.msra.mxu0 %v6688_v29 }
 0x940   : > { %v4046_v4 = vpop.f32.mrb[173].mxu1  ;;  %v6213_v7 = vpop.f32.mrb[155].mxu0  ;;  %6687 = vmatpush1.bf16.msra.mxu1 %v6686_v59  ;;  %6218 = vmatprep.subr.mxu0 %v4125_v41 }
 0x941   : > { %4144 = vmatprep.subr.mxu1 %v4046_v4 }
 0x943   : > { %6219 = vmatpush3.msra.mxu0 %v4125_v41 }
 0x944   : > { %4145 = vmatpush1.msra.mxu1 %v4044_v3  ;;  %6221 = vmatmul.mubr.msk.f32.vlgmr.msra.gmra.mrb[156].mxu0 %vm1276_vm1, %v6827_v8 }
 0x945   : > { %5268 = vmatmul.mubr.msk.f32.vlgmr.msra.gmra.mrb[174].mxu1 %vm1276_vm1, %v6826_v17  ;;  %6223 = vmatprep.mubr.msk.f32.mxu0 %vm1276_vm1, %v6828_v30 }
 0x946   : > { %4210 = vmatprep.mubr.f32.mxu1 %v6920_v26 }
 0x948   : > { %6224 = vmatmul.mubr.msk.f32.gmra.mrb[158].mxu0 %vm1276_vm1, %v6829_v60 }
 0x949   : > { %5269 = vmatmul.mubr.msk.f32.gmra.mrb[176].mxu1 %vm1276_vm1, %v6827_v8  ;;  %6226 = vmatprep.mubr.msk.f32.mxu0 %vm1276_vm1, %v6830_v54 }
 0x94a   : > { %4216 = vmatprep.mubr.f32.mxu1 %v6920_v26 }
 0x94c   : > { %6227 = vmatmul.mubr.msk.f32.gmra.mrb[160].mxu0 %vm1276_vm1, %v6831_v24 }
 0x94d   : > { %5270 = vmatmul.mubr.msk.f32.gmra.mrb[178].mxu1 %vm1276_vm1, %v6828_v30  ;;  %6229 = vmatprep.mubr.msk.f32.mxu0 %vm1276_vm1, %v6832_v28 }
 0x94e   : > { %4222 = vmatprep.mubr.f32.mxu1 %v6920_v26 }
 0x950   : > { %6230 = vmatmul.mubr.msk.f32.gmra.mrb[162].mxu0 %vm1276_vm1, %v6833_v51 }
 0x951   : > { %5271 = vmatmul.mubr.msk.f32.gmra.mrb[180].mxu1 %vm1276_vm1, %v6829_v60  ;;  %6232 = vmatprep.mubr.msk.f32.mxu0 %vm1276_vm1, %v6834_v55 }
 0x952   : > { %4228 = vmatprep.mubr.f32.mxu1 %v6920_v26 }
 0x954   : > { %6233 = vmatmul.mubr.msk.f32.gmra.mrb[164].mxu0 %vm1276_vm1, %v6835_v0 }
 0x955   : > { %5272 = vmatmul.mubr.msk.f32.gmra.mrb[182].mxu1 %vm1276_vm1, %v6830_v54  ;;  %6235 = vmatprep.mubr.msk.f32.mxu0 %vm1276_vm1, %v6836_v2 }
 0x956   : > { %4234 = vmatprep.mubr.f32.mxu1 %v6920_v26 }
 0x958   : > { %6236 = vmatmul.mubr.msk.f32.gmra.mrb[166].mxu0 %vm1276_vm1, %v6837_v5 }
 0x959   : > { %5273 = vmatmul.mubr.msk.f32.gmra.mrb[184].mxu1 %vm1276_vm1, %v6831_v24  ;;  %6238 = vmatprep.mubr.msk.f32.mxu0 %vm1276_vm1, %v6838_v50 }
 0x95a   : > { %4240 = vmatprep.mubr.f32.mxu1 %v6920_v26 }
 0x95c   : > { %6239 = vmatmul.mubr.msk.f32.gmra.mrb[168].mxu0 %vm1276_vm1, %v6839_v9 }
 0x95d   : > { %5274 = vmatmul.mubr.msk.f32.gmra.mrb[186].mxu1 %vm1276_vm1, %v6832_v28  ;;  %6241 = vmatprep.mubr.msk.f32.mxu0 %vm1276_vm1, %v6840_v12 }
 0x95e   : > { %4246 = vmatprep.mubr.f32.mxu1 %v6920_v26 }
 0x960   : > { %6242 = vmatmul.mubr.msk.f32.gmra.mrb[170].mxu0 %vm1276_vm1, %v6841_v31 }
 0x961   : > { %5275 = vmatmul.mubr.msk.f32.gmra.mrb[188].mxu1 %vm1276_vm1, %v6833_v51  ;;  %6244 = vmatprep.mubr.msk.f32.mxu0 %vm1276_vm1, %v6842_v61 }
 0x962   : > { %4252 = vmatprep.mubr.f32.mxu1 %v6920_v26 }
 0x964   : > { %6245 = vmatmul.mubr.msk.f32.gmra.mrb[172].mxu0 %vm1276_vm1, %v6843_v13 }
 0x965   : > { %5276 = vmatmul.mubr.msk.f32.gmra.mrb[190].mxu1 %vm1276_vm1, %v6834_v55  ;;  %6247 = vmatprep.mubr.msk.f32.mxu0 %vm1276_vm1, %v6844_v10 }
 0x966   : > { %4258 = vmatprep.mubr.f32.mxu1 %v6920_v26 }
 0x968   : > { %6248 = vmatmul.mubr.msk.f32.gmra.mrb[174].mxu0 %vm1276_vm1, %v6845_v19 }
 0x969   : > { %5277 = vmatmul.mubr.msk.f32.gmra.mrb[192].mxu1 %vm1276_vm1, %v6835_v0  ;;  %6250 = vmatprep.mubr.msk.f32.mxu0 %vm1276_vm1, %v6846_v25 }
 0x96a   : > { %4264 = vmatprep.mubr.f32.mxu1 %v6920_v26 }
 0x96c   : > { %6251 = vmatmul.mubr.msk.f32.gmra.mrb[176].mxu0 %vm1276_vm1, %v6847_v34 }
 0x96d   : > { %5278 = vmatmul.mubr.msk.f32.gmra.mrb[194].mxu1 %vm1276_vm1, %v6836_v2  ;;  %6253 = vmatprep.mubr.msk.f32.mxu0 %vm1276_vm1, %v6848_v20 }
 0x96e   : > { %4270 = vmatprep.mubr.f32.mxu1 %v6920_v26 }
 0x970   : > { %6254 = vmatmul.mubr.msk.f32.gmra.mrb[178].mxu0 %vm1276_vm1, %v6849_v11 }
 0x971   : > { %5279 = vmatmul.mubr.msk.f32.gmra.mrb[196].mxu1 %vm1276_vm1, %v6837_v5 }
 0x972   : > { %4276 = vmatprep.mubr.f32.mxu1 %v6920_v26 }
 0x975   : > { %5280 = vmatmul.mubr.msk.f32.gmra.mrb[198].mxu1 %vm1276_vm1, %v6838_v50 }
 0x976   : > { %4282 = vmatprep.mubr.f32.mxu1 %v6920_v26 }
 0x979   : > { %5281 = vmatmul.mubr.msk.f32.gmra.mrb[200].mxu1 %vm1276_vm1, %v6839_v9 }
 0x97a   : > { %4288 = vmatprep.mubr.f32.mxu1 %v6920_v26 }
 0x97d   : > { %5282 = vmatmul.mubr.msk.f32.gmra.mrb[202].mxu1 %vm1276_vm1, %v6840_v12 }
 0x97e   : > { %4294 = vmatprep.mubr.f32.mxu1 %v6920_v26 }
 0x981   : > { %5283 = vmatmul.mubr.msk.f32.gmra.mrb[204].mxu1 %vm1276_vm1, %v6841_v31 }
 0x982   : > { %4300 = vmatprep.mubr.f32.mxu1 %v6920_v26 }
 0x985   : > { %5284 = vmatmul.mubr.msk.f32.gmra.mrb[206].mxu1 %vm1276_vm1, %v6842_v61 }
 0x986   : > { %4306 = vmatprep.mubr.f32.mxu1 %v6920_v26 }
 0x989   : > { %5285 = vmatmul.mubr.msk.f32.gmra.mrb[208].mxu1 %vm1276_vm1, %v6843_v13 }
 0x98a   : > { %4312 = vmatprep.mubr.f32.mxu1 %v6920_v26 }
 0x98d   : > { %5286 = vmatmul.mubr.msk.f32.gmra.mrb[210].mxu1 %vm1276_vm1, %v6844_v10 }
 0x98e   : > { %4318 = vmatprep.mubr.f32.mxu1 %v6920_v26 }
 0x991   : > { %5287 = vmatmul.mubr.msk.f32.gmra.mrb[212].mxu1 %vm1276_vm1, %v6845_v19 }
 0x992   : > { %4324 = vmatprep.mubr.f32.mxu1 %v6920_v26 }
 0x995   : > { %5288 = vmatmul.mubr.msk.f32.gmra.mrb[214].mxu1 %vm1276_vm1, %v6846_v25 }
 0x996   : > { %4330 = vmatprep.mubr.f32.mxu1 %v6920_v26 }
 0x999   : > { %5289 = vmatmul.mubr.msk.f32.gmra.mrb[216].mxu1 %vm1276_vm1, %v6847_v34 }
 0x99a   : > { %4336 = vmatprep.mubr.f32.mxu1 %v6920_v26 }
 0x99d   : > { %5290 = vmatmul.mubr.msk.f32.gmra.mrb[218].mxu1 %vm1276_vm1, %v6848_v20 }
 0x99e   : > { %4342 = vmatprep.mubr.f32.mxu1 %v6920_v26 }
 0x9a1   : > { %5291 = vmatmul.mubr.msk.f32.gmra.mrb[220].mxu1 %vm1276_vm1, %v6849_v11 }
 0xa17   : > { %v6222_v39 = vpop.f32.mrb[156].mxu0 }
 0xa18   : > { %v4421_v49 = vadd.f32 %v6222_v39, %v9477_v21  ;;  %v4206_v52 = vpop.f32.mrb[174].mxu1  ;;  %v4415_v62 = vpop.f32.mrb[157].mxu0 }
 0xa19   : > { %v4207_v48 = vadd.f32 %v4206_v52, %v9477_v21  ;;  %v4416_v53 = vadd.f32 %v4415_v62, %v9477_v21  ;;  %v4208_v56 = vpop.f32.mrb[175].mxu1 }
 0xa1a   : > { %5321 = vst [vmem:[%s8193_s24 + $0x6e8] sm:$0xff] %v4421_v49  ;;  %v4209_v26 = vadd.f32 %v4208_v56, %v9477_v21 }
 0xa1b   : > { %5316 = vst [vmem:[%s8193_s24 + $0x6c0] sm:$0xff] %v4207_v48  ;;  %5318 = vst [vmem:[%s8193_s24 + $0x6d0] sm:$0xff] %v4416_v53  ;;  %v6225_v1 = vpop.f32.mrb[158].mxu0 }
 0xa1c   : > { %5317 = vst [vmem:[%s8193_s24 + $0x6c8] sm:$0xff] %v4209_v26  ;;  %v4431_v57 = vadd.f32 %v6225_v1, %v9477_v21  ;;  %v4212_v63 = vpop.f32.mrb[176].mxu1  ;;  %v4425_v6 = vpop.f32.mrb[159].mxu0 }
 0xa1d   : > { %v4213_v36 = vadd.f32 %v4212_v63, %v9477_v21  ;;  %v4426_v47 = vadd.f32 %v4425_v6, %v9477_v21  ;;  %v4214_v32 = vpop.f32.mrb[177].mxu1 }
 0xa1e   : > { %5327 = vst [vmem:[%s8193_s24 + $0x718] sm:$0xff] %v4431_v57  ;;  %v4215_v33 = vadd.f32 %v4214_v32, %v9477_v21 }
 0xa1f   : > { %5319 = vst [vmem:[%s8193_s24 + $0x6d8] sm:$0xff] %v4213_v36  ;;  %5324 = vst [vmem:[%s8193_s24 + $0x700] sm:$0xff] %v4426_v47  ;;  %v6228_v40 = vpop.f32.mrb[160].mxu0 }
 0xa20   : > { %5320 = vst [vmem:[%s8193_s24 + $0x6e0] sm:$0xff] %v4215_v33  ;;  %v4441_v27 = vadd.f32 %v6228_v40, %v9477_v21  ;;  %v4218_v37 = vpop.f32.mrb[178].mxu1  ;;  %v4435_v18 = vpop.f32.mrb[161].mxu0 }
 0xa21   : > { %v4219_v45 = vadd.f32 %v4218_v37, %v9477_v21  ;;  %v4436_v43 = vadd.f32 %v4435_v18, %v9477_v21  ;;  %v4220_v35 = vpop.f32.mrb[179].mxu1 }
 0xa22   : > { %5333 = vst [vmem:[%s8193_s24 + $0x748] sm:$0xff] %v4441_v27  ;;  %v4221_v38 = vadd.f32 %v4220_v35, %v9477_v21 }
 0xa23   : > { %5322 = vst [vmem:[%s8193_s24 + $0x6f0] sm:$0xff] %v4219_v45  ;;  %5330 = vst [vmem:[%s8193_s24 + $0x730] sm:$0xff] %v4436_v43  ;;  %v6231_v17 = vpop.f32.mrb[162].mxu0 }
 0xa24   : > { %5323 = vst [vmem:[%s8193_s24 + $0x6f8] sm:$0xff] %v4221_v38  ;;  %v4451_v23 = vadd.f32 %v6231_v17, %v9477_v21  ;;  %v4224_v58 = vpop.f32.mrb[180].mxu1  ;;  %v4445_v44 = vpop.f32.mrb[163].mxu0 }
 0xa25   : > { %v4225_v22 = vadd.f32 %v4224_v58, %v9477_v21  ;;  %v4446_v15 = vadd.f32 %v4445_v44, %v9477_v21  ;;  %v4226_v16 = vpop.f32.mrb[181].mxu1 }
 0xa26   : > { %5339 = vst [vmem:[%s8193_s24 + $0x778] sm:$0xff] %v4451_v23  ;;  %v4227_v59 = vadd.f32 %v4226_v16, %v9477_v21 }
 0xa27   : > { %5325 = vst [vmem:[%s8193_s24 + $0x708] sm:$0xff] %v4225_v22  ;;  %5336 = vst [vmem:[%s8193_s24 + $0x760] sm:$0xff] %v4446_v15  ;;  %v6234_v29 = vpop.f32.mrb[164].mxu0 }
 0xa28   : > { %5326 = vst [vmem:[%s8193_s24 + $0x710] sm:$0xff] %v4227_v59  ;;  %v4461_v42 = vadd.f32 %v6234_v29, %v9477_v21  ;;  %v4230_v46 = vpop.f32.mrb[182].mxu1  ;;  %v4455_v14 = vpop.f32.mrb[165].mxu0 }
 0xa29   : > { %v4231_v3 = vadd.f32 %v4230_v46, %v9477_v21  ;;  %v4456_v41 = vadd.f32 %v4455_v14, %v9477_v21  ;;  %v4232_v4 = vpop.f32.mrb[183].mxu1 }
 0xa2a   : > { %5345 = vst [vmem:[%s8193_s24 + $0x7a8] sm:$0xff] %v4461_v42  ;;  %v4233_v7 = vadd.f32 %v4232_v4, %v9477_v21 }
 0xa2b   : > { %5328 = vst [vmem:[%s8193_s24 + $0x720] sm:$0xff] %v4231_v3  ;;  %5342 = vst [vmem:[%s8193_s24 + $0x790] sm:$0xff] %v4456_v41  ;;  %v6237_v8 = vpop.f32.mrb[166].mxu0 }
 0xa2c   : > { %5329 = vst [vmem:[%s8193_s24 + $0x728] sm:$0xff] %v4233_v7  ;;  %v4471_v30 = vadd.f32 %v6237_v8, %v9477_v21  ;;  %v4236_v60 = vpop.f32.mrb[184].mxu1  ;;  %v4465_v54 = vpop.f32.mrb[167].mxu0 }
 0xa2d   : > { %v4237_v24 = vadd.f32 %v4236_v60, %v9477_v21  ;;  %v4466_v28 = vadd.f32 %v4465_v54, %v9477_v21  ;;  %v4238_v51 = vpop.f32.mrb[185].mxu1 }
 0xa2e   : > { %5351 = vst [vmem:[%s8193_s24 + $0x7d8] sm:$0xff] %v4471_v30  ;;  %v4239_v55 = vadd.f32 %v4238_v51, %v9477_v21 }
 0xa2f   : > { %5331 = vst [vmem:[%s8193_s24 + $0x738] sm:$0xff] %v4237_v24  ;;  %5348 = vst [vmem:[%s8193_s24 + $0x7c0] sm:$0xff] %v4466_v28  ;;  %v6240_v0 = vpop.f32.mrb[168].mxu0 }
 0xa30   : > { %5332 = vst [vmem:[%s8193_s24 + $0x740] sm:$0xff] %v4239_v55  ;;  %v4481_v2 = vadd.f32 %v6240_v0, %v9477_v21  ;;  %v4242_v5 = vpop.f32.mrb[186].mxu1  ;;  %v4475_v50 = vpop.f32.mrb[169].mxu0 }
 0xa31   : > { %v4243_v9 = vadd.f32 %v4242_v5, %v9477_v21  ;;  %v4476_v12 = vadd.f32 %v4475_v50, %v9477_v21  ;;  %v4244_v31 = vpop.f32.mrb[187].mxu1 }
 0xa32   : > { %5357 = vst [vmem:[%s8193_s24 + $0x808] sm:$0xff] %v4481_v2  ;;  %v4245_v61 = vadd.f32 %v4244_v31, %v9477_v21 }
 0xa33   : > { %5334 = vst [vmem:[%s8193_s24 + $0x750] sm:$0xff] %v4243_v9  ;;  %5354 = vst [vmem:[%s8193_s24 + $0x7f0] sm:$0xff] %v4476_v12  ;;  %v6243_v13 = vpop.f32.mrb[170].mxu0 }
 0xa34   : > { %5335 = vst [vmem:[%s8193_s24 + $0x758] sm:$0xff] %v4245_v61  ;;  %v4491_v10 = vadd.f32 %v6243_v13, %v9477_v21  ;;  %v4248_v19 = vpop.f32.mrb[188].mxu1  ;;  %v4485_v25 = vpop.f32.mrb[171].mxu0 }
 0xa35   : > { %v4249_v34 = vadd.f32 %v4248_v19, %v9477_v21  ;;  %v4486_v20 = vadd.f32 %v4485_v25, %v9477_v21  ;;  %v4250_v11 = vpop.f32.mrb[189].mxu1 }
 0xa36   : > { %5363 = vst [vmem:[%s8193_s24 + $0x838] sm:$0xff] %v4491_v10  ;;  %v4251_v39 = vadd.f32 %v4250_v11, %v9477_v21 }
 0xa37   : > { %5337 = vst [vmem:[%s8193_s24 + $0x768] sm:$0xff] %v4249_v34  ;;  %5360 = vst [vmem:[%s8193_s24 + $0x820] sm:$0xff] %v4486_v20  ;;  %v6246_v49 = vpop.f32.mrb[172].mxu0 }
 0xa38   : > { %5338 = vst [vmem:[%s8193_s24 + $0x770] sm:$0xff] %v4251_v39  ;;  %v4501_v52 = vadd.f32 %v6246_v49, %v9477_v21  ;;  %v4254_v62 = vpop.f32.mrb[190].mxu1  ;;  %v4495_v48 = vpop.f32.mrb[173].mxu0 }
 0xa39   : > { %v4255_v53 = vadd.f32 %v4254_v62, %v9477_v21  ;;  %v4496_v56 = vadd.f32 %v4495_v48, %v9477_v21  ;;  %v4256_v26 = vpop.f32.mrb[191].mxu1 }
 0xa3a   : > { %5369 = vst [vmem:[%s8193_s24 + $0x868] sm:$0xff] %v4501_v52  ;;  %v4257_v1 = vadd.f32 %v4256_v26, %v9477_v21 }
 0xa3b   : > { %5340 = vst [vmem:[%s8193_s24 + $0x780] sm:$0xff] %v4255_v53  ;;  %5366 = vst [vmem:[%s8193_s24 + $0x850] sm:$0xff] %v4496_v56  ;;  %v6249_v57 = vpop.f32.mrb[174].mxu0 }
 0xa3c   : > { %5341 = vst [vmem:[%s8193_s24 + $0x788] sm:$0xff] %v4257_v1  ;;  %v4511_v63 = vadd.f32 %v6249_v57, %v9477_v21  ;;  %v4260_v6 = vpop.f32.mrb[192].mxu1  ;;  %v4505_v36 = vpop.f32.mrb[175].mxu0 }
 0xa3d   : > { %v4261_v47 = vadd.f32 %v4260_v6, %v9477_v21  ;;  %v4506_v32 = vadd.f32 %v4505_v36, %v9477_v21  ;;  %v4262_v33 = vpop.f32.mrb[193].mxu1 }
 0xa3e   : > { %5375 = vst [vmem:[%s8193_s24 + $0x898] sm:$0xff] %v4511_v63  ;;  %v4263_v40 = vadd.f32 %v4262_v33, %v9477_v21 }
 0xa3f   : > { %5343 = vst [vmem:[%s8193_s24 + $0x798] sm:$0xff] %v4261_v47  ;;  %5372 = vst [vmem:[%s8193_s24 + $0x880] sm:$0xff] %v4506_v32  ;;  %v6252_v27 = vpop.f32.mrb[176].mxu0 }
 0xa40   : > { %5344 = vst [vmem:[%s8193_s24 + $0x7a0] sm:$0xff] %v4263_v40  ;;  %v4521_v37 = vadd.f32 %v6252_v27, %v9477_v21  ;;  %v4266_v18 = vpop.f32.mrb[194].mxu1  ;;  %v4515_v45 = vpop.f32.mrb[177].mxu0 }
 0xa41   : > { %v4267_v43 = vadd.f32 %v4266_v18, %v9477_v21  ;;  %v4516_v35 = vadd.f32 %v4515_v45, %v9477_v21  ;;  %v4268_v38 = vpop.f32.mrb[195].mxu1 }
 0xa42   : > { %5381 = vst [vmem:[%s8193_s24 + $0x8c8] sm:$0xff] %v4521_v37  ;;  %v4269_v17 = vadd.f32 %v4268_v38, %v9477_v21 }
 0xa43   : > { %5346 = vst [vmem:[%s8193_s24 + $0x7b0] sm:$0xff] %v4267_v43  ;;  %5378 = vst [vmem:[%s8193_s24 + $0x8b0] sm:$0xff] %v4516_v35  ;;  %v6255_v23 = vpop.f32.mrb[178].mxu0 }
 0xa44   : > { %5347 = vst [vmem:[%s8193_s24 + $0x7b8] sm:$0xff] %v4269_v17  ;;  %v4531_v58 = vadd.f32 %v6255_v23, %v9477_v21  ;;  %v4272_v44 = vpop.f32.mrb[196].mxu1  ;;  %v4525_v22 = vpop.f32.mrb[179].mxu0 }
 0xa45   : > { %v4273_v15 = vadd.f32 %v4272_v44, %v9477_v21  ;;  %v4526_v16 = vadd.f32 %v4525_v22, %v9477_v21  ;;  %v4274_v59 = vpop.f32.mrb[197].mxu1 }
 0xa46   : > { %5387 = vst [vmem:[%s8193_s24 + $0x8f8] sm:$0xff] %v4531_v58  ;;  %v4275_v29 = vadd.f32 %v4274_v59, %v9477_v21 }
 0xa47   : > { %5349 = vst [vmem:[%s8193_s24 + $0x7c8] sm:$0xff] %v4273_v15  ;;  %5384 = vst [vmem:[%s8193_s24 + $0x8e0] sm:$0xff] %v4526_v16 }
 0xa48   : > { %5350 = vst [vmem:[%s8193_s24 + $0x7d0] sm:$0xff] %v4275_v29  ;;  %v4278_v42 = vpop.f32.mrb[198].mxu1 }
 0xa49   : > { %v4279_v46 = vadd.f32 %v4278_v42, %v9477_v21  ;;  %v4280_v14 = vpop.f32.mrb[199].mxu1 }
 0xa4a   : > { %v4281_v3 = vadd.f32 %v4280_v14, %v9477_v21 }
 0xa4b   : > { %5352 = vst [vmem:[%s8193_s24 + $0x7e0] sm:$0xff] %v4279_v46 }
 0xa4c   : > { %5353 = vst [vmem:[%s8193_s24 + $0x7e8] sm:$0xff] %v4281_v3  ;;  %v4284_v41 = vpop.f32.mrb[200].mxu1 }
 0xa4d   : > { %v4285_v4 = vadd.f32 %v4284_v41, %v9477_v21  ;;  %v4286_v7 = vpop.f32.mrb[201].mxu1 }
 0xa4e   : > { %v4287_v8 = vadd.f32 %v4286_v7, %v9477_v21 }
 0xa4f   : > { %5355 = vst [vmem:[%s8193_s24 + $0x7f8] sm:$0xff] %v4285_v4 }
 0xa50   : > { %5356 = vst [vmem:[%s8193_s24 + $0x800] sm:$0xff] %v4287_v8  ;;  %v4290_v30 = vpop.f32.mrb[202].mxu1 }
 0xa51   : > { %v4291_v60 = vadd.f32 %v4290_v30, %v9477_v21  ;;  %v4292_v54 = vpop.f32.mrb[203].mxu1 }
 0xa52   : > { %v4293_v24 = vadd.f32 %v4292_v54, %v9477_v21 }
 0xa53   : > { %5358 = vst [vmem:[%s8193_s24 + $0x810] sm:$0xff] %v4291_v60 }
 0xa54   : > { %5359 = vst [vmem:[%s8193_s24 + $0x818] sm:$0xff] %v4293_v24  ;;  %v4296_v28 = vpop.f32.mrb[204].mxu1 }
 0xa55   : > { %v4297_v51 = vadd.f32 %v4296_v28, %v9477_v21  ;;  %v4298_v55 = vpop.f32.mrb[205].mxu1 }
 0xa56   : > { %v4299_v0 = vadd.f32 %v4298_v55, %v9477_v21 }
 0xa57   : > { %5361 = vst [vmem:[%s8193_s24 + $0x828] sm:$0xff] %v4297_v51 }
 0xa58   : > { %5362 = vst [vmem:[%s8193_s24 + $0x830] sm:$0xff] %v4299_v0  ;;  %v4302_v2 = vpop.f32.mrb[206].mxu1 }
 0xa59   : > { %v4303_v5 = vadd.f32 %v4302_v2, %v9477_v21  ;;  %v4304_v50 = vpop.f32.mrb[207].mxu1 }
 0xa5a   : > { %v4305_v9 = vadd.f32 %v4304_v50, %v9477_v21 }
 0xa5b   : > { %5364 = vst [vmem:[%s8193_s24 + $0x840] sm:$0xff] %v4303_v5 }
 0xa5c   : > { %5365 = vst [vmem:[%s8193_s24 + $0x848] sm:$0xff] %v4305_v9  ;;  %v4308_v12 = vpop.f32.mrb[208].mxu1 }
 0xa5d   : > { %v4309_v31 = vadd.f32 %v4308_v12, %v9477_v21  ;;  %v4310_v61 = vpop.f32.mrb[209].mxu1 }
 0xa5e   : > { %v4311_v13 = vadd.f32 %v4310_v61, %v9477_v21 }
 0xa5f   : > { %5367 = vst [vmem:[%s8193_s24 + $0x858] sm:$0xff] %v4309_v31 }
 0xa60   : > { %5368 = vst [vmem:[%s8193_s24 + $0x860] sm:$0xff] %v4311_v13  ;;  %v4314_v10 = vpop.f32.mrb[210].mxu1 }
 0xa61   : > { %v4315_v19 = vadd.f32 %v4314_v10, %v9477_v21  ;;  %v4316_v25 = vpop.f32.mrb[211].mxu1 }
 0xa62   : > { %v4317_v34 = vadd.f32 %v4316_v25, %v9477_v21 }
 0xa63   : > { %5370 = vst [vmem:[%s8193_s24 + $0x870] sm:$0xff] %v4315_v19 }
 0xa64   : > { %5371 = vst [vmem:[%s8193_s24 + $0x878] sm:$0xff] %v4317_v34  ;;  %v4320_v20 = vpop.f32.mrb[212].mxu1 }
 0xa65   : > { %v4321_v11 = vadd.f32 %v4320_v20, %v9477_v21  ;;  %v4322_v39 = vpop.f32.mrb[213].mxu1 }
 0xa66   : > { %v4323_v49 = vadd.f32 %v4322_v39, %v9477_v21 }
 0xa67   : > { %5373 = vst [vmem:[%s8193_s24 + $0x888] sm:$0xff] %v4321_v11 }
 0xa68   : > { %5374 = vst [vmem:[%s8193_s24 + $0x890] sm:$0xff] %v4323_v49  ;;  %v4326_v52 = vpop.f32.mrb[214].mxu1 }
 0xa69   : > { %v4327_v62 = vadd.f32 %v4326_v52, %v9477_v21  ;;  %v4328_v48 = vpop.f32.mrb[215].mxu1 }
 0xa6a   : > { %v4329_v53 = vadd.f32 %v4328_v48, %v9477_v21 }
 0xa6b   : > { %5376 = vst [vmem:[%s8193_s24 + $0x8a0] sm:$0xff] %v4327_v62 }
 0xa6c   : > { %5377 = vst [vmem:[%s8193_s24 + $0x8a8] sm:$0xff] %v4329_v53  ;;  %v4332_v56 = vpop.f32.mrb[216].mxu1 }
 0xa6d   : > { %v4333_v26 = vadd.f32 %v4332_v56, %v9477_v21  ;;  %v4334_v1 = vpop.f32.mrb[217].mxu1 }
 0xa6e   : > { %v4335_v57 = vadd.f32 %v4334_v1, %v9477_v21 }
 0xa6f   : > { %5379 = vst [vmem:[%s8193_s24 + $0x8b8] sm:$0xff] %v4333_v26 }
 0xa70   : > { %5380 = vst [vmem:[%s8193_s24 + $0x8c0] sm:$0xff] %v4335_v57  ;;  %v4338_v63 = vpop.f32.mrb[218].mxu1 }
 0xa71   : > { %v4339_v6 = vadd.f32 %v4338_v63, %v9477_v21  ;;  %v4340_v36 = vpop.f32.mrb[219].mxu1 }
 0xa72   : > { %v4341_v47 = vadd.f32 %v4340_v36, %v9477_v21 }
 0xa73   : > { %5382 = vst [vmem:[%s8193_s24 + $0x8d0] sm:$0xff] %v4339_v6 }
 0xa74   : > { %5383 = vst [vmem:[%s8193_s24 + $0x8d8] sm:$0xff] %v4341_v47  ;;  %v4344_v32 = vpop.f32.mrb[220].mxu1 }
 0xa75   : > { %v4345_v33 = vadd.f32 %v4344_v32, %v9477_v21  ;;  %v4346_v40 = vpop.f32.mrb[221].mxu1 }
 0xa76   : > { %v4347_v27 = vadd.f32 %v4346_v40, %v9477_v21 }
 0xa77   : > { %5385 = vst [vmem:[%s8193_s24 + $0x8e8] sm:$0xff] %v4345_v33 }
 0xa78   : > { %5386 = vst [vmem:[%s8193_s24 + $0x8f0] sm:$0xff] %v4347_v27 }
 0xa79   : > { %s6720_s29 = smul.u32 72, %s6900_s16  ;;  %s4643_s18 = sshll.u32 %s8193_s24, 4  ;;  %s4644_s18 = int_to_ptr.vmem [resolvable:$true] %s4643_s18 }
 0xa7a   : > { %s6707_s19 = smul.u32 576, %s6904_s17  ;;  %s6922_s22 = smov 9216  }
 0xa7b   : > { %6708 = sst [smem:[#allocation5]] (%p7034_p3), %s6922_s22  ;;  %s6923_s13 = smov 18432  }
 0xa7c   : > { %s4624_s23 = sadd.s32 %s6720_s29, %s6707_s19  ;;  %6709 = sst [smem:[#allocation5 + $0x1]] (%p7034_p3), %s6923_s13 }
 0xa7d   : > { %s5388_s25 = sshll.u32 %s4624_s23, 7  ;;  %s6924_s11 = smov 24  }
 0xa7e   : > { %s4626_s12 = scalar_lea.hbm %s9683_s10, %s5388_s25  ;;  %6710 = sst [smem:[#allocation5 + $0x2]] (%p7034_p3), %s6924_s11 }
 0xa7f   : > { %s6925_s16 = smov 384   ;;  %6713 = sst [smem:[#allocation5 + $0x5]] (%p7034_p3), %s6924_s11 }
 0xa80   : > { %6711 = sst [smem:[#allocation5 + $0x3]] (%p7034_p3), %s6925_s16  ;;  %s6926_s17 = smov [#allocation4]  }
 0xa81   : > { %6712 = sst [smem:[#allocation5 + $0x4]] (%p7034_p3), %s6925_s16  ;;  %s6927_s24 = smov 0  }
 0xa82   : > { %6714 = dma.general (%p7034_p3), %s4644_s18, 36864, %s4626_s12, %s4608_s21, %s6926_s17, [#allocation5], %s6927_s24, 0  }
 0xa83 PF: > { %s9697_s29 = sld [smem:[#allocation7_spill]]  ;;  %p6721_p0 = scmp.ge.s32.totalorder %s6916_s20, 2 }
 0xa85   : > { %p6717_p1 = pnand %p6721_p0, %p7043_p8 }
 0xa89   : > { %s4671_s19 = sand.u32 1, %s9697_s29  }
 0xa8a   : > { %s4672_s23 = scalar_lea.sflag [#allocation3], %s4671_s19 }
 0xa8b   : > { %6883 = dma.done.wait (!%p6717_p1), %s4672_s23, 36864  }
 0xa8c   : > { %6885 = vsyncadd (!%p6717_p1), %s4672_s23, 4294930432  ;;  %s23_s20 = sadd.s32 1, %s6916_s20   ;;  %s9698_s22 = sld [smem:[#allocation12_spill]] }
 0xa8d   : > { %p20_p2 = scmp.ge.s32.totalorder %s23_s20, 6   ;;  %s9699_s16 = sld [smem:[#allocation8_spill]] }
 0xa8e   : > { %s9700_s17 = sld [smem:[#allocation9_spill]]  ;;  %s9701_s18 = sld [smem:[#allocation10_spill]] }
 0xa8f   : > { %s9702_s19 = sld [smem:[#allocation11_spill]]  ;;  %s9703_s13 = smov %s6892_s14 }
 0xa90   : > { %s9704_s14 = smov %s6896_s15  ;;  %22 = sbr.rel (!%p20_p2) target bundleno = 5 (0x5), region = 124 }
 0xa92   : > { %s9705_s15 = smov %s9698_s22 }
 0xa97   :  { %4677 = vsyncpa [#allocation3], 1 }
 0xa98   :  { %4679 = vsyncpa [#allocation3 + $0x1], 1 }

</bundles_post_ra>
